<compile_context>
chip_gen: v5e
topology: v5e:2x2
jax: 0.10.0
libtpu: 0.0.40
codegen_flags: <defaults>
</compile_context>

<pallas_src>
import functools
import math

import jax
import jax.numpy as jnp
from jax.experimental import pallas as pl
from jax.experimental.pallas import tpu as pltpu

EPS = 1e-5
_MIB = 1 << 20


# ---------------------------------------------------------------------------
# In-kernel helpers
# ---------------------------------------------------------------------------
def _conv3x3_chunk(src_ref, w_ref, patch_ref, r0, rc, wo, stride, cin, fold):
    """3x3 conv for `rc` output rows starting at output row r0.

    `src_ref` is a spatially zero-padded NHWC block (pad = 1) already in the
    MXU dtype.  If `fold`, the nine taps are packed side by side into
    `patch_ref` (n, rc, wo, 9*cin) and one matmul with K = 9*cin is issued;
    otherwise nine accumulating K = cin matmuls read `src_ref` directly.
    Returns (y_f32 of shape (rows, cout), center_2d); the centre (dy=1, dx=1)
    tap equals the stride-sampled unpadded input (feeds the 1x1 projection).
    """
    n_blk = src_ref.shape[0]
    rows = n_blk * rc * wo
    center = None
    acc = None
    for dy in range(3):
        for dx in range(3):
            if stride == 1:
                piece = src_ref[:, pl.ds(r0 + dy, rc), dx:dx + wo, :]
            else:
                piece = src_ref[:, pl.ds(r0 * stride + dy, rc, stride=stride),
                                pl.ds(dx, wo, stride=stride), :]
            t = dy * 3 + dx
            if t == 4:
                center = piece.reshape(rows, cin)
            if fold:
                patch_ref[:, :, :, t * cin:(t + 1) * cin] = piece
            else:
                y_t = jnp.dot(piece.reshape(rows, cin),
                              w_ref[t * cin:(t + 1) * cin, :],
                              preferred_element_type=jnp.float32)
                acc = y_t if acc is None else acc + y_t
    if fold:
        acc = jnp.dot(patch_ref[...].reshape(rows, 9 * cin), w_ref[...],
                      preferred_element_type=jnp.float32)
    return acc, center


def _pass1_kernel(*refs, stride, rc, has_proj, fold):
    """conv1 (3x3, stride) [+ 1x1 projection conv] + partial BN stats."""
    if has_proj:
        x_ref, w1_ref, ws_ref = refs[:3]
        y1_ref, ps1_ref, sc_ref, pss_ref = refs[3:7]
        scratch = refs[7:]
    else:
        x_ref, w1_ref = refs[:2]
        y1_ref, ps1_ref = refs[2:4]
        scratch = refs[4:]
        ws_ref = sc_ref = pss_ref = None
    xpad_ref = scratch[0]
    patch_ref = scratch[1] if fold else None

    n_blk, ho, wo, cout = y1_ref.shape
    h, w, cin = x_ref.shape[1], x_ref.shape[2], x_ref.shape[3]
    nchunks = ho // rc
    pdt = xpad_ref.dtype

    # Border-zero the padded scratch, then copy in + cast the unpadded block
    # (replaces a wrapper-level jnp.pad HBM round trip).
    xpad_ref[:, 0:1, :, :] = jnp.zeros((n_blk, 1, w + 2, cin), pdt)
    xpad_ref[:, h + 1:h + 2, :, :] = jnp.zeros((n_blk, 1, w + 2, cin), pdt)
    xpad_ref[:, :, 0:1, :] = jnp.zeros((n_blk, h + 2, 1, cin), pdt)
    xpad_ref[:, :, w + 1:w + 2, :] = jnp.zeros((n_blk, h + 2, 1, cin), pdt)
    xpad_ref[:, 1:h + 1, 1:w + 1, :] = x_ref[...].astype(pdt)

    def chunk(ci, carry):
        s1, q1, ss, qs = carry
        r0 = pl.multiple_of(ci * rc, rc)
        y, center = _conv3x3_chunk(xpad_ref, w1_ref, patch_ref, r0, rc, wo,
                                   stride, cin, fold)
        s1 = s1 + jnp.sum(y, axis=0, keepdims=True)
        q1 = q1 + jnp.sum(y * y, axis=0, keepdims=True)
        y1_ref[:, pl.ds(r0, rc), :, :] = (
            y.reshape(n_blk, rc, wo, cout).astype(y1_ref.dtype))
        if has_proj:
            sc = jnp.dot(center, ws_ref[...],
                         preferred_element_type=jnp.float32)
            ss = ss + jnp.sum(sc, axis=0, keepdims=True)
            qs = qs + jnp.sum(sc * sc, axis=0, keepdims=True)
            sc_ref[:, pl.ds(r0, rc), :, :] = (
                sc.reshape(n_blk, rc, wo, cout).astype(sc_ref.dtype))
        return s1, q1, ss, qs

    zero = jnp.zeros((1, cout), jnp.float32)
    s1, q1, ss, qs = jax.lax.fori_loop(0, nchunks, chunk,
                                       (zero, zero, zero, zero), unroll=True)
    ps1_ref[:, 0:1, :] = s1.reshape(1, 1, cout)
    ps1_ref[:, 1:2, :] = q1.reshape(1, 1, cout)
    if has_proj:
        pss_ref[:, 0:1, :] = ss.reshape(1, 1, cout)
        pss_ref[:, 1:2, :] = qs.reshape(1, 1, cout)


def _pass2_kernel(y1_ref, a1_ref, c1_ref, w2_ref, y2_ref, ps2_ref, *scratch,
                  rc, fold):
    """BN1 + ReLU (folded scale/shift) -> conv2 (3x3) + partial BN stats.

    BN1+ReLU for chunk ci+1 is produced while chunk ci is matmul'd so VPU
    work overlaps the MXU instead of two serial passes over the pad scratch.
    """
    zpad_ref = scratch[0]
    patch_ref = scratch[1] if fold else None
    n_blk, ho, wo, cout = y2_ref.shape
    nchunks = ho // rc
    zdt = zpad_ref.dtype

    # 1-pixel zero border only.
    zpad_ref[:, 0:1, :, :] = jnp.zeros((n_blk, 1, wo + 2, cout), zdt)
    zpad_ref[:, ho + 1:ho + 2, :, :] = jnp.zeros((n_blk, 1, wo + 2, cout), zdt)
    zpad_ref[:, :, 0:1, :] = jnp.zeros((n_blk, ho + 2, 1, cout), zdt)
    zpad_ref[:, :, wo + 1:wo + 2, :] = jnp.zeros((n_blk, ho + 2, 1, cout), zdt)

    # Hoist the folded BN1 scale/shift broadcast out of the unrolled loop
    # (JAX doesn't CSE broadcast_in_dim).
    a1 = jnp.broadcast_to(a1_ref[...].reshape(1, 1, 1, cout),
                          (n_blk, rc, wo, cout))
    c1 = jnp.broadcast_to(c1_ref[...].reshape(1, 1, 1, cout),
                          (n_blk, rc, wo, cout))

    # Prologue: normalize chunk 0 (static indices).
    y1_0 = y1_ref[:, 0:rc, :, :].astype(jnp.float32)
    zpad_ref[:, 1:rc + 1, 1:wo + 1, :] = (
        jnp.maximum(y1_0 * a1 + c1, 0.0).astype(zdt))

    def norm_chunk(ci):
        r0 = pl.multiple_of(ci * rc, rc)
        y1 = y1_ref[:, pl.ds(r0, rc), :, :].astype(jnp.float32)
        zpad_ref[:, pl.ds(r0 + 1, rc), 1:wo + 1, :] = (
            jnp.maximum(y1 * a1 + c1, 0.0).astype(zdt))

    def conv_chunk(ci, carry):
        s2, q2 = carry
        # Normalize the *next* chunk first (clamped re-normalization of the
        # last chunk is an idempotent no-op) so its halo row is ready.
        norm_chunk(jnp.minimum(ci + 1, nchunks - 1))
        r0 = pl.multiple_of(ci * rc, rc)
        y, _ = _conv3x3_chunk(zpad_ref, w2_ref, patch_ref, r0, rc, wo, 1,
                              cout, fold)
        s2 = s2 + jnp.sum(y, axis=0, keepdims=True)
        q2 = q2 + jnp.sum(y * y, axis=0, keepdims=True)
        y2_ref[:, pl.ds(r0, rc), :, :] = (
            y.reshape(n_blk, rc, wo, cout).astype(y2_ref.dtype))
        return s2, q2

    zero = jnp.zeros((1, cout), jnp.float32)
    s2, q2 = jax.lax.fori_loop(0, nchunks, conv_chunk, (zero, zero),
                               unroll=True)
    ps2_ref[:, 0:1, :] = s2.reshape(1, 1, cout)
    ps2_ref[:, 1:2, :] = q2.reshape(1, 1, cout)


def _pass3_kernel(*refs, has_proj):
    """BN2 [+ BN_s] + residual add + ReLU on lane-dense (N, Ho, Wo*Cout)."""
    if has_proj:
        y2_ref, sc_ref, a2_ref, c2_ref, as_ref, cs_ref, out_ref = refs
    else:
        y2_ref, sc_ref, a2_ref, c2_ref, out_ref = refs
        as_ref = cs_ref = None

    left = y2_ref[...].astype(jnp.float32) * a2_ref[...] + c2_ref[...]
    sc = sc_ref[...].astype(jnp.float32)
    if has_proj:
        sc = sc * as_ref[...] + cs_ref[...]
    out_ref[...] = jnp.maximum(left + sc, 0.0).astype(out_ref.dtype)


# ---------------------------------------------------------------------------
# Wrapper helpers
# ---------------------------------------------------------------------------
def _nbytes(shape, dtype):
    return math.prod(shape) * jnp.dtype(dtype).itemsize


def _compiler_params(per_step_bytes):
    # per_step_bytes already counts double-buffered pipelined blocks, weights
    # and scratches; add headroom, clamp to 56 MiB so v7x (64 MiB/TC) keeps
    # room for Mosaic internal scratch.
    limit = int(min(56 * _MIB, max(32 * _MIB, per_step_bytes + 4 * _MIB)))
    return pltpu.CompilerParams(dimension_semantics=("parallel",),
                                vmem_limit_bytes=limit)


def _pick_rc(ho, wo, n_blk, kdim, itemsize):
    """Rows per in-kernel chunk: divisor of Ho, rc*Wo sublane-aligned when
    possible, patch scratch under ~2 MiB, matmul M capped at 1024 rows."""
    budget, row_cap = 2 * _MIB, 1024
    cands = [d for d in range(1, ho + 1) if ho % d == 0]
    ok = [d for d in cands
          if n_blk * d * wo * kdim * itemsize <= budget
          and n_blk * d * wo <= row_cap]
    if not ok:
        return 1
    aligned = [d for d in ok if (d * wo) % 8 == 0]
    return max(aligned) if aligned else max(ok)


def _pick_batch_block(n, ho, wo):
    """Smallest batch block giving matmul M >= 256 while keeping >= 2 grid
    steps (so megacore / v7x can split the parallel axis)."""
    tn = 1
    for d in range(1, n + 1):
        if n % d:
            continue
        if n > 1 and n // d < 2:
            break
        tn = d
        if d * ho * wo >= 256:
            break
    return tn


def _finalize_bn(pstats, gamma, beta, count):
    """Combine per-grid-step (sum, sum_sq) into folded BN scale/shift (f32)."""
    s = jnp.sum(pstats[:, 0, :], axis=0)
    q = jnp.sum(pstats[:, 1, :], axis=0)
    mean = s / count
    var = jnp.maximum(q / count - mean * mean, 0.0)      # biased variance
    inv = jax.lax.rsqrt(var + EPS)
    a = gamma.reshape(-1).astype(jnp.float32) * inv
    c = beta.reshape(-1).astype(jnp.float32) - mean * a
    return a.reshape(1, -1), c.reshape(1, -1)


# ---------------------------------------------------------------------------
# Forward
# ---------------------------------------------------------------------------
def residual_block_forward(x_nchw, params, stride, *,
                           mxu_dtype=jnp.bfloat16, act_dtype=jnp.bfloat16,
                           batch_block=None, fold_threshold=128):
    """NCHW -> NHWC glue, three gridded pallas_calls, NHWC -> NCHW."""
    f32 = jnp.float32
    x = jnp.transpose(x_nchw, (0, 2, 3, 1)).astype(f32)              # NHWC
    N, H, W, Cin = x.shape
    Cout = params["w1"].shape[-1]
    Ho = (H + 2 - 3) // stride + 1
    Wo = (W + 2 - 3) // stride + 1
    has_proj = (stride != 1) or (Cin != Cout)

    tn = batch_block if batch_block is not None else _pick_batch_block(N, Ho, Wo)
    assert N % tn == 0, "batch_block must divide the batch size"
    ngrid = N // tn
    nhw = N * Ho * Wo

    fold1 = Cin < fold_threshold          # im2col fold only pays for small C
    fold2 = Cout < fold_threshold
    msz = jnp.dtype(mxu_dtype).itemsize
    rc1 = _pick_rc(Ho, Wo, tn, 9 * Cin if fold1 else 0, msz)
    rc2 = _pick_rc(Ho, Wo, tn, 9 * Cout if fold2 else 0, msz)

    # 3x3 weights folded so all 9 taps land in the MXU contraction dimension.
    w1f = params["w1"].reshape(9 * Cin, Cout).astype(mxu_dtype)
    w2f = params["w2"].reshape(9 * Cout, Cout).astype(mxu_dtype)

    act_spec = pl.BlockSpec((tn, Ho, Wo, Cout), lambda n: (n, 0, 0, 0))
    stat_spec = pl.BlockSpec((1, 2, Cout), lambda n: (n, 0, 0))
    vec_spec = pl.BlockSpec((1, Cout), lambda n: (0, 0))

    # ---- pass 1: conv1 (stride) [+ 1x1 projection conv] + partial stats ----
    inputs1 = [x, w1f]
    in_specs1 = [pl.BlockSpec((tn, H, W, Cin), lambda n: (n, 0, 0, 0)),
                 pl.BlockSpec((9 * Cin, Cout), lambda n: (0, 0))]
    out_shape1 = [jax.ShapeDtypeStruct((N, Ho, Wo, Cout), act_dtype),
                  jax.ShapeDtypeStruct((ngrid, 2, Cout), f32)]
    out_specs1 = [act_spec, stat_spec]
    if has_proj:
        inputs1.append(params["ws"].astype(mxu_dtype))
        in_specs1.append(pl.BlockSpec((Cin, Cout), lambda n: (0, 0)))
        out_shape1 += [jax.ShapeDtypeStruct((N, Ho, Wo, Cout), act_dtype),
                       jax.ShapeDtypeStruct((ngrid, 2, Cout), f32)]
        out_specs1 += [act_spec, stat_spec]
    scratch1 = [pltpu.VMEM((tn, H + 2, W + 2, Cin), mxu_dtype)]
    if fold1:
        scratch1.append(pltpu.VMEM((tn, rc1, Wo, 9 * Cin), mxu_dtype))

    step1 = (2 * _nbytes((tn, H, W, Cin), f32)
             + 2 * _nbytes((9 * Cin, Cout), mxu_dtype)
             + (2 * _nbytes((Cin, Cout), mxu_dtype) if has_proj else 0)
             + 2 * (2 if has_proj else 1) * _nbytes((tn, Ho, Wo, Cout), act_dtype)
             + 4 * _nbytes((1, 2, Cout), f32)
             + _nbytes((tn, H + 2, W + 2, Cin), mxu_dtype)
             + (_nbytes((tn, rc1, Wo, 9 * Cin), mxu_dtype) if fold1 else 0))
    flops1 = 2 * nhw * 9 * Cin * Cout + (2 * nhw * Cin * Cout if has_proj else 0)
    hbm1 = (_nbytes((N, H, W, Cin), f32) + _nbytes((9 * Cin, Cout), mxu_dtype)
            + (2 if has_proj else 1) * _nbytes((N, Ho, Wo, Cout), act_dtype))

    res1 = pl.pallas_call(
        functools.partial(_pass1_kernel, stride=stride, rc=rc1,
                          has_proj=has_proj, fold=fold1),
        grid=(ngrid,),
        in_specs=in_specs1,
        out_specs=tuple(out_specs1),
        out_shape=tuple(out_shape1),
        scratch_shapes=scratch1,
        compiler_params=_compiler_params(step1),
        cost_estimate=pl.CostEstimate(flops=flops1, transcendentals=0,
                                      bytes_accessed=hbm1),
    )(*inputs1)
    if has_proj:
        y1_raw, ps1, sc_raw, pss = res1
    else:
        y1_raw, ps1 = res1
        sc_raw = pss = None

    a1, c1 = _finalize_bn(ps1, params["g1"], params["b1"], nhw)

    # ---- pass 2: BN1+ReLU -> conv2 + partial stats --------------------------
    scratch2 = [pltpu.VMEM((tn, Ho + 2, Wo + 2, Cout), mxu_dtype)]
    if fold2:
        scratch2.append(pltpu.VMEM((tn, rc2, Wo, 9 * Cout), mxu_dtype))
    step2 = (4 * _nbytes((tn, Ho, Wo, Cout), act_dtype)
             + 2 * _nbytes((9 * Cout, Cout), mxu_dtype)
             + 4 * _nbytes((1, Cout), f32)
             + 4 * _nbytes((1, 2, Cout), f32)
             + _nbytes((tn, Ho + 2, Wo + 2, Cout), mxu_dtype)
             + (_nbytes((tn, rc2, Wo, 9 * Cout), mxu_dtype) if fold2 else 0))
    flops2 = 2 * nhw * 9 * Cout * Cout
    hbm2 = (2 * _nbytes((N, Ho, Wo, Cout), act_dtype)
            + _nbytes((9 * Cout, Cout), mxu_dtype))

    y2_raw, ps2 = pl.pallas_call(
        functools.partial(_pass2_kernel, rc=rc2, fold=fold2),
        grid=(ngrid,),
        in_specs=[act_spec, vec_spec, vec_spec,
                  pl.BlockSpec((9 * Cout, Cout), lambda n: (0, 0))],
        out_specs=(act_spec, stat_spec),
        out_shape=(jax.ShapeDtypeStruct((N, Ho, Wo, Cout), act_dtype),
                   jax.ShapeDtypeStruct((ngrid, 2, Cout), f32)),
        scratch_shapes=scratch2,
        compiler_params=_compiler_params(step2),
        cost_estimate=pl.CostEstimate(flops=flops2, transcendentals=0,
                                      bytes_accessed=hbm2),
    )(y1_raw, a1, c1, w2f)

    a2, c2 = _finalize_bn(ps2, params["g2"], params["b2"], nhw)

    # ---- pass 3: BN2 [+ BN_s] + residual add + ReLU (lane-dense layout) -----
    lane = Wo * Cout
    y2_flat = y2_raw.reshape(N, Ho, lane)          # free: contiguous in HBM
    if has_proj:
        a_s, c_s = _finalize_bn(pss, params["gs"], params["bs"], nhw)
        sc_flat = sc_raw.reshape(N, Ho, lane)
        inputs3 = [y2_flat, sc_flat,
                   jnp.tile(a2, (1, Wo)), jnp.tile(c2, (1, Wo)),
                   jnp.tile(a_s, (1, Wo)), jnp.tile(c_s, (1, Wo))]
    else:
        sc_flat = x.reshape(N, Ho, lane)           # identity shortcut: x itself
        inputs3 = [y2_flat, sc_flat,
                   jnp.tile(a2, (1, Wo)), jnp.tile(c2, (1, Wo))]
    flat_spec = pl.BlockSpec((tn, Ho, lane), lambda n: (n, 0, 0))
    flat_vec = pl.BlockSpec((1, lane), lambda n: (0, 0))
    in_specs3 = [flat_spec, flat_spec] + [flat_vec] * (len(inputs3) - 2)

    step3 = (2 * (_nbytes((tn, Ho, lane), act_dtype)
                  + _nbytes((tn, Ho, lane), sc_flat.dtype)
                  + _nbytes((tn, Ho, lane), f32))
             + 8 * _nbytes((1, lane), f32))
    hbm3 = (_nbytes((N, Ho, lane), act_dtype)
            + _nbytes((N, Ho, lane), sc_flat.dtype)
            + _nbytes((N, Ho, lane), f32))

    out_flat = pl.pallas_call(
        functools.partial(_pass3_kernel, has_proj=has_proj),
        grid=(ngrid,),
        in_specs=in_specs3,
        out_specs=flat_spec,
        out_shape=jax.ShapeDtypeStruct((N, Ho, lane), f32),
        compiler_params=_compiler_params(step3),
        cost_estimate=pl.CostEstimate(flops=6 * nhw * Cout, transcendentals=0,
                                      bytes_accessed=hbm3),
    )(*inputs3)

    out_nhwc = out_flat.reshape(N, Ho, Wo, Cout)
    return jnp.transpose(out_nhwc, (0, 3, 1, 2))                     # NCHW


# ---------------------------------------------------------------------------
# Pure-JAX reference (same math) for correctness checking
# ---------------------------------------------------------------------------
def reference_forward(x_nchw, params, stride):
    x = jnp.transpose(x_nchw, (0, 2, 3, 1)).astype(jnp.float32)
    Cin = x.shape[-1]
    Cout = params["w1"].shape[-1]
    has_proj = (stride != 1) or (Cin != Cout)

    def conv(v, w, s, pad):
        return jax.lax.conv_general_dilated(
            v, w, window_strides=(s, s), padding=pad,
            dimension_numbers=("NHWC", "HWIO", "NHWC"))

    def bn(y, g, b):
        m = jnp.mean(y, axis=(0, 1, 2), keepdims=True)
        v = jnp.var(y, axis=(0, 1, 2), keepdims=True)
        return (y - m) * jax.lax.rsqrt(v + EPS) * g.reshape(1, 1, 1, -1) \
            + b.reshape(1, 1, 1, -1)

    y = conv(x, params["w1"], stride, ((1, 1), (1, 1)))
    y = jnp.maximum(bn(y, params["g1"], params["b1"]), 0.0)
    y = conv(y, params["w2"], 1, ((1, 1), (1, 1)))
    y = bn(y, params["g2"], params["b2"])
    if has_proj:
        sc = conv(x, params["ws"].reshape(1, 1, Cin, Cout), stride,
                  ((0, 0), (0, 0)))
        sc = bn(sc, params["gs"], params["bs"])
    else:
        sc = x[:, ::stride, ::stride, :]
    out = jnp.maximum(y + sc, 0.0)
    return jnp.transpose(out, (0, 3, 1, 2))


def _make_params(key, cin, cout, has_proj):
    k = jax.random.split(key, 9)
    params = {
        # conv weights in HWIO layout (kh, kw, Cin, Cout)
        "w1": 0.1 * jax.random.normal(k[0], (3, 3, cin, cout), jnp.float32),
        "g1": 1.0 + 0.1 * jax.random.normal(k[1], (cout,), jnp.float32),
        "b1": 0.1 * jax.random.normal(k[2], (cout,), jnp.float32),
        "w2": 0.1 * jax.random.normal(k[3], (3, 3, cout, cout), jnp.float32),
        "g2": 1.0 + 0.1 * jax.random.normal(k[4], (cout,), jnp.float32),
        "b2": 0.1 * jax.random.normal(k[5], (cout,), jnp.float32),
    }
    if has_proj:
        params.update({
            # 1x1 projection conv as a (Cin, Cout) matmul weight
            "ws": 0.1 * jax.random.normal(k[6], (cin, cout), jnp.float32),
            "gs": 1.0 + 0.1 * jax.random.normal(k[7], (cout,), jnp.float32),
            "bs": 0.1 * jax.random.normal(k[8], (cout,), jnp.float32),
        })
    return params


if __name__ == "__main__":
    key = jax.random.PRNGKey(0)
    kp, kx, kp2, kx2 = jax.random.split(key, 4)

    # Case 1: projection shortcut (Cin != Cout), stride 1, full f32 path.
    N, inC, outC, H, W = 2, 4, 8, 16, 16
    params = _make_params(kp, inC, outC, has_proj=True)
    x = jax.random.normal(kx, (N, inC, H, W), jnp.float32)          # NCHW
    ref = reference_forward(x, params, 1)

    out = jax.block_until_ready(
        residual_block_forward(x, params, 1, mxu_dtype=jnp.float32,
                               act_dtype=jnp.float32))
    assert out.shape == (N, outC, H, W), out.shape
    err = float(jnp.max(jnp.abs(out - ref)))
    assert err < 1e-3, f"projection path (f32): max abs err {err}"

    # Case 2: identity shortcut (Cin == Cout, stride 1), full f32 path.
    params_id = _make_params(kp2, outC, outC, has_proj=False)
    x_id = jax.random.normal(kx2, (N, outC, H, W), jnp.float32)
    out_id = jax.block_until_ready(
        residual_block_forward(x_id, params_id, 1, mxu_dtype=jnp.float32,
                               act_dtype=jnp.float32))
    ref_id = reference_forward(x_id, params_id, 1)
    err_id = float(jnp.max(jnp.abs(out_id - ref_id)))
    assert err_id < 1e-3, f"identity path (f32): max abs err {err_id}"

    # Case 3: stride-2 downsampling block on the default bf16 fast path
    # (bf16 MXU inputs + bf16 inter-pass intermediates; BN math stays f32).
    out_s2 = jax.block_until_ready(residual_block_forward(x, params, 2))
    ref_s2 = reference_forward(x, params, 2)
    assert out_s2.shape == (N, outC, H // 2, W // 2), out_s2.shape
    err_s2 = float(jnp.max(jnp.abs(out_s2 - ref_s2)))
    assert err_s2 < 2e-1, f"stride-2 bf16 path: max abs err {err_s2}"

    # Case 4: force the no-fold (per-tap accumulating matmul) branch used for
    # large-channel layers, f32 for a tight check.
    out_nf = jax.block_until_ready(
        residual_block_forward(x, params, 1, mxu_dtype=jnp.float32,
                               act_dtype=jnp.float32, fold_threshold=1))
    err_nf = float(jnp.max(jnp.abs(out_nf - ref)))
    assert err_nf < 1e-3, f"no-fold path (f32): max abs err {err_nf}"

    print("KERNEL_OK")
</pallas_src>

<mosaic_0001>
module attributes {stable_mosaic.version = 11 : i64} {
  func.func @_pass1_kernel(%arg0: i32, %arg1: memref<1x16x16x4xf32, #tpu.memory_space<vmem>>, %arg2: memref<36x8xf32, #tpu.memory_space<vmem>>, %arg3: memref<4x8xf32, #tpu.memory_space<vmem>>, %arg4: memref<1x16x16x8xf32, #tpu.memory_space<vmem>>, %arg5: memref<1x2x8xf32, #tpu.memory_space<vmem>>, %arg6: memref<1x16x16x8xf32, #tpu.memory_space<vmem>>, %arg7: memref<1x2x8xf32, #tpu.memory_space<vmem>>, %arg8: memref<1x18x18x4xf32, #tpu.memory_space<vmem>>, %arg9: memref<1x16x16x36xf32, #tpu.memory_space<vmem>>) attributes {dimension_semantics = [#tpu.dimension_semantics<parallel>], iteration_bounds = array<i64: 2>, scalar_prefetch = 0 : i64, scratch_operands = 2 : i64, tpu.core_type = #tpu.core_type<tc>, window_params = [{transform_indices = @transform_0, window_bounds = array<i64: 1, 16, 16, 4>}, {pipeline_mode = #tpu.pipeline_mode<synchronous>, transform_indices = @transform_1, window_bounds = array<i64: 36, 8>}, {pipeline_mode = #tpu.pipeline_mode<synchronous>, transform_indices = @transform_2, window_bounds = array<i64: 4, 8>}, {transform_indices = @transform_3, window_bounds = array<i64: 1, 16, 16, 8>}, {transform_indices = @transform_4, window_bounds = array<i64: 1, 2, 8>}, {transform_indices = @transform_5, window_bounds = array<i64: 1, 16, 16, 8>}, {transform_indices = @transform_6, window_bounds = array<i64: 1, 2, 8>}]} {
    %cst = arith.constant 0.000000e+00 : f32
    %0 = vector.broadcast %cst : f32 to vector<1x1x18x4xf32>
    %c0 = arith.constant 0 : index
    %c0_0 = arith.constant 0 : index
    %c0_1 = arith.constant 0 : index
    %c0_2 = arith.constant 0 : index
    %1 = vector.load %arg8[%c0, %c0_0, %c0_1, %c0_2] : memref<1x18x18x4xf32, #tpu.memory_space<vmem>>, vector<1x1x18x4xf32>
    tpu.vector_store %arg8[%c0, %c0_0, %c0_1, %c0_2], %0 {strides = array<i32>} : memref<1x18x18x4xf32, #tpu.memory_space<vmem>>, vector<1x1x18x4xf32>,
    %cst_3 = arith.constant 0.000000e+00 : f32
    %2 = vector.broadcast %cst_3 : f32 to vector<1x1x18x4xf32>
    %c0_4 = arith.constant 0 : index
    %c17 = arith.constant 17 : index
    %c0_5 = arith.constant 0 : index
    %c0_6 = arith.constant 0 : index
    %3 = vector.load %arg8[%c0_4, %c17, %c0_5, %c0_6] : memref<1x18x18x4xf32, #tpu.memory_space<vmem>>, vector<1x1x18x4xf32>
    tpu.vector_store %arg8[%c0_4, %c17, %c0_5, %c0_6], %2 {strides = array<i32>} : memref<1x18x18x4xf32, #tpu.memory_space<vmem>>, vector<1x1x18x4xf32>,
    %cst_7 = arith.constant 0.000000e+00 : f32
    %4 = vector.broadcast %cst_7 : f32 to vector<1x18x1x4xf32>
    %c0_8 = arith.constant 0 : index
    %c0_9 = arith.constant 0 : index
    %c0_10 = arith.constant 0 : index
    %c0_11 = arith.constant 0 : index
    %5 = vector.load %arg8[%c0_8, %c0_9, %c0_10, %c0_11] : memref<1x18x18x4xf32, #tpu.memory_space<vmem>>, vector<1x18x1x4xf32>
    tpu.vector_store %arg8[%c0_8, %c0_9, %c0_10, %c0_11], %4 {strides = array<i32>} : memref<1x18x18x4xf32, #tpu.memory_space<vmem>>, vector<1x18x1x4xf32>,
    %cst_12 = arith.constant 0.000000e+00 : f32
    %6 = vector.broadcast %cst_12 : f32 to vector<1x18x1x4xf32>
    %c0_13 = arith.constant 0 : index
    %c0_14 = arith.constant 0 : index
    %c17_15 = arith.constant 17 : index
    %c0_16 = arith.constant 0 : index
    %7 = vector.load %arg8[%c0_13, %c0_14, %c17_15, %c0_16] : memref<1x18x18x4xf32, #tpu.memory_space<vmem>>, vector<1x18x1x4xf32>
    tpu.vector_store %arg8[%c0_13, %c0_14, %c17_15, %c0_16], %6 {strides = array<i32>} : memref<1x18x18x4xf32, #tpu.memory_space<vmem>>, vector<1x18x1x4xf32>,
    %c0_17 = arith.constant 0 : index
    %c0_18 = arith.constant 0 : index
    %c0_19 = arith.constant 0 : index
    %c0_20 = arith.constant 0 : index
    %8 = vector.load %arg1[%c0_17, %c0_18, %c0_19, %c0_20] : memref<1x16x16x4xf32, #tpu.memory_space<vmem>>, vector<1x16x16x4xf32>
    %c0_21 = arith.constant 0 : index
    %c1 = arith.constant 1 : index
    %c1_22 = arith.constant 1 : index
    %c0_23 = arith.constant 0 : index
    %9 = vector.load %arg8[%c0_21, %c1, %c1_22, %c0_23] : memref<1x18x18x4xf32, #tpu.memory_space<vmem>>, vector<1x16x16x4xf32>
    tpu.vector_store %arg8[%c0_21, %c1, %c1_22, %c0_23], %8 {strides = array<i32>} : memref<1x18x18x4xf32, #tpu.memory_space<vmem>>, vector<1x16x16x4xf32>,
    %cst_24 = arith.constant 0.000000e+00 : f32
    %10 = vector.broadcast %cst_24 : f32 to vector<1x8xf32>
    %c0_i32 = arith.constant 0 : i32
    %c16_i32 = arith.constant 16 : i32
    %11 = arith.muli %c0_i32, %c16_i32 : i32
    %12 = tpu.assume_multiple %11, 16 : i32
    %c0_i32_25 = arith.constant 0 : i32
    %13 = arith.addi %12, %c0_i32_25 : i32
    %c0_26 = arith.constant 0 : index
    %14 = arith.index_cast %13 : i32 to index
    %c0_27 = arith.constant 0 : index
    %c0_28 = arith.constant 0 : index
    %15 = vector.load %arg8[%c0_26, %14, %c0_27, %c0_28] : memref<1x18x18x4xf32, #tpu.memory_space<vmem>>, vector<1x16x16x4xf32>
    %c0_29 = arith.constant 0 : index
    %c0_30 = arith.constant 0 : index
    %c0_31 = arith.constant 0 : index
    %c0_32 = arith.constant 0 : index
    %16 = vector.load %arg9[%c0_29, %c0_30, %c0_31, %c0_32] : memref<1x16x16x36xf32, #tpu.memory_space<vmem>>, vector<1x16x16x4xf32>
    tpu.vector_store %arg9[%c0_29, %c0_30, %c0_31, %c0_32], %15 {strides = array<i32>} : memref<1x16x16x36xf32, #tpu.memory_space<vmem>>, vector<1x16x16x4xf32>,
    %c0_i32_33 = arith.constant 0 : i32
    %17 = arith.addi %12, %c0_i32_33 : i32
    %c0_34 = arith.constant 0 : index
    %18 = arith.index_cast %17 : i32 to index
    %c1_35 = arith.constant 1 : index
    %c0_36 = arith.constant 0 : index
    %19 = vector.load %arg8[%c0_34, %18, %c1_35, %c0_36] : memref<1x18x18x4xf32, #tpu.memory_space<vmem>>, vector<1x16x16x4xf32>
    %c0_37 = arith.constant 0 : index
    %c0_38 = arith.constant 0 : index
    %c0_39 = arith.constant 0 : index
    %c4 = arith.constant 4 : index
    %20 = vector.load %arg9[%c0_37, %c0_38, %c0_39, %c4] : memref<1x16x16x36xf32, #tpu.memory_space<vmem>>, vector<1x16x16x4xf32>
    tpu.vector_store %arg9[%c0_37, %c0_38, %c0_39, %c4], %19 {strides = array<i32>} : memref<1x16x16x36xf32, #tpu.memory_space<vmem>>, vector<1x16x16x4xf32>,
    %c0_i32_40 = arith.constant 0 : i32
    %21 = arith.addi %12, %c0_i32_40 : i32
    %c0_41 = arith.constant 0 : index
    %22 = arith.index_cast %21 : i32 to index
    %c2 = arith.constant 2 : index
    %c0_42 = arith.constant 0 : index
    %23 = vector.load %arg8[%c0_41, %22, %c2, %c0_42] : memref<1x18x18x4xf32, #tpu.memory_space<vmem>>, vector<1x16x16x4xf32>
    %c0_43 = arith.constant 0 : index
    %c0_44 = arith.constant 0 : index
    %c0_45 = arith.constant 0 : index
    %c8 = arith.constant 8 : index
    %24 = vector.load %arg9[%c0_43, %c0_44, %c0_45, %c8] : memref<1x16x16x36xf32, #tpu.memory_space<vmem>>, vector<1x16x16x4xf32>
    tpu.vector_store %arg9[%c0_43, %c0_44, %c0_45, %c8], %23 {strides = array<i32>} : memref<1x16x16x36xf32, #tpu.memory_space<vmem>>, vector<1x16x16x4xf32>,
    %c1_i32 = arith.constant 1 : i32
    %25 = arith.addi %12, %c1_i32 : i32
    %c0_46 = arith.constant 0 : index
    %26 = arith.index_cast %25 : i32 to index
    %c0_47 = arith.constant 0 : index
    %c0_48 = arith.constant 0 : index
    %27 = vector.load %arg8[%c0_46, %26, %c0_47, %c0_48] : memref<1x18x18x4xf32, #tpu.memory_space<vmem>>, vector<1x16x16x4xf32>
    %c0_49 = arith.constant 0 : index
    %c0_50 = arith.constant 0 : index
    %c0_51 = arith.constant 0 : index
    %c12 = arith.constant 12 : index
    %28 = vector.load %arg9[%c0_49, %c0_50, %c0_51, %c12] : memref<1x16x16x36xf32, #tpu.memory_space<vmem>>, vector<1x16x16x4xf32>
    tpu.vector_store %arg9[%c0_49, %c0_50, %c0_51, %c12], %27 {strides = array<i32>} : memref<1x16x16x36xf32, #tpu.memory_space<vmem>>, vector<1x16x16x4xf32>,
    %c1_i32_52 = arith.constant 1 : i32
    %29 = arith.addi %12, %c1_i32_52 : i32
    %c0_53 = arith.constant 0 : index
    %30 = arith.index_cast %29 : i32 to index
    %c1_54 = arith.constant 1 : index
    %c0_55 = arith.constant 0 : index
    %31 = vector.load %arg8[%c0_53, %30, %c1_54, %c0_55] : memref<1x18x18x4xf32, #tpu.memory_space<vmem>>, vector<1x16x16x4xf32>
    %32 = vector.shape_cast %31 : vector<1x16x16x4xf32> to vector<256x4xf32>
    %c0_56 = arith.constant 0 : index
    %c0_57 = arith.constant 0 : index
    %c0_58 = arith.constant 0 : index
    %c16 = arith.constant 16 : index
    %33 = vector.load %arg9[%c0_56, %c0_57, %c0_58, %c16] : memref<1x16x16x36xf32, #tpu.memory_space<vmem>>, vector<1x16x16x4xf32>
    tpu.vector_store %arg9[%c0_56, %c0_57, %c0_58, %c16], %31 {strides = array<i32>} : memref<1x16x16x36xf32, #tpu.memory_space<vmem>>, vector<1x16x16x4xf32>,
    %c1_i32_59 = arith.constant 1 : i32
    %34 = arith.addi %12, %c1_i32_59 : i32
    %c0_60 = arith.constant 0 : index
    %35 = arith.index_cast %34 : i32 to index
    %c2_61 = arith.constant 2 : index
    %c0_62 = arith.constant 0 : index
    %36 = vector.load %arg8[%c0_60, %35, %c2_61, %c0_62] : memref<1x18x18x4xf32, #tpu.memory_space<vmem>>, vector<1x16x16x4xf32>
    %c0_63 = arith.constant 0 : index
    %c0_64 = arith.constant 0 : index
    %c0_65 = arith.constant 0 : index
    %c20 = arith.constant 20 : index
    %37 = vector.load %arg9[%c0_63, %c0_64, %c0_65, %c20] : memref<1x16x16x36xf32, #tpu.memory_space<vmem>>, vector<1x16x16x4xf32>
    tpu.vector_store %arg9[%c0_63, %c0_64, %c0_65, %c20], %36 {strides = array<i32>} : memref<1x16x16x36xf32, #tpu.memory_space<vmem>>, vector<1x16x16x4xf32>,
    %c2_i32 = arith.constant 2 : i32
    %38 = arith.addi %12, %c2_i32 : i32
    %c0_66 = arith.constant 0 : index
    %39 = arith.index_cast %38 : i32 to index
    %c0_67 = arith.constant 0 : index
    %c0_68 = arith.constant 0 : index
    %40 = vector.load %arg8[%c0_66, %39, %c0_67, %c0_68] : memref<1x18x18x4xf32, #tpu.memory_space<vmem>>, vector<1x16x16x4xf32>
    %c0_69 = arith.constant 0 : index
    %c0_70 = arith.constant 0 : index
    %c0_71 = arith.constant 0 : index
    %c24 = arith.constant 24 : index
    %41 = vector.load %arg9[%c0_69, %c0_70, %c0_71, %c24] : memref<1x16x16x36xf32, #tpu.memory_space<vmem>>, vector<1x16x16x4xf32>
    tpu.vector_store %arg9[%c0_69, %c0_70, %c0_71, %c24], %40 {strides = array<i32>} : memref<1x16x16x36xf32, #tpu.memory_space<vmem>>, vector<1x16x16x4xf32>,
    %c2_i32_72 = arith.constant 2 : i32
    %42 = arith.addi %12, %c2_i32_72 : i32
    %c0_73 = arith.constant 0 : index
    %43 = arith.index_cast %42 : i32 to index
    %c1_74 = arith.constant 1 : index
    %c0_75 = arith.constant 0 : index
    %44 = vector.load %arg8[%c0_73, %43, %c1_74, %c0_75] : memref<1x18x18x4xf32, #tpu.memory_space<vmem>>, vector<1x16x16x4xf32>
    %c0_76 = arith.constant 0 : index
    %c0_77 = arith.constant 0 : index
    %c0_78 = arith.constant 0 : index
    %c28 = arith.constant 28 : index
    %45 = vector.load %arg9[%c0_76, %c0_77, %c0_78, %c28] : memref<1x16x16x36xf32, #tpu.memory_space<vmem>>, vector<1x16x16x4xf32>
    tpu.vector_store %arg9[%c0_76, %c0_77, %c0_78, %c28], %44 {strides = array<i32>} : memref<1x16x16x36xf32, #tpu.memory_space<vmem>>, vector<1x16x16x4xf32>,
    %c2_i32_79 = arith.constant 2 : i32
    %46 = arith.addi %12, %c2_i32_79 : i32
    %c0_80 = arith.constant 0 : index
    %47 = arith.index_cast %46 : i32 to index
    %c2_81 = arith.constant 2 : index
    %c0_82 = arith.constant 0 : index
    %48 = vector.load %arg8[%c0_80, %47, %c2_81, %c0_82] : memref<1x18x18x4xf32, #tpu.memory_space<vmem>>, vector<1x16x16x4xf32>
    %c0_83 = arith.constant 0 : index
    %c0_84 = arith.constant 0 : index
    %c0_85 = arith.constant 0 : index
    %c32 = arith.constant 32 : index
    %49 = vector.load %arg9[%c0_83, %c0_84, %c0_85, %c32] : memref<1x16x16x36xf32, #tpu.memory_space<vmem>>, vector<1x16x16x4xf32>
    tpu.vector_store %arg9[%c0_83, %c0_84, %c0_85, %c32], %48 {strides = array<i32>} : memref<1x16x16x36xf32, #tpu.memory_space<vmem>>, vector<1x16x16x4xf32>,
    %c0_86 = arith.constant 0 : index
    %c0_87 = arith.constant 0 : index
    %c0_88 = arith.constant 0 : index
    %c0_89 = arith.constant 0 : index
    %50 = vector.load %arg9[%c0_86, %c0_87, %c0_88, %c0_89] : memref<1x16x16x36xf32, #tpu.memory_space<vmem>>, vector<1x16x16x36xf32>
    %51 = vector.shape_cast %50 : vector<1x16x16x36xf32> to vector<256x36xf32>
    %c0_90 = arith.constant 0 : index
    %c0_91 = arith.constant 0 : index
    %52 = vector.load %arg2[%c0_90, %c0_91] : memref<36x8xf32, #tpu.memory_space<vmem>>, vector<36x8xf32>
    %cst_92 = arith.constant dense<0.000000e+00> : vector<256x8xf32>
    %53 = tpu.matmul %51, %52, %cst_92 {dimension_numbers = #tpu.dot_dimension_numbers<[1], [0], [0], [1], [0, 0, 1, 1], [], []>} : vector<256x36xf32>, vector<36x8xf32>, vector<256x8xf32> -> vector<256x8xf32>
    %cst_93 = arith.constant dense<0.000000e+00> : vector<8xf32>
    %54 = vector.multi_reduction <add>, %53, %cst_93 [0] : vector<256x8xf32> to vector<8xf32>
    %55 = vector.shape_cast %54 : vector<8xf32> to vector<1x8xf32>
    %56 = arith.addf %10, %55 : vector<1x8xf32>
    %57 = arith.mulf %53, %53 : vector<256x8xf32>
    %cst_94 = arith.constant dense<0.000000e+00> : vector<8xf32>
    %58 = vector.multi_reduction <add>, %57, %cst_94 [0] : vector<256x8xf32> to vector<8xf32>
    %59 = vector.shape_cast %58 : vector<8xf32> to vector<1x8xf32>
    %60 = arith.addf %10, %59 : vector<1x8xf32>
    %61 = vector.shape_cast %53 : vector<256x8xf32> to vector<1x16x16x8xf32>
    %c0_95 = arith.constant 0 : index
    %62 = arith.index_cast %12 : i32 to index
    %c0_96 = arith.constant 0 : index
    %c0_97 = arith.constant 0 : index
    %63 = vector.load %arg4[%c0_95, %62, %c0_96, %c0_97] : memref<1x16x16x8xf32, #tpu.memory_space<vmem>>, vector<1x16x16x8xf32>
    tpu.vector_store %arg4[%c0_95, %62, %c0_96, %c0_97], %61 {strides = array<i32>} : memref<1x16x16x8xf32, #tpu.memory_space<vmem>>, vector<1x16x16x8xf32>,
    %c0_98 = arith.constant 0 : index
    %c0_99 = arith.constant 0 : index
    %64 = vector.load %arg3[%c0_98, %c0_99] : memref<4x8xf32, #tpu.memory_space<vmem>>, vector<4x8xf32>
    %cst_100 = arith.constant dense<0.000000e+00> : vector<256x8xf32>
    %65 = tpu.matmul %32, %64, %cst_100 {dimension_numbers = #tpu.dot_dimension_numbers<[1], [0], [0], [1], [0, 0, 1, 1], [], []>} : vector<256x4xf32>, vector<4x8xf32>, vector<256x8xf32> -> vector<256x8xf32>
    %cst_101 = arith.constant dense<0.000000e+00> : vector<8xf32>
    %66 = vector.multi_reduction <add>, %65, %cst_101 [0] : vector<256x8xf32> to vector<8xf32>
    %67 = vector.shape_cast %66 : vector<8xf32> to vector<1x8xf32>
    %68 = arith.addf %10, %67 : vector<1x8xf32>
    %69 = arith.mulf %65, %65 : vector<256x8xf32>
    %cst_102 = arith.constant dense<0.000000e+00> : vector<8xf32>
    %70 = vector.multi_reduction <add>, %69, %cst_102 [0] : vector<256x8xf32> to vector<8xf32>
    %71 = vector.shape_cast %70 : vector<8xf32> to vector<1x8xf32>
    %72 = arith.addf %10, %71 : vector<1x8xf32>
    %73 = vector.shape_cast %65 : vector<256x8xf32> to vector<1x16x16x8xf32>
    %c0_103 = arith.constant 0 : index
    %74 = arith.index_cast %12 : i32 to index
    %c0_104 = arith.constant 0 : index
    %c0_105 = arith.constant 0 : index
    %75 = vector.load %arg6[%c0_103, %74, %c0_104, %c0_105] : memref<1x16x16x8xf32, #tpu.memory_space<vmem>>, vector<1x16x16x8xf32>
    tpu.vector_store %arg6[%c0_103, %74, %c0_104, %c0_105], %73 {strides = array<i32>} : memref<1x16x16x8xf32, #tpu.memory_space<vmem>>, vector<1x16x16x8xf32>,
    %c1_i32_106 = arith.constant 1 : i32
    %76 = vector.shape_cast %56 : vector<1x8xf32> to vector<1x1x8xf32>
    %c0_107 = arith.constant 0 : index
    %c0_108 = arith.constant 0 : index
    %c0_109 = arith.constant 0 : index
    %77 = vector.load %arg5[%c0_107, %c0_108, %c0_109] : memref<1x2x8xf32, #tpu.memory_space<vmem>>, vector<1x1x8xf32>
    tpu.vector_store %arg5[%c0_107, %c0_108, %c0_109], %76 {strides = array<i32>} : memref<1x2x8xf32, #tpu.memory_space<vmem>>, vector<1x1x8xf32>,
    %78 = vector.shape_cast %60 : vector<1x8xf32> to vector<1x1x8xf32>
    %c0_110 = arith.constant 0 : index
    %c1_111 = arith.constant 1 : index
    %c0_112 = arith.constant 0 : index
    %79 = vector.load %arg5[%c0_110, %c1_111, %c0_112] : memref<1x2x8xf32, #tpu.memory_space<vmem>>, vector<1x1x8xf32>
    tpu.vector_store %arg5[%c0_110, %c1_111, %c0_112], %78 {strides = array<i32>} : memref<1x2x8xf32, #tpu.memory_space<vmem>>, vector<1x1x8xf32>,
    %80 = vector.shape_cast %68 : vector<1x8xf32> to vector<1x1x8xf32>
    %c0_113 = arith.constant 0 : index
    %c0_114 = arith.constant 0 : index
    %c0_115 = arith.constant 0 : index
    %81 = vector.load %arg7[%c0_113, %c0_114, %c0_115] : memref<1x2x8xf32, #tpu.memory_space<vmem>>, vector<1x1x8xf32>
    tpu.vector_store %arg7[%c0_113, %c0_114, %c0_115], %80 {strides = array<i32>} : memref<1x2x8xf32, #tpu.memory_space<vmem>>, vector<1x1x8xf32>,
    %82 = vector.shape_cast %72 : vector<1x8xf32> to vector<1x1x8xf32>
    %c0_116 = arith.constant 0 : index
    %c1_117 = arith.constant 1 : index
    %c0_118 = arith.constant 0 : index
    %83 = vector.load %arg7[%c0_116, %c1_117, %c0_118] : memref<1x2x8xf32, #tpu.memory_space<vmem>>, vector<1x1x8xf32>
    tpu.vector_store %arg7[%c0_116, %c1_117, %c0_118], %82 {strides = array<i32>} : memref<1x2x8xf32, #tpu.memory_space<vmem>>, vector<1x1x8xf32>,
    return
  }
  func.func @transform_0(%arg0: i32) -> (i32, i32, i32, i32) {
    %c0_i32 = arith.constant 0 : i32
    %c0_i32_0 = arith.constant 0 : i32
    %c0_i32_1 = arith.constant 0 : i32
    %c0_i32_2 = arith.constant 0 : i32
    return %arg0, %c0_i32, %c0_i32_0, %c0_i32_1 : i32, i32, i32, i32
  }
  func.func @transform_1(%arg0: i32) -> (i32, i32) {
    %c0_i32 = arith.constant 0 : i32
    %c0_i32_0 = arith.constant 0 : i32
    %c0_i32_1 = arith.constant 0 : i32
    return %c0_i32, %c0_i32_0 : i32, i32
  }
  func.func @transform_2(%arg0: i32) -> (i32, i32) {
    %c0_i32 = arith.constant 0 : i32
    %c0_i32_0 = arith.constant 0 : i32
    %c0_i32_1 = arith.constant 0 : i32
    return %c0_i32, %c0_i32_0 : i32, i32
  }
  func.func @transform_3(%arg0: i32) -> (i32, i32, i32, i32) {
    %c0_i32 = arith.constant 0 : i32
    %c0_i32_0 = arith.constant 0 : i32
    %c0_i32_1 = arith.constant 0 : i32
    %c0_i32_2 = arith.constant 0 : i32
    return %arg0, %c0_i32, %c0_i32_0, %c0_i32_1 : i32, i32, i32, i32
  }
  func.func @transform_4(%arg0: i32) -> (i32, i32, i32) {
    %c0_i32 = arith.constant 0 : i32
    %c0_i32_0 = arith.constant 0 : i32
    %c0_i32_1 = arith.constant 0 : i32
    return %arg0, %c0_i32, %c0_i32_0 : i32, i32, i32
  }
  func.func @transform_5(%arg0: i32) -> (i32, i32, i32, i32) {
    %c0_i32 = arith.constant 0 : i32
    %c0_i32_0 = arith.constant 0 : i32
    %c0_i32_1 = arith.constant 0 : i32
    %c0_i32_2 = arith.constant 0 : i32
    return %arg0, %c0_i32, %c0_i32_0, %c0_i32_1 : i32, i32, i32, i32
  }
  func.func @transform_6(%arg0: i32) -> (i32, i32, i32) {
    %c0_i32 = arith.constant 0 : i32
    %c0_i32_0 = arith.constant 0 : i32
    %c0_i32_1 = arith.constant 0 : i32
    return %arg0, %c0_i32, %c0_i32_0 : i32, i32, i32
  }
}

</mosaic_0001>

<bundles_post_ra>
// kernel: tpu_custom_call.1
= control target key start
LH: loop header
LB: loop body
LE: loop exit
PB: predicated region body
PF: predicated region fallthrough
CT: control target
= control target key end

     0   :  { %s5040_s0 = inlined_call_operand.vmem [shape: f32[2,16,16,4], index: 0, kind: input, shape index: {}]   ;;  %s5041_s1 = inlined_call_operand.vmem [shape: f32[36,8], index: 1, kind: input, shape index: {}]   ;;  %s5042_s2 = inlined_call_operand.vmem [shape: f32[4,8], index: 2, kind: input, shape index: {}]   ;;  %s5043_s3 = inlined_call_operand.vmem [shape: f32[2,16,16,8], index: 3, kind: output, shape index: {0}]   ;;  %s5044_s4 = inlined_call_operand.hbm [shape: f32[2,2,8], index: 4, kind: output, shape index: {1}]   ;;  %s5045_s5 = inlined_call_operand.vmem [shape: f32[2,16,16,8], index: 5, kind: output, shape index: {2}]   ;;  %s5046_s6 = inlined_call_operand.hbm [shape: f32[2,2,8], index: 6, kind: output, shape index: {3}]  }
   0x1   :  { %5069 = sst [smem:[#allocation29_spill]] %s5040_s0 }
   0x2   :  { %5070 = sst [smem:[#allocation30_spill]] %s5041_s1 }
   0x3   :  { %12 = vsyncpa [#allocation5], 0 }
   0x4   :  { %14 = vsyncpa [#allocation5 + $0x1], 0 }
   0x5   :  { %15 = vsyncpa [#allocation7], 0 }
   0x6   :  { %17 = vsyncpa [#allocation7 + $0x1], 0  ;;  %s3372_s21 = smov 0   ;;  %s3374_s22 = smov 0  }
   0x7   :  { %s3376_s23 = smov 0   ;;  %s3378_s24 = smov 0  }
   0x8 LB: > { %s3393_s25 = sadd.s32 4294967295, %s3326_s24   ;;  %s3056_s26 = sadd.s32 4294967294, %s3326_s24   ;;  %s3326_s24 = sphi %s3378_s24, %s5117_s24   ;;  %s3322_s23 = sphi %s3376_s23, %s5116_s23   ;;  %s3318_s22 = sphi %s3374_s22, %s5115_s22   ;;  %s3314_s21 = sphi %s3372_s21, %s5114_s21  }
   0x9   : > { %s3397_s27 = sadd.s32 1, %s3326_s24   ;;  %s124_s28 = sadd.s32 1, %s3322_s23 }
   0xa   : > { %s121_s29 = ssub.s32 %s3326_s24, %s3397_s27  ;;  %p134_p0 = scmp.ne.s32.totalorder %s3322_s23, %s3318_s22 }
   0xb   : > { %p122_p1 = scmp.eq.s32.totalorder %s121_s29, 0  ;;  %p135_p2 = scmp.eq.s32.totalorder %s3393_s25, 1 }
   0xc   : > { %p140_p3 = scmp.ne.s32.totalorder %s3318_s22, %s3314_s21  ;;  %p141_p4 = scmp.eq.s32.totalorder %s3056_s26, 1 }
   0xd   : > { %s3408_s30 = scalar_select %p122_p1, %s3322_s23, %s124_s28  }
   0xe   : > { %p3410_p5 = por %p135_p2, %p134_p0  ;;  %p3414_p6 = por %p141_p4, %p140_p3 }
   0xf   : > { %p3059_p7 = scmp.ge.s32.totalorder %s3326_s24, 1  ;;  %p225_p8 = scmp.lt.s32.totalorder %s3326_s24, 3 }
  0x11   : > { %p226_p9 = pnand %p3059_p7, %p225_p8 }
  0x13   : > { %229 = sbr.rel (%p226_p9) target bundleno = 1019 (0x3fb), region = 32 }
  0x18   : > { %vm285_vm0 = vcmask 31744   ;;  %v3328_v0 = vmov 0.0   ;;  %vm294_vm1 = vcmask 24576   ;;  %s3329_s9 = smov 4   ;;  %p270_p10 = scmp.lt.s32.totalorder %s3393_s25, 1  ;;  %vm288_vm2 = vcmask 25600  }
  0x19   : > { %286 = vst.msk [vmem:[#allocation2] sm:$0xff] %vm285_vm0, %v3328_v0  ;;  %s5073_s0 = sld [smem:[#allocation29_spill]]  ;;  %vm622_vm3 = vcmask 64544   ;;  %s3330_s15 = smov 8   ;;  %vm815_vm4 = vcmask 97344   ;;  %vm1011_vm5 = vcmask 130144  }
  0x1a   : > { %287 = vst.msk [vmem:[#allocation2 + $0x8] sm:$0xff] %vm285_vm0, %v3328_v0  ;;  %s271_s10 = scalar_select %p270_p10, %s3393_s25, 1  ;;  %vm1204_vm6 = vcmask 162944   ;;  %vm1397_vm7 = vcmask 195744   ;;  %vm2146_vm8 = vcmask 1043456   ;;  %vm1593_vm9 = vcmask 228544  }
  0x1b   : > { %295 = vst.msk [vmem:[#allocation2] sm:$0x1] %vm294_vm1, %v3328_v0  ;;  %s3331_s16 = smov 12   ;;  %s3332_s17 = smov 16   ;;  %vm1786_vm10 = vcmask 261344   ;;  %vm1979_vm11 = vcmask 294144  }
  0x1c   : > { %291 = vst.msk [vmem:[#allocation2 + $0x198] sm:$0xff] %vm285_vm0, %v3328_v0  ;;  %s3452_s11 = sshll.u32 %s271_s10, 8  ;;  %s3333_s18 = smov 20   ;;  %vm2049_vm12 = vcmask 293888   ;;  %vm2263_vm13 = vcmask 64512   ;;  %vm2856_vm14 = vcmask 57344  }
  0x1d   : > { %292 = vst.msk [vmem:[#allocation2 + $0x1a0] sm:$0xff] %vm285_vm0, %v3328_v0  ;;  %s3334_s19 = smov 24   ;;  %s3335_s20 = smov 28  }
  0x1e   : > { %296 = vst.msk [vmem:[#allocation2 + $0x18] sm:$0x1] %vm294_vm1, %v3328_v0  ;;  %s3336_s26 = smov 32   ;;  %s5112_s1 = sld [smem:[#allocation30_spill]] }
  0x1f   : > { %297 = vst.msk [vmem:[#allocation2 + $0x30] sm:$0x1] %vm294_vm1, %v3328_v0  ;;  %s3461_s14 = scalar_lea.vmem %s5073_s0, %s3452_s11  ;;  %s4404_s12 = scalar_lea.vmem %s5043_s3, %s3452_s11 }
  0x20   : > { %298 = vst.msk [vmem:[#allocation2 + $0x48] sm:$0x1] %vm294_vm1, %v3328_v0  ;;  %v331_v2 = vld [vmem:[%s3461_s14] sm:$0xff]  ;;  %v332_v3 = vld [vmem:[%s3461_s14 + $0x8] sm:$0xff]  ;;  %v338_v6 = vld [vmem:[%s3461_s14 + $0x38] sm:$0xff] }
  0x21   : > { %v462_v1 = vld [vmem:[#allocation2 + $0x1] sm:$0xff]  ;;  %299 = vst.msk [vmem:[#allocation2 + $0x60] sm:$0x1] %vm294_vm1, %v3328_v0  ;;  %v333_v8 = vld [vmem:[%s3461_s14 + $0x10] sm:$0xff]  ;;  %v334_v12 = vld [vmem:[%s3461_s14 + $0x18] sm:$0xff] }
  0x22   : > { %526 = vrot.lane.b32.xlu0 %v462_v1, %s3329_s9  ;;  %300 = vst.msk [vmem:[#allocation2 + $0x78] sm:$0x1] %vm294_vm1, %v3328_v0  ;;  %v335_v4 = vld [vmem:[%s3461_s14 + $0x20] sm:$0xff]  ;;  %v336_v5 = vld [vmem:[%s3461_s14 + $0x28] sm:$0xff]  ;;  %v341_v11 = vld [vmem:[%s3461_s14 + $0x50] sm:$0xff] }
  0x23   : > { %301 = vst.msk [vmem:[#allocation2 + $0x90] sm:$0x1] %vm294_vm1, %v3328_v0  ;;  %v339_v9 = vld [vmem:[%s3461_s14 + $0x40] sm:$0xff]  ;;  %v342_v13 = vld [vmem:[%s3461_s14 + $0x58] sm:$0xff]  ;;  %v344_v14 = vld [vmem:[%s3461_s14 + $0x68] sm:$0xff] }
  0x24   : > { %302 = vst.msk [vmem:[#allocation2 + $0xa8] sm:$0x1] %vm294_vm1, %v3328_v0  ;;  %v337_v16 = vld [vmem:[%s3461_s14 + $0x30] sm:$0xff]  ;;  %v347_v19 = vld [vmem:[%s3461_s14 + $0x80] sm:$0xff]  ;;  %v340_v20 = vld [vmem:[%s3461_s14 + $0x48] sm:$0xff] }
  0x25   : > { %303 = vst.msk [vmem:[#allocation2 + $0xc0] sm:$0x1] %vm294_vm1, %v3328_v0  ;;  %v345_v17 = vld [vmem:[%s3461_s14 + $0x70] sm:$0xff]  ;;  %v348_v22 = vld [vmem:[%s3461_s14 + $0x88] sm:$0xff]  ;;  %v350_v23 = vld [vmem:[%s3461_s14 + $0x98] sm:$0xff] }
  0x26   : > { %304 = vst.msk [vmem:[#allocation2 + $0xd8] sm:$0x1] %vm294_vm1, %v3328_v0  ;;  %v343_v24 = vld [vmem:[%s3461_s14 + $0x60] sm:$0xff]  ;;  %v353_v29 = vld [vmem:[%s3461_s14 + $0xb0] sm:$0xff]  ;;  %v346_v30 = vld [vmem:[%s3461_s14 + $0x78] sm:$0xff] }
  0x27   : > { %305 = vst.msk [vmem:[#allocation2 + $0xf0] sm:$0x1] %vm294_vm1, %v3328_v0  ;;  %v351_v28 = vld [vmem:[%s3461_s14 + $0xa0] sm:$0xff]  ;;  %v354_v34 = vld [vmem:[%s3461_s14 + $0xb8] sm:$0xff]  ;;  %v356_v35 = vld [vmem:[%s3461_s14 + $0xc8] sm:$0xff] }
  0x28   : > { %306 = vst.msk [vmem:[#allocation2 + $0x108] sm:$0x1] %vm294_vm1, %v3328_v0  ;;  %v349_v36 = vld [vmem:[%s3461_s14 + $0x90] sm:$0xff]  ;;  %v359_v41 = vld [vmem:[%s3461_s14 + $0xe0] sm:$0xff]  ;;  %v352_v42 = vld [vmem:[%s3461_s14 + $0xa8] sm:$0xff] }
  0x29   : > { %307 = vst.msk [vmem:[#allocation2 + $0x120] sm:$0x1] %vm294_vm1, %v3328_v0  ;;  %v357_v40 = vld [vmem:[%s3461_s14 + $0xd0] sm:$0xff]  ;;  %v360_v46 = vld [vmem:[%s3461_s14 + $0xe8] sm:$0xff]  ;;  %v355_v47 = vld [vmem:[%s3461_s14 + $0xc0] sm:$0xff] }
  0x2a   : > { %308 = vst.msk [vmem:[#allocation2 + $0x138] sm:$0x1] %vm294_vm1, %v3328_v0  ;;  %v358_v51 = vld [vmem:[%s3461_s14 + $0xd8] sm:$0xff]  ;;  %v398_v61 = vld [vmem:[#allocation2] sm:$0xff] }
  0x2b   : > { %309 = vst.msk [vmem:[#allocation2 + $0x150] sm:$0x1] %vm294_vm1, %v3328_v0 }
  0x2c   : > { %310 = vst.msk [vmem:[#allocation2 + $0x168] sm:$0x1] %vm294_vm1, %v3328_v0 }
  0x2d   : > { %311 = vst.msk [vmem:[#allocation2 + $0x180] sm:$0x1] %vm294_vm1, %v3328_v0 }
  0x2e   : > { %314 = vst.msk [vmem:[#allocation2 + $0x29] sm:$0x1] %vm294_vm1, %v3328_v0 }
  0x2f   : > { %315 = vst.msk [vmem:[#allocation2 + $0x41] sm:$0x1] %vm294_vm1, %v3328_v0 }
  0x30   : > { %316 = vst.msk [vmem:[#allocation2 + $0x59] sm:$0x1] %vm294_vm1, %v3328_v0 }
  0x31   : > { %317 = vst.msk [vmem:[#allocation2 + $0x71] sm:$0x1] %vm294_vm1, %v3328_v0 }
  0x32   : > { %318 = vst.msk [vmem:[#allocation2 + $0x89] sm:$0x1] %vm294_vm1, %v3328_v0 }
  0x33   : > { %319 = vst.msk [vmem:[#allocation2 + $0xa1] sm:$0x1] %vm294_vm1, %v3328_v0 }
  0x34   : > { %320 = vst.msk [vmem:[#allocation2 + $0xb9] sm:$0x1] %vm294_vm1, %v3328_v0 }
  0x35   : > { %321 = vst.msk [vmem:[#allocation2 + $0xd1] sm:$0x1] %vm294_vm1, %v3328_v0 }
  0x36   : > { %322 = vst.msk [vmem:[#allocation2 + $0xe9] sm:$0x1] %vm294_vm1, %v3328_v0 }
  0x37   : > { %323 = vst.msk [vmem:[#allocation2 + $0x101] sm:$0x1] %vm294_vm1, %v3328_v0 }
  0x38   : > { %324 = vst.msk [vmem:[#allocation2 + $0x119] sm:$0x1] %vm294_vm1, %v3328_v0 }
  0x39   : > { %325 = vst.msk [vmem:[#allocation2 + $0x131] sm:$0x1] %vm294_vm1, %v3328_v0 }
  0x3a   : > { %326 = vst.msk [vmem:[#allocation2 + $0x149] sm:$0x1] %vm294_vm1, %v3328_v0 }
  0x3b   : > { %327 = vst.msk [vmem:[#allocation2 + $0x161] sm:$0x1] %vm294_vm1, %v3328_v0 }
  0x3c   : > { %328 = vst.msk [vmem:[#allocation2 + $0x179] sm:$0x1] %vm294_vm1, %v3328_v0 }
  0x3d   : > { %329 = vst.msk [vmem:[#allocation2 + $0x191] sm:$0x1] %vm294_vm1, %v3328_v0 }
  0x3e   : > { %364 = vst.msk [vmem:[#allocation2 + $0x19] sm:$0xff] %vm285_vm0, %v331_v2 }
  0x3f   : > { %312 = vst.msk [vmem:[#allocation2 + $0x198] sm:$0x1] %vm294_vm1, %v3328_v0 }
  0x40   : > { %289 = vst.msk [vmem:[#allocation2 + $0x10] sm:$0x3] %vm288_vm2, %v3328_v0 }
  0x41   : > { %293 = vst.msk [vmem:[#allocation2 + $0x1a8] sm:$0x3] %vm288_vm2, %v3328_v0 }
  0x42   : > { %313 = vst.msk [vmem:[#allocation2 + $0x11] sm:$0x1] %vm294_vm1, %v3328_v0 }
  0x43   : > { %365 = vst.msk [vmem:[#allocation2 + $0x21] sm:$0xff] %vm285_vm0, %v332_v3 }
  0x44   : > { %330 = vst.msk [vmem:[#allocation2 + $0x1a9] sm:$0x1] %vm294_vm1, %v3328_v0 }
  0x45   : > { %v3478_v7 = vld [vmem:[#allocation2 + $0x19] sm:$0xff]  ;;  %368 = vst.msk [vmem:[#allocation2 + $0x49] sm:$0xff] %vm285_vm0, %v335_v4  ;;  %v399_v4 = vld [vmem:[#allocation2 + $0x8] sm:$0xff] }
  0x46   : > { %530 = vrot.lane.b32.xlu1 %v3478_v7, %s3329_s9  ;;  %369 = vst.msk [vmem:[#allocation2 + $0x51] sm:$0xff] %vm285_vm0, %v336_v5  ;;  %v3656_v3 = vld [vmem:[#allocation2 + $0x18] sm:$0xff] }
  0x47   : > { %v463_v10 = vld [vmem:[#allocation2 + $0x9] sm:$0xff]  ;;  %371 = vst.msk [vmem:[#allocation2 + $0x69] sm:$0xff] %vm285_vm0, %v338_v6 }
  0x48   : > { %528 = vrot.lane.b32.xlu0 %v463_v10, %s3329_s9  ;;  %366 = vst.msk [vmem:[#allocation2 + $0x31] sm:$0xff] %vm285_vm0, %v333_v8 }
  0x49   : > { %372 = vst.msk [vmem:[#allocation2 + $0x79] sm:$0xff] %vm285_vm0, %v339_v9  ;;  %v656_v1 = vld [vmem:[#allocation2 + $0xa] sm:$0xff]  ;;  %v655_v9 = vld [vmem:[#allocation2 + $0x2] sm:$0xff] }
  0x4a   : > { %374 = vst.msk [vmem:[#allocation2 + $0x91] sm:$0xff] %vm285_vm0, %v341_v11  ;;  %v3495_v15 = vld [vmem:[#allocation2 + $0x21] sm:$0xff] }
  0x4b   : > { %367 = vst.msk [vmem:[#allocation2 + $0x39] sm:$0xff] %vm285_vm0, %v334_v12  ;;  %v3664_v5 = vld [vmem:[#allocation2 + $0x1a] sm:$0xff] }
  0x4c   : > { %375 = vst.msk [vmem:[#allocation2 + $0x99] sm:$0xff] %vm285_vm0, %v342_v13  ;;  %v3501_v18 = vld [vmem:[#allocation2 + $0x49] sm:$0xff]  ;;  %v3674_v10 = vld [vmem:[#allocation2 + $0x20] sm:$0xff] }
  0x4d   : > { %377 = vst.msk [vmem:[#allocation2 + $0xb1] sm:$0xff] %vm285_vm0, %v344_v14  ;;  %v3522_v25 = vld [vmem:[#allocation2 + $0x51] sm:$0xff]  ;;  %v3681_v11 = vld [vmem:[#allocation2 + $0x48] sm:$0xff] }
  0x4e   : > { %532 = vrot.lane.b32.xlu1 %v3495_v15, %s3329_s9  ;;  %370 = vst.msk [vmem:[#allocation2 + $0x61] sm:$0xff] %vm285_vm0, %v337_v16  ;;  %v3526_v26 = vld [vmem:[#allocation2 + $0x69] sm:$0xff]  ;;  %v3691_v14 = vld [vmem:[#allocation2 + $0x52] sm:$0xff] }
  0x4f   : > { %v3509_v21 = vld [vmem:[#allocation2 + $0x31] sm:$0xff]  ;;  %378 = vst.msk [vmem:[#allocation2 + $0xc1] sm:$0xff] %vm285_vm0, %v345_v17  ;;  %v3693_v16 = vld [vmem:[#allocation2 + $0x22] sm:$0xff] }
  0x50   : > { %538 = vrot.lane.b32.xlu0 %v3501_v18, %s3329_s9  ;;  %534 = vrot.lane.b32.xlu2 %v3509_v21, %s3329_s9  ;;  %380 = vst.msk [vmem:[#allocation2 + $0xd9] sm:$0xff] %vm285_vm0, %v347_v19  ;;  %v3542_v31 = vld [vmem:[#allocation2 + $0x79] sm:$0xff]  ;;  %v3644_v62 = vld [vmem:[#allocation2 + $0x30] sm:$0xff] }
  0x51   : > { %373 = vst.msk [vmem:[#allocation2 + $0x81] sm:$0xff] %vm285_vm0, %v340_v20  ;;  %v3544_v32 = vld [vmem:[#allocation2 + $0x91] sm:$0xff] }
  0x52   : > { %381 = vst.msk [vmem:[#allocation2 + $0xe1] sm:$0xff] %vm285_vm0, %v348_v22  ;;  %v3528_v27 = vld [vmem:[#allocation2 + $0x39] sm:$0xff]  ;;  %v3697_v17 = vld [vmem:[#allocation2 + $0x50] sm:$0xff] }
  0x53   : > { %383 = vst.msk [vmem:[#allocation2 + $0xf9] sm:$0xff] %vm285_vm0, %v350_v23  ;;  %v3560_v37 = vld [vmem:[#allocation2 + $0x99] sm:$0xff] }
  0x54   : > { %376 = vst.msk [vmem:[#allocation2 + $0xa9] sm:$0xff] %vm285_vm0, %v343_v24  ;;  %v3562_v38 = vld [vmem:[#allocation2 + $0xb1] sm:$0xff]  ;;  %v3685_v12 = vld [vmem:[#allocation2 + $0x3a] sm:$0xff] }
  0x55   : > { %384 = vst.msk [vmem:[#allocation2 + $0x109] sm:$0xff] %vm285_vm0, %v351_v28  ;;  %v3546_v33 = vld [vmem:[#allocation2 + $0x61] sm:$0xff]  ;;  %v3666_v6 = vld [vmem:[#allocation2 + $0x38] sm:$0xff]  ;;  %v3718_v28 = vld [vmem:[#allocation2 + $0x4a] sm:$0xff] }
  0x56   : > { %540 = vrot.lane.b32.xlu1 %v3522_v25, %s3329_s9  ;;  %386 = vst.msk [vmem:[#allocation2 + $0x121] sm:$0xff] %vm285_vm0, %v353_v29  ;;  %v3578_v43 = vld [vmem:[#allocation2 + $0xc1] sm:$0xff]  ;;  %v3670_v8 = vld [vmem:[#allocation2 + $0x32] sm:$0xff] }
  0x57   : > { %379 = vst.msk [vmem:[#allocation2 + $0xc9] sm:$0xff] %vm285_vm0, %v346_v30  ;;  %v3580_v44 = vld [vmem:[#allocation2 + $0xd9] sm:$0xff]  ;;  %v3705_v19 = vld [vmem:[#allocation2 + $0x68] sm:$0xff]  ;;  %v3730_v30 = vld [vmem:[#allocation2 + $0x90] sm:$0xff] }
  0x58   : > { %544 = vrot.lane.b32.xlu0 %v3526_v26, %s3329_s9  ;;  %536 = vrot.lane.b32.xlu2 %v3528_v27, %s3329_s9  ;;  %387 = vst.msk [vmem:[#allocation2 + $0x129] sm:$0xff] %vm285_vm0, %v354_v34  ;;  %v3564_v39 = vld [vmem:[#allocation2 + $0x81] sm:$0xff]  ;;  %v3722_v29 = vld [vmem:[#allocation2 + $0x78] sm:$0xff] }
  0x59   : > { %389 = vst.msk [vmem:[#allocation2 + $0x141] sm:$0xff] %vm285_vm0, %v356_v35  ;;  %v3594_v48 = vld [vmem:[#allocation2 + $0xe1] sm:$0xff] }
  0x5a   : > { %382 = vst.msk [vmem:[#allocation2 + $0xf1] sm:$0xff] %vm285_vm0, %v349_v36  ;;  %v3596_v49 = vld [vmem:[#allocation2 + $0xf9] sm:$0xff]  ;;  %v3709_v22 = vld [vmem:[#allocation2 + $0x62] sm:$0xff] }
  0x5b   : > { %390 = vst.msk [vmem:[#allocation2 + $0x151] sm:$0xff] %vm285_vm0, %v357_v40  ;;  %v3582_v45 = vld [vmem:[#allocation2 + $0xa9] sm:$0xff]  ;;  %v3687_v13 = vld [vmem:[#allocation2 + $0x60] sm:$0xff] }
  0x5c   : > { %392 = vst.msk [vmem:[#allocation2 + $0x169] sm:$0xff] %vm285_vm0, %v359_v41  ;;  %v3608_v52 = vld [vmem:[#allocation2 + $0x109] sm:$0xff]  ;;  %v3712_v23 = vld [vmem:[#allocation2 + $0x80] sm:$0xff] }
  0x5d   : > { %385 = vst.msk [vmem:[#allocation2 + $0x111] sm:$0xff] %vm285_vm0, %v352_v42  ;;  %v3610_v53 = vld [vmem:[#allocation2 + $0x121] sm:$0xff]  ;;  %v3743_v41 = vld [vmem:[#allocation2 + $0x6a] sm:$0xff]  ;;  %v3747_v42 = vld [vmem:[#allocation2 + $0x98] sm:$0xff] }
  0x5e   : > { %546 = vrot.lane.b32.xlu1 %v3542_v31, %s3329_s9  ;;  %393 = vst.msk [vmem:[#allocation2 + $0x171] sm:$0xff] %vm285_vm0, %v360_v46  ;;  %v3598_v50 = vld [vmem:[#allocation2 + $0xc9] sm:$0xff]  ;;  %v3716_v24 = vld [vmem:[#allocation2 + $0x7a] sm:$0xff] }
  0x5f   : > { %388 = vst.msk [vmem:[#allocation2 + $0x139] sm:$0xff] %vm285_vm0, %v355_v47  ;;  %v3620_v55 = vld [vmem:[#allocation2 + $0x129] sm:$0xff]  ;;  %v3741_v40 = vld [vmem:[#allocation2 + $0x9a] sm:$0xff] }
  0x60   : > { %550 = vrot.lane.b32.xlu0 %v3544_v32, %s3329_s9  ;;  %542 = vrot.lane.b32.xlu2 %v3546_v33, %s3329_s9  ;;  %391 = vst.msk [vmem:[#allocation2 + $0x159] sm:$0xff] %vm285_vm0, %v358_v51  ;;  %v3622_v56 = vld [vmem:[#allocation2 + $0x141] sm:$0xff]  ;;  %v3756_v47 = vld [vmem:[#allocation2 + $0xb0] sm:$0xff] }
  0x61   : > { %v3612_v54 = vld [vmem:[#allocation2 + $0xf1] sm:$0xff]  ;;  %430 = vst.msk [vmem:[#allocation3] sm:$0xff] %vm285_vm0, %v398_v61  ;;  %v3734_v35 = vld [vmem:[#allocation2 + $0x82] sm:$0xff] }
  0x62   : > { %v3632_v58 = vld [vmem:[#allocation2 + $0x151] sm:$0xff]  ;;  %434 = vst.msk [vmem:[#allocation3 + $0x20] sm:$0xff] %vm285_vm0, %v3644_v62  ;;  %v3737_v36 = vld [vmem:[#allocation2 + $0xa8] sm:$0xff] }
  0x63   : > { %5074 = vst [vmem:[#allocation10_spill] sm:$0xff] %v3632_v58  ;;  %v3634_v59 = vld [vmem:[#allocation2 + $0x169] sm:$0xff] }
  0x64   : > { %v3624_v57 = vld [vmem:[#allocation2 + $0x111] sm:$0xff]  ;;  %5075 = vst [vmem:[#allocation11_spill] sm:$0xff] %v3634_v59 }
  0x65   : > { %v3649_v63 = vld [vmem:[#allocation2 + $0x171] sm:$0xff]  ;;  %432 = vst.msk [vmem:[#allocation3 + $0x10] sm:$0xff] %vm285_vm0, %v3656_v3 }
  0x66   : > { %552 = vrot.lane.b32.xlu1 %v3560_v37, %s3329_s9  ;;  %v3636_v60 = vld [vmem:[#allocation2 + $0x139] sm:$0xff]  ;;  %5076 = vst [vmem:[#allocation12_spill] sm:$0xff] %v3649_v63 }
  0x67   : > { %v3651_v2 = vld [vmem:[#allocation2 + $0x159] sm:$0xff]  ;;  %431 = vst.msk [vmem:[#allocation3 + $0x8] sm:$0xff] %vm285_vm0, %v399_v4  ;;  %v671_v4 = vld [vmem:[#allocation2 + $0xc2] sm:$0xff] }
  0x68   : > { %556 = vrot.lane.b32.xlu0 %v3562_v38, %s3329_s9  ;;  %548 = vrot.lane.b32.xlu2 %v3564_v39, %s3329_s9  ;;  %5077 = vst [vmem:[#allocation13_spill] sm:$0xff] %v3664_v5 }
  0x69   : > { %435 = vst.msk [vmem:[#allocation3 + $0x28] sm:$0xff] %vm285_vm0, %v3666_v6 }
  0x6a   : > { %5078 = vst [vmem:[#allocation14_spill] sm:$0xff] %v3670_v8 }
  0x6b   : > { %433 = vst.msk [vmem:[#allocation3 + $0x18] sm:$0xff] %vm285_vm0, %v3674_v10 }
  0x6c   : > { %436 = vst.msk [vmem:[#allocation3 + $0x30] sm:$0xff] %vm285_vm0, %v3681_v11 }
  0x6d   : > { %5079 = vst [vmem:[#allocation15_spill] sm:$0xff] %v3685_v12 }
  0x6e   : > { %558 = vrot.lane.b32.xlu1 %v3578_v43, %s3329_s9  ;;  %438 = vst.msk [vmem:[#allocation3 + $0x40] sm:$0xff] %vm285_vm0, %v3687_v13 }
  0x6f   : > { %5080 = vst [vmem:[#allocation16_spill] sm:$0xff] %v3691_v14 }
  0x70   : > { %562 = vrot.lane.b32.xlu0 %v3580_v44, %s3329_s9  ;;  %554 = vrot.lane.b32.xlu2 %v3582_v45, %s3329_s9  ;;  %5081 = vst [vmem:[#allocation17_spill] sm:$0xff] %v3693_v16 }
  0x71   : > { %437 = vst.msk [vmem:[#allocation3 + $0x38] sm:$0xff] %vm285_vm0, %v3697_v17 }
  0x72   : > { %439 = vst.msk [vmem:[#allocation3 + $0x48] sm:$0xff] %vm285_vm0, %v3705_v19 }
  0x73   : > { %5082 = vst [vmem:[#allocation18_spill] sm:$0xff] %v3709_v22 }
  0x74   : > { %441 = vst.msk [vmem:[#allocation3 + $0x58] sm:$0xff] %vm285_vm0, %v3712_v23 }
  0x75   : > { %5083 = vst [vmem:[#allocation19_spill] sm:$0xff] %v3716_v24 }
  0x76   : > { %564 = vrot.lane.b32.xlu1 %v3594_v48, %s3329_s9  ;;  %5084 = vst [vmem:[#allocation20_spill] sm:$0xff] %v3718_v28 }
  0x77   : > { %440 = vst.msk [vmem:[#allocation3 + $0x50] sm:$0xff] %vm285_vm0, %v3722_v29 }
  0x78   : > { %568 = vrot.lane.b32.xlu0 %v3596_v49, %s3329_s9  ;;  %560 = vrot.lane.b32.xlu2 %v3598_v50, %s3329_s9  ;;  %442 = vst.msk [vmem:[#allocation3 + $0x60] sm:$0xff] %vm285_vm0, %v3730_v30 }
  0x79   : > { %5085 = vst [vmem:[#allocation21_spill] sm:$0xff] %v3734_v35 }
  0x7a   : > { %444 = vst.msk [vmem:[#allocation3 + $0x70] sm:$0xff] %vm285_vm0, %v3737_v36 }
  0x7b   : > { %5086 = vst [vmem:[#allocation22_spill] sm:$0xff] %v3741_v40 }
  0x7c   : > { %5087 = vst [vmem:[#allocation23_spill] sm:$0xff] %v3743_v41 }
  0x7d   : > { %443 = vst.msk [vmem:[#allocation3 + $0x68] sm:$0xff] %vm285_vm0, %v3747_v42 }
  0x7e   : > { %570 = vrot.lane.b32.xlu1 %v3608_v52, %s3329_s9  ;;  %445 = vst.msk [vmem:[#allocation3 + $0x78] sm:$0xff] %vm285_vm0, %v3756_v47 }
  0x80   : > { %574 = vrot.lane.b32.xlu0 %v3610_v53, %s3329_s9  ;;  %566 = vrot.lane.b32.xlu2 %v3612_v54, %s3329_s9 }
  0x86   : > { %576 = vrot.lane.b32.xlu1 %v3620_v55, %s3329_s9 }
  0x88   : > { %580 = vrot.lane.b32.xlu0 %v3622_v56, %s3329_s9  ;;  %572 = vrot.lane.b32.xlu2 %v3624_v57, %s3329_s9 }
  0x8e   : > { %582 = vrot.lane.b32.xlu1 %v3632_v58, %s3329_s9  ;;  %v682_v58 = vld [vmem:[#allocation2 + $0x142] sm:$0xff] }
  0x90   : > { %586 = vrot.lane.b32.xlu0 %v3634_v59, %s3329_s9  ;;  %578 = vrot.lane.b32.xlu2 %v3636_v60, %s3329_s9 }
  0x94   : > { %v527_v0 = vpop.permute.xlu0 %526 }
  0x95   : > { %623 = vst.msk [vmem:[#allocation3] sm:$0xff] %vm622_vm3, %v527_v0  ;;  %v3761_v0 = vld [vmem:[#allocation2 + $0xaa] sm:$0xff] }
  0x96   : > { %588 = vrot.lane.b32.xlu1 %v3649_v63, %s3329_s9  ;;  %5088 = vst [vmem:[#allocation24_spill] sm:$0xff] %v3761_v0 }
  0x98   : > { %721 = vrot.lane.b32.xlu0 %v656_v1, %s3330_s15  ;;  %584 = vrot.lane.b32.xlu2 %v3651_v2, %s3329_s9  ;;  %v3763_v1 = vld [vmem:[#allocation2 + $0xc8] sm:$0xff] }
  0x99   : > { %447 = vst.msk [vmem:[#allocation3 + $0x88] sm:$0xff] %vm285_vm0, %v3763_v1 }
  0x9e   : > { %723 = vrot.lane.b32.xlu1 %v3664_v5, %s3330_s15 }
  0xa0   : > { %727 = vrot.lane.b32.xlu0 %v3670_v8, %s3330_s15  ;;  %719 = vrot.lane.b32.xlu2 %v655_v9, %s3330_s15  ;;  %v3766_v9 = vld [vmem:[#allocation2 + $0x92] sm:$0xff]  ;;  %v679_v8 = vld [vmem:[#allocation2 + $0x122] sm:$0xff] }
  0xa1   : > { %5089 = vst [vmem:[#allocation25_spill] sm:$0xff] %v3766_v9 }
  0xa6   : > { %729 = vrot.lane.b32.xlu1 %v3685_v12, %s3330_s15 }
  0xa8   : > { %733 = vrot.lane.b32.xlu0 %v3691_v14, %s3330_s15  ;;  %725 = vrot.lane.b32.xlu2 %v3693_v16, %s3330_s15  ;;  %v3830_v14 = vld [vmem:[#allocation2 + $0xfa] sm:$0xff] }
  0xa9   : > { %5092 = vst [vmem:[#allocation28_spill] sm:$0xff] %v3830_v14 }
  0xaa   : > { %v535_v20 = vpop.permute.xlu2 %534 }
  0xab   : > { %627 = vst.msk [vmem:[#allocation3 + $0x20] sm:$0xff] %vm622_vm3, %v535_v20  ;;  %v3772_v20 = vld [vmem:[#allocation2 + $0xc0] sm:$0xff] }
  0xac   : > { %446 = vst.msk [vmem:[#allocation3 + $0x80] sm:$0xff] %vm285_vm0, %v3772_v20 }
  0xae   : > { %735 = vrot.lane.b32.xlu1 %v3709_v22, %s3330_s15 }
  0xb0   : > { %739 = vrot.lane.b32.xlu0 %v3716_v24, %s3330_s15  ;;  %731 = vrot.lane.b32.xlu2 %v3718_v28, %s3330_s15  ;;  %v3808_v24 = vld [vmem:[#allocation2 + $0xda] sm:$0xff] }
  0xb1   : > { %5091 = vst [vmem:[#allocation27_spill] sm:$0xff] %v3808_v24 }
  0xb2   : > { %v537_v34 = vpop.permute.xlu2 %536 }
  0xb3   : > { %628 = vst.msk [vmem:[#allocation3 + $0x28] sm:$0xff] %vm622_vm3, %v537_v34 }
  0xb6   : > { %741 = vrot.lane.b32.xlu1 %v3734_v35, %s3330_s15  ;;  %v674_v35 = vld [vmem:[#allocation2 + $0xe2] sm:$0xff] }
  0xb8   : > { %745 = vrot.lane.b32.xlu0 %v3741_v40, %s3330_s15  ;;  %v531_v46 = vpop.permute.xlu1 %530  ;;  %737 = vrot.lane.b32.xlu2 %v3743_v41, %s3330_s15  ;;  %v670_v40 = vld [vmem:[#allocation2 + $0xb2] sm:$0xff] }
  0xb9   : > { %625 = vst.msk [vmem:[#allocation3 + $0x10] sm:$0xff] %vm622_vm3, %v531_v46  ;;  %v3780_v46 = vld [vmem:[#allocation2 + $0xd8] sm:$0xff] }
  0xba   : > { %v529_v51 = vpop.permute.xlu0 %528  ;;  %v543_v61 = vpop.permute.xlu2 %542  ;;  %448 = vst.msk [vmem:[#allocation3 + $0x90] sm:$0xff] %vm285_vm0, %v3780_v46 }
  0xbb   : > { %624 = vst.msk [vmem:[#allocation3 + $0x8] sm:$0xff] %vm622_vm3, %v529_v51 }
  0xbc   : > { %631 = vst.msk [vmem:[#allocation3 + $0x40] sm:$0xff] %vm622_vm3, %v543_v61 }
  0xbe   : > { %747 = vrot.lane.b32.xlu1 %v3761_v0, %s3330_s15  ;;  %v672_v0 = vld [vmem:[#allocation2 + $0xca] sm:$0xff] }
  0xc0   : > { %751 = vrot.lane.b32.xlu0 %v671_v4, %s3330_s15  ;;  %v533_v34 = vpop.permute.xlu1 %532  ;;  %743 = vrot.lane.b32.xlu2 %v3766_v9, %s3330_s15  ;;  %v3785_v4 = vld [vmem:[#allocation2 + $0xf0] sm:$0xff] }
  0xc1   : > { %626 = vst.msk [vmem:[#allocation3 + $0x18] sm:$0xff] %vm622_vm3, %v533_v34  ;;  %v3791_v34 = vld [vmem:[#allocation2 + $0xe0] sm:$0xff] }
  0xc2   : > { %v539_v51 = vpop.permute.xlu0 %538  ;;  %v549_v61 = vpop.permute.xlu2 %548  ;;  %450 = vst.msk [vmem:[#allocation3 + $0xa0] sm:$0xff] %vm285_vm0, %v3785_v4 }
  0xc3   : > { %629 = vst.msk [vmem:[#allocation3 + $0x30] sm:$0xff] %vm622_vm3, %v539_v51  ;;  %v3798_v51 = vld [vmem:[#allocation2 + $0xf8] sm:$0xff] }
  0xc4   : > { %634 = vst.msk [vmem:[#allocation3 + $0x58] sm:$0xff] %vm622_vm3, %v549_v61 }
  0xc5   : > { %449 = vst.msk [vmem:[#allocation3 + $0x98] sm:$0xff] %vm285_vm0, %v3791_v34 }
  0xc6   : > { %753 = vrot.lane.b32.xlu1 %v672_v0, %s3330_s15  ;;  %451 = vst.msk [vmem:[#allocation3 + $0xa8] sm:$0xff] %vm285_vm0, %v3798_v51  ;;  %v3803_v0 = vld [vmem:[#allocation2 + $0xf2] sm:$0xff] }
  0xc7   : > { %5090 = vst [vmem:[#allocation26_spill] sm:$0xff] %v3803_v0 }
  0xc8   : > { %757 = vrot.lane.b32.xlu0 %v674_v35, %s3330_s15  ;;  %v541_v22 = vpop.permute.xlu1 %540  ;;  %749 = vrot.lane.b32.xlu2 %v670_v40, %s3330_s15  ;;  %v3805_v35 = vld [vmem:[#allocation2 + $0x110] sm:$0xff] }
  0xc9   : > { %630 = vst.msk [vmem:[#allocation3 + $0x38] sm:$0xff] %vm622_vm3, %v541_v22  ;;  %v677_v40 = vld [vmem:[#allocation2 + $0x10a] sm:$0xff] }
  0xca   : > { %v545_v61 = vpop.permute.xlu0 %544  ;;  %v555_v9 = vpop.permute.xlu2 %554  ;;  %453 = vst.msk [vmem:[#allocation3 + $0xb8] sm:$0xff] %vm285_vm0, %v3805_v35  ;;  %v3814_v22 = vld [vmem:[#allocation2 + $0x108] sm:$0xff] }
  0xcb   : > { %632 = vst.msk [vmem:[#allocation3 + $0x48] sm:$0xff] %vm622_vm3, %v545_v61 }
  0xcc   : > { %637 = vst.msk [vmem:[#allocation3 + $0x70] sm:$0xff] %vm622_vm3, %v555_v9  ;;  %v3822_v9 = vld [vmem:[#allocation2 + $0x120] sm:$0xff] }
  0xcd   : > { %452 = vst.msk [vmem:[#allocation3 + $0xb0] sm:$0xff] %vm285_vm0, %v3814_v22 }
  0xce   : > { %759 = vrot.lane.b32.xlu1 %v3803_v0, %s3330_s15  ;;  %454 = vst.msk [vmem:[#allocation3 + $0xc0] sm:$0xff] %vm285_vm0, %v3822_v9  ;;  %v678_v0 = vld [vmem:[#allocation2 + $0x112] sm:$0xff] }
  0xd0   : > { %763 = vrot.lane.b32.xlu0 %v677_v40, %s3330_s15  ;;  %v547_v61 = vpop.permute.xlu1 %546  ;;  %755 = vrot.lane.b32.xlu2 %v3808_v24, %s3330_s15  ;;  %v3827_v40 = vld [vmem:[#allocation2 + $0x138] sm:$0xff]  ;;  %v680_v24 = vld [vmem:[#allocation2 + $0x12a] sm:$0xff] }
  0xd1   : > { %633 = vst.msk [vmem:[#allocation3 + $0x50] sm:$0xff] %vm622_vm3, %v547_v61  ;;  %v3835_v61 = vld [vmem:[#allocation2 + $0x128] sm:$0xff] }
  0xd2   : > { %v551_v12 = vpop.permute.xlu0 %550  ;;  %v561_v41 = vpop.permute.xlu2 %560  ;;  %456 = vst.msk [vmem:[#allocation3 + $0xd0] sm:$0xff] %vm285_vm0, %v3827_v40 }
  0xd3   : > { %635 = vst.msk [vmem:[#allocation3 + $0x60] sm:$0xff] %vm622_vm3, %v551_v12  ;;  %v3843_v12 = vld [vmem:[#allocation2 + $0x140] sm:$0xff] }
  0xd4   : > { %640 = vst.msk [vmem:[#allocation3 + $0x88] sm:$0xff] %vm622_vm3, %v561_v41 }
  0xd5   : > { %455 = vst.msk [vmem:[#allocation3 + $0xc8] sm:$0xff] %vm285_vm0, %v3835_v61 }
  0xd6   : > { %765 = vrot.lane.b32.xlu1 %v678_v0, %s3330_s15  ;;  %457 = vst.msk [vmem:[#allocation3 + $0xd8] sm:$0xff] %vm285_vm0, %v3843_v12  ;;  %v681_v0 = vld [vmem:[#allocation2 + $0x13a] sm:$0xff] }
  0xd8   : > { %769 = vrot.lane.b32.xlu0 %v680_v24, %s3330_s15  ;;  %v553_v5 = vpop.permute.xlu1 %552  ;;  %761 = vrot.lane.b32.xlu2 %v3830_v14, %s3330_s15  ;;  %v3848_v24 = vld [vmem:[#allocation2 + $0x158] sm:$0xff] }
  0xd9   : > { %636 = vst.msk [vmem:[#allocation3 + $0x68] sm:$0xff] %vm622_vm3, %v553_v5  ;;  %v683_v14 = vld [vmem:[#allocation2 + $0x152] sm:$0xff] }
  0xda   : > { %v557_v41 = vpop.permute.xlu0 %556  ;;  %v567_v28 = vpop.permute.xlu2 %566  ;;  %459 = vst.msk [vmem:[#allocation3 + $0xe8] sm:$0xff] %vm285_vm0, %v3848_v24  ;;  %v3854_v5 = vld [vmem:[#allocation2 + $0x150] sm:$0xff] }
  0xdb   : > { %638 = vst.msk [vmem:[#allocation3 + $0x78] sm:$0xff] %vm622_vm3, %v557_v41 }
  0xdc   : > { %643 = vst.msk [vmem:[#allocation3 + $0xa0] sm:$0xff] %vm622_vm3, %v567_v28  ;;  %v3861_v28 = vld [vmem:[#allocation2 + $0x168] sm:$0xff] }
  0xdd   : > { %458 = vst.msk [vmem:[#allocation3 + $0xe0] sm:$0xff] %vm285_vm0, %v3854_v5 }
  0xde   : > { %771 = vrot.lane.b32.xlu1 %v681_v0, %s3330_s15  ;;  %460 = vst.msk [vmem:[#allocation3 + $0xf0] sm:$0xff] %vm285_vm0, %v3861_v28  ;;  %v684_v0 = vld [vmem:[#allocation2 + $0x15a] sm:$0xff] }
  0xe0   : > { %775 = vrot.lane.b32.xlu0 %v683_v14, %s3330_s15  ;;  %v559_v63 = vpop.permute.xlu1 %558  ;;  %767 = vrot.lane.b32.xlu2 %v679_v8, %s3330_s15  ;;  %v686_v14 = vld [vmem:[#allocation2 + $0x172] sm:$0xff] }
  0xe1   : > { %639 = vst.msk [vmem:[#allocation3 + $0x80] sm:$0xff] %vm622_vm3, %v559_v63  ;;  %v3868_v8 = vld [vmem:[#allocation2 + $0x170] sm:$0xff] }
  0xe2   : > { %v563_v41 = vpop.permute.xlu0 %562  ;;  %v573_v16 = vpop.permute.xlu2 %572  ;;  %461 = vst.msk [vmem:[#allocation3 + $0xf8] sm:$0xff] %vm285_vm0, %v3868_v8 }
  0xe3   : > { %641 = vst.msk [vmem:[#allocation3 + $0x90] sm:$0xff] %vm622_vm3, %v563_v41 }
  0xe4   : > { %646 = vst.msk [vmem:[#allocation3 + $0xb8] sm:$0xff] %vm622_vm3, %v573_v16  ;;  %v685_v16 = vld [vmem:[#allocation2 + $0x16a] sm:$0xff] }
  0xe6   : > { %777 = vrot.lane.b32.xlu1 %v684_v0, %s3330_s15 }
  0xe8   : > { %781 = vrot.lane.b32.xlu0 %v686_v14, %s3330_s15  ;;  %v565_v63 = vpop.permute.xlu1 %564  ;;  %773 = vrot.lane.b32.xlu2 %v682_v58, %s3330_s15 }
  0xe9   : > { %642 = vst.msk [vmem:[#allocation3 + $0x98] sm:$0xff] %vm622_vm3, %v565_v63 }
  0xea   : > { %v569_v41 = vpop.permute.xlu0 %568  ;;  %v579_v59 = vpop.permute.xlu2 %578 }
  0xeb   : > { %644 = vst.msk [vmem:[#allocation3 + $0xa8] sm:$0xff] %vm622_vm3, %v569_v41 }
  0xec   : > { %649 = vst.msk [vmem:[#allocation3 + $0xd0] sm:$0xff] %vm622_vm3, %v579_v59 }
  0xee   : > { %915 = vrot.lane.b32.xlu1 %v3656_v3, %s3331_s16 }
  0xf0   : > { %919 = vrot.lane.b32.xlu0 %v3644_v62, %s3331_s16  ;;  %v571_v58 = vpop.permute.xlu1 %570  ;;  %779 = vrot.lane.b32.xlu2 %v685_v16, %s3330_s15  ;;  %s4423_s15 = scalar_lea.vmem %s5045_s5, %s3452_s11  ;;  %s4861_s11 = sand.u32 1, %s3318_s22  }
  0xf1   : > { %645 = vst.msk [vmem:[#allocation3 + $0xb0] sm:$0xff] %vm622_vm3, %v571_v58  ;;  %s2877_s9 = scalar_lea.sflag [#allocation7], %s4861_s11 }
  0xf2   : > { %v575_v0 = vpop.permute.xlu0 %574  ;;  %v585_v14 = vpop.permute.xlu2 %584 }
  0xf3   : > { %647 = vst.msk [vmem:[#allocation3 + $0xc0] sm:$0xff] %vm622_vm3, %v575_v0 }
  0xf4   : > { %652 = vst.msk [vmem:[#allocation3 + $0xe8] sm:$0xff] %vm622_vm3, %v585_v14  ;;  %v361_v14 = vld [vmem:[%s3461_s14 + $0xf0] sm:$0xff] }
  0xf5   : > { %394 = vst.msk [vmem:[#allocation2 + $0x181] sm:$0xff] %vm285_vm0, %v361_v14 }
  0xf6   : > { %921 = vrot.lane.b32.xlu1 %v3666_v6, %s3331_s16 }
  0xf8   : > { %925 = vrot.lane.b32.xlu0 %v3697_v17, %s3331_s16  ;;  %v577_v59 = vpop.permute.xlu1 %576  ;;  %917 = vrot.lane.b32.xlu2 %v3674_v10, %s3331_s16 }
  0xf9   : > { %648 = vst.msk [vmem:[#allocation3 + $0xc8] sm:$0xff] %vm622_vm3, %v577_v59 }
  0xfa   : > { %v581_v3 = vpop.permute.xlu0 %580  ;;  %v720_v63 = vpop.permute.xlu2 %719 }
  0xfb   : > { %650 = vst.msk [vmem:[#allocation3 + $0xd8] sm:$0xff] %vm622_vm3, %v581_v3  ;;  %v362_v3 = vld [vmem:[%s3461_s14 + $0xf8] sm:$0xff] }
  0xfc   : > { %816 = vst.msk [vmem:[#allocation3] sm:$0xff] %vm815_vm4, %v720_v63 }
  0xfd   : > { %395 = vst.msk [vmem:[#allocation2 + $0x189] sm:$0xff] %vm285_vm0, %v362_v3  ;;  %v5098_v3 = vld [vmem:[#allocation20_spill] sm:$0xff] }
  0xfe   : > { %927 = vrot.lane.b32.xlu1 %v3687_v13, %s3331_s16 }
 0x100   : > { %931 = vrot.lane.b32.xlu0 %v3722_v29, %s3331_s16  ;;  %v583_v41 = vpop.permute.xlu1 %582  ;;  %923 = vrot.lane.b32.xlu2 %v3681_v11, %s3331_s16 }
 0x101   : > { %651 = vst.msk [vmem:[#allocation3 + $0xe0] sm:$0xff] %vm622_vm3, %v583_v41 }
 0x102   : > { %v587_v10 = vpop.permute.xlu0 %586  ;;  %v726_v16 = vpop.permute.xlu2 %725 }
 0x103   : > { %653 = vst.msk [vmem:[#allocation3 + $0xf0] sm:$0xff] %vm622_vm3, %v587_v10 }
 0x104   : > { %819 = vst.msk [vmem:[#allocation3 + $0x18] sm:$0xff] %vm815_vm4, %v726_v16 }
 0x106   : > { %933 = vrot.lane.b32.xlu1 %v3712_v23, %s3331_s16 }
 0x108   : > { %937 = vrot.lane.b32.xlu0 %v3747_v42, %s3331_s16  ;;  %v589_v58 = vpop.permute.xlu1 %588  ;;  %929 = vrot.lane.b32.xlu2 %v3705_v19, %s3331_s16 }
 0x109   : > { %654 = vst.msk [vmem:[#allocation3 + $0xf8] sm:$0xff] %vm622_vm3, %v589_v58  ;;  %v881_v58 = vld [vmem:[#allocation2 + $0x180] sm:$0xff] }
 0x10a   : > { %v722_v29 = vpop.permute.xlu0 %721  ;;  %v732_v0 = vpop.permute.xlu2 %731 }
 0x10b   : > { %817 = vst.msk [vmem:[#allocation3 + $0x8] sm:$0xff] %vm815_vm4, %v722_v29  ;;  %v882_v29 = vld [vmem:[#allocation2 + $0x188] sm:$0xff] }
 0x10c   : > { %822 = vst.msk [vmem:[#allocation3 + $0x30] sm:$0xff] %vm815_vm4, %v732_v0 }
 0x10e   : > { %939 = vrot.lane.b32.xlu1 %v3737_v36, %s3331_s16 }
 0x110   : > { %943 = vrot.lane.b32.xlu0 %v3772_v20, %s3331_s16  ;;  %v724_v23 = vpop.permute.xlu1 %723  ;;  %935 = vrot.lane.b32.xlu2 %v3730_v30, %s3331_s16 }
 0x111   : > { %818 = vst.msk [vmem:[#allocation3 + $0x10] sm:$0xff] %vm815_vm4, %v724_v23 }
 0x112   : > { %v728_v19 = vpop.permute.xlu0 %727  ;;  %v738_v42 = vpop.permute.xlu2 %737 }
 0x113   : > { %820 = vst.msk [vmem:[#allocation3 + $0x20] sm:$0xff] %vm815_vm4, %v728_v19  ;;  %v4058_v19 = vld [vmem:[#allocation2 + $0x181] sm:$0xff] }
 0x114   : > { %825 = vst.msk [vmem:[#allocation3 + $0x48] sm:$0xff] %vm815_vm4, %v738_v42  ;;  %v5093_v42 = vld [vmem:[#allocation11_spill] sm:$0xff] }
 0x116   : > { %945 = vrot.lane.b32.xlu1 %v3763_v1, %s3331_s16 }
 0x118   : > { %949 = vrot.lane.b32.xlu0 %v3791_v34, %s3331_s16  ;;  %v730_v36 = vpop.permute.xlu1 %729  ;;  %941 = vrot.lane.b32.xlu2 %v3756_v47, %s3331_s16 }
 0x119   : > { %821 = vst.msk [vmem:[#allocation3 + $0x28] sm:$0xff] %vm815_vm4, %v730_v36  ;;  %v4068_v36 = vld [vmem:[#allocation2 + $0x189] sm:$0xff] }
 0x11a   : > { %v734_v30 = vpop.permute.xlu0 %733  ;;  %v744_v20 = vpop.permute.xlu2 %743 }
 0x11b   : > { %823 = vst.msk [vmem:[#allocation3 + $0x38] sm:$0xff] %vm815_vm4, %v734_v30  ;;  %v5095_v30 = vld [vmem:[#allocation17_spill] sm:$0xff] }
 0x11c   : > { %828 = vst.msk [vmem:[#allocation3 + $0x60] sm:$0xff] %vm815_vm4, %v744_v20 }
 0x11e   : > { %951 = vrot.lane.b32.xlu1 %v3785_v4, %s3331_s16 }
 0x120   : > { %955 = vrot.lane.b32.xlu0 %v3814_v22, %s3331_s16  ;;  %v736_v1 = vpop.permute.xlu1 %735  ;;  %947 = vrot.lane.b32.xlu2 %v3780_v46, %s3331_s16 }
 0x121   : > { %824 = vst.msk [vmem:[#allocation3 + $0x40] sm:$0xff] %vm815_vm4, %v736_v1  ;;  %v5096_v1 = vld [vmem:[#allocation12_spill] sm:$0xff] }
 0x122   : > { %v740_v47 = vpop.permute.xlu0 %739  ;;  %v750_v34 = vpop.permute.xlu2 %749 }
 0x123   : > { %826 = vst.msk [vmem:[#allocation3 + $0x50] sm:$0xff] %vm815_vm4, %v740_v47 }
 0x124   : > { %831 = vst.msk [vmem:[#allocation3 + $0x78] sm:$0xff] %vm815_vm4, %v750_v34 }
 0x126   : > { %957 = vrot.lane.b32.xlu1 %v3805_v35, %s3331_s16 }
 0x128   : > { %961 = vrot.lane.b32.xlu0 %v3835_v61, %s3331_s16  ;;  %v742_v59 = vpop.permute.xlu1 %741  ;;  %953 = vrot.lane.b32.xlu2 %v3798_v51, %s3331_s16 }
 0x129   : > { %827 = vst.msk [vmem:[#allocation3 + $0x58] sm:$0xff] %vm815_vm4, %v742_v59  ;;  %v5097_v59 = vld [vmem:[#allocation14_spill] sm:$0xff] }
 0x12a   : > { %v746_v46 = vpop.permute.xlu0 %745  ;;  %v756_v63 = vpop.permute.xlu2 %755 }
 0x12b   : > { %829 = vst.msk [vmem:[#allocation3 + $0x68] sm:$0xff] %vm815_vm4, %v746_v46 }
 0x12c   : > { %834 = vst.msk [vmem:[#allocation3 + $0x90] sm:$0xff] %vm815_vm4, %v756_v63  ;;  %v5099_v63 = vld [vmem:[#allocation13_spill] sm:$0xff] }
 0x12e   : > { %963 = vrot.lane.b32.xlu1 %v3827_v40, %s3331_s16 }
 0x130   : > { %967 = vrot.lane.b32.xlu0 %v3854_v5, %s3331_s16  ;;  %v748_v61 = vpop.permute.xlu1 %747  ;;  %959 = vrot.lane.b32.xlu2 %v3822_v9, %s3331_s16 }
 0x131   : > { %830 = vst.msk [vmem:[#allocation3 + $0x70] sm:$0xff] %vm815_vm4, %v748_v61 }
 0x132   : > { %v752_v41 = vpop.permute.xlu0 %751  ;;  %v762_v10 = vpop.permute.xlu2 %761 }
 0x133   : > { %832 = vst.msk [vmem:[#allocation3 + $0x80] sm:$0xff] %vm815_vm4, %v752_v41 }
 0x134   : > { %837 = vst.msk [vmem:[#allocation3 + $0xa8] sm:$0xff] %vm815_vm4, %v762_v10  ;;  %v5100_v10 = vld [vmem:[#allocation16_spill] sm:$0xff] }
 0x136   : > { %969 = vrot.lane.b32.xlu1 %v3848_v24, %s3331_s16 }
 0x138   : > { %973 = vrot.lane.b32.xlu0 %v3868_v8, %s3331_s16  ;;  %v754_v40 = vpop.permute.xlu1 %753  ;;  %965 = vrot.lane.b32.xlu2 %v3843_v12, %s3331_s16 }
 0x139   : > { %833 = vst.msk [vmem:[#allocation3 + $0x88] sm:$0xff] %vm815_vm4, %v754_v40  ;;  %v5101_v40 = vld [vmem:[#allocation23_spill] sm:$0xff] }
 0x13a   : > { %v758_v5 = vpop.permute.xlu0 %757  ;;  %v768_v16 = vpop.permute.xlu2 %767 }
 0x13b   : > { %835 = vst.msk [vmem:[#allocation3 + $0x98] sm:$0xff] %vm815_vm4, %v758_v5 }
 0x13c   : > { %840 = vst.msk [vmem:[#allocation3 + $0xc0] sm:$0xff] %vm815_vm4, %v768_v16  ;;  %v5102_v16 = vld [vmem:[#allocation15_spill] sm:$0xff] }
 0x13e   : > { %975 = vrot.lane.b32.xlu1 %v881_v58, %s3331_s16 }
 0x140   : > { %1108 = vrot.lane.b32.xlu0 %v3478_v7, %s3332_s17  ;;  %v760_v24 = vpop.permute.xlu1 %759  ;;  %971 = vrot.lane.b32.xlu2 %v3861_v28, %s3331_s16 }
 0x141   : > { %836 = vst.msk [vmem:[#allocation3 + $0xa0] sm:$0xff] %vm815_vm4, %v760_v24 }
 0x142   : > { %v764_v12 = vpop.permute.xlu0 %763  ;;  %v774_v8 = vpop.permute.xlu2 %773 }
 0x143   : > { %838 = vst.msk [vmem:[#allocation3 + $0xb0] sm:$0xff] %vm815_vm4, %v764_v12  ;;  %v5103_v12 = vld [vmem:[#allocation19_spill] sm:$0xff] }
 0x144   : > { %843 = vst.msk [vmem:[#allocation3 + $0xd8] sm:$0xff] %vm815_vm4, %v774_v8  ;;  %v5104_v8 = vld [vmem:[#allocation25_spill] sm:$0xff] }
 0x146   : > { %1110 = vrot.lane.b32.xlu1 %v3495_v15, %s3332_s17 }
 0x148   : > { %1114 = vrot.lane.b32.xlu0 %v3528_v27, %s3332_s17  ;;  %v766_v7 = vpop.permute.xlu1 %765  ;;  %977 = vrot.lane.b32.xlu2 %v882_v29, %s3331_s16 }
 0x149   : > { %839 = vst.msk [vmem:[#allocation3 + $0xb8] sm:$0xff] %vm815_vm4, %v766_v7  ;;  %v5105_v7 = vld [vmem:[#allocation18_spill] sm:$0xff] }
 0x14a   : > { %v770_v28 = vpop.permute.xlu0 %769  ;;  %v780_v0 = vpop.permute.xlu2 %779 }
 0x14b   : > { %841 = vst.msk [vmem:[#allocation3 + $0xc8] sm:$0xff] %vm815_vm4, %v770_v28 }
 0x14c   : > { %846 = vst.msk [vmem:[#allocation3 + $0xf0] sm:$0xff] %vm815_vm4, %v780_v0 }
 0x14e   : > { %1116 = vrot.lane.b32.xlu1 %v3501_v18, %s3332_s17 }
 0x150   : > { %1120 = vrot.lane.b32.xlu0 %v3546_v33, %s3332_s17  ;;  %v772_v15 = vpop.permute.xlu1 %771  ;;  %1112 = vrot.lane.b32.xlu2 %v3509_v21, %s3332_s17 }
 0x151   : > { %842 = vst.msk [vmem:[#allocation3 + $0xd0] sm:$0xff] %vm815_vm4, %v772_v15  ;;  %v5106_v15 = vld [vmem:[#allocation22_spill] sm:$0xff] }
 0x152   : > { %v776_v27 = vpop.permute.xlu0 %775  ;;  %v918_v23 = vpop.permute.xlu2 %917 }
 0x153   : > { %844 = vst.msk [vmem:[#allocation3 + $0xe0] sm:$0xff] %vm815_vm4, %v776_v27 }
 0x154   : > { %1013 = vst.msk [vmem:[#allocation3 + $0x8] sm:$0xff] %vm1011_vm5, %v918_v23  ;;  %v5107_v23 = vld [vmem:[#allocation21_spill] sm:$0xff] }
 0x156   : > { %1122 = vrot.lane.b32.xlu1 %v3526_v26, %s3332_s17 }
 0x158   : > { %1126 = vrot.lane.b32.xlu0 %v3564_v39, %s3332_s17  ;;  %v778_v18 = vpop.permute.xlu1 %777  ;;  %1118 = vrot.lane.b32.xlu2 %v3522_v25, %s3332_s17 }
 0x159   : > { %845 = vst.msk [vmem:[#allocation3 + $0xe8] sm:$0xff] %vm815_vm4, %v778_v18 }
 0x15a   : > { %v782_v21 = vpop.permute.xlu0 %781  ;;  %v924_v33 = vpop.permute.xlu2 %923 }
 0x15b   : > { %847 = vst.msk [vmem:[#allocation3 + $0xf8] sm:$0xff] %vm815_vm4, %v782_v21 }
 0x15c   : > { %1016 = vst.msk [vmem:[#allocation3 + $0x20] sm:$0xff] %vm1011_vm5, %v924_v33  ;;  %v1626_v33 = vld [vmem:[#allocation2 + $0x31] sm:$0xff] }
 0x15e   : > { %1128 = vrot.lane.b32.xlu1 %v3544_v32, %s3332_s17 }
 0x160   : > { %1132 = vrot.lane.b32.xlu0 %v3582_v45, %s3332_s17  ;;  %v916_v26 = vpop.permute.xlu1 %915  ;;  %1124 = vrot.lane.b32.xlu2 %v3542_v31, %s3332_s17 }
 0x161   : > { %1012 = vst.msk [vmem:[#allocation3] sm:$0xff] %vm1011_vm5, %v916_v26  ;;  %v5108_v26 = vld [vmem:[#allocation24_spill] sm:$0xff] }
 0x162   : > { %v920_v25 = vpop.permute.xlu0 %919  ;;  %v930_v39 = vpop.permute.xlu2 %929 }
 0x163   : > { %1014 = vst.msk [vmem:[#allocation3 + $0x10] sm:$0xff] %vm1011_vm5, %v920_v25 }
 0x164   : > { %1019 = vst.msk [vmem:[#allocation3 + $0x38] sm:$0xff] %vm1011_vm5, %v930_v39 }
 0x166   : > { %1134 = vrot.lane.b32.xlu1 %v3562_v38, %s3332_s17 }
 0x168   : > { %1138 = vrot.lane.b32.xlu0 %v3598_v50, %s3332_s17  ;;  %v922_v32 = vpop.permute.xlu1 %921  ;;  %1130 = vrot.lane.b32.xlu2 %v3560_v37, %s3332_s17 }
 0x169   : > { %1015 = vst.msk [vmem:[#allocation3 + $0x18] sm:$0xff] %vm1011_vm5, %v922_v32  ;;  %v1627_v32 = vld [vmem:[#allocation2 + $0x39] sm:$0xff] }
 0x16a   : > { %v926_v31 = vpop.permute.xlu0 %925  ;;  %v936_v45 = vpop.permute.xlu2 %935 }
 0x16b   : > { %1017 = vst.msk [vmem:[#allocation3 + $0x28] sm:$0xff] %vm1011_vm5, %v926_v31  ;;  %v1819_v31 = vld [vmem:[#allocation2 + $0x32] sm:$0xff] }
 0x16c   : > { %1022 = vst.msk [vmem:[#allocation3 + $0x50] sm:$0xff] %vm1011_vm5, %v936_v45 }
 0x16e   : > { %1140 = vrot.lane.b32.xlu1 %v3580_v44, %s3332_s17 }
 0x170   : > { %1144 = vrot.lane.b32.xlu0 %v3612_v54, %s3332_s17  ;;  %v928_v38 = vpop.permute.xlu1 %927  ;;  %1136 = vrot.lane.b32.xlu2 %v3578_v43, %s3332_s17 }
 0x171   : > { %1018 = vst.msk [vmem:[#allocation3 + $0x30] sm:$0xff] %vm1011_vm5, %v928_v38 }
 0x172   : > { %v932_v37 = vpop.permute.xlu0 %931  ;;  %v942_v50 = vpop.permute.xlu2 %941 }
 0x173   : > { %1020 = vst.msk [vmem:[#allocation3 + $0x40] sm:$0xff] %vm1011_vm5, %v932_v37  ;;  %v1628_v37 = vld [vmem:[#allocation2 + $0x49] sm:$0xff] }
 0x174   : > { %1025 = vst.msk [vmem:[#allocation3 + $0x68] sm:$0xff] %vm1011_vm5, %v942_v50  ;;  %v1820_v50 = vld [vmem:[#allocation2 + $0x3a] sm:$0xff] }
 0x176   : > { %1146 = vrot.lane.b32.xlu1 %v3596_v49, %s3332_s17 }
 0x178   : > { %1150 = vrot.lane.b32.xlu0 %v3624_v57, %s3332_s17  ;;  %v934_v44 = vpop.permute.xlu1 %933  ;;  %1142 = vrot.lane.b32.xlu2 %v3594_v48, %s3332_s17 }
 0x179   : > { %1021 = vst.msk [vmem:[#allocation3 + $0x48] sm:$0xff] %vm1011_vm5, %v934_v44 }
 0x17a   : > { %v938_v43 = vpop.permute.xlu0 %937  ;;  %v948_v54 = vpop.permute.xlu2 %947 }
 0x17b   : > { %1023 = vst.msk [vmem:[#allocation3 + $0x58] sm:$0xff] %vm1011_vm5, %v938_v43 }
 0x17c   : > { %1028 = vst.msk [vmem:[#allocation3 + $0x80] sm:$0xff] %vm1011_vm5, %v948_v54  ;;  %v1821_v54 = vld [vmem:[#allocation2 + $0x4a] sm:$0xff] }
 0x17e   : > { %1152 = vrot.lane.b32.xlu1 %v3610_v53, %s3332_s17 }
 0x180   : > { %1156 = vrot.lane.b32.xlu0 %v3636_v60, %s3332_s17  ;;  %v940_v49 = vpop.permute.xlu1 %939  ;;  %1148 = vrot.lane.b32.xlu2 %v3608_v52, %s3332_s17 }
 0x181   : > { %1024 = vst.msk [vmem:[#allocation3 + $0x60] sm:$0xff] %vm1011_vm5, %v940_v49  ;;  %v5109_v49 = vld [vmem:[#allocation27_spill] sm:$0xff] }
 0x182   : > { %v944_v48 = vpop.permute.xlu0 %943  ;;  %v954_v57 = vpop.permute.xlu2 %953 }
 0x183   : > { %1026 = vst.msk [vmem:[#allocation3 + $0x70] sm:$0xff] %vm1011_vm5, %v944_v48 }
 0x184   : > { %1031 = vst.msk [vmem:[#allocation3 + $0x98] sm:$0xff] %vm1011_vm5, %v954_v57 }
 0x186   : > { %1158 = vrot.lane.b32.xlu1 %v3622_v56, %s3332_s17 }
 0x188   : > { %1162 = vrot.lane.b32.xlu0 %v3651_v2, %s3332_s17  ;;  %v946_v53 = vpop.permute.xlu1 %945  ;;  %1154 = vrot.lane.b32.xlu2 %v3620_v55, %s3332_s17  ;;  %v5094_v2 = vld [vmem:[#allocation10_spill] sm:$0xff] }
 0x189   : > { %1027 = vst.msk [vmem:[#allocation3 + $0x78] sm:$0xff] %vm1011_vm5, %v946_v53  ;;  %v1822_v53 = vld [vmem:[#allocation2 + $0x52] sm:$0xff] }
 0x18a   : > { %v950_v52 = vpop.permute.xlu0 %949  ;;  %v960_v60 = vpop.permute.xlu2 %959 }
 0x18b   : > { %1029 = vst.msk [vmem:[#allocation3 + $0x88] sm:$0xff] %vm1011_vm5, %v950_v52  ;;  %v1629_v52 = vld [vmem:[#allocation2 + $0x51] sm:$0xff] }
 0x18c   : > { %1034 = vst.msk [vmem:[#allocation3 + $0xb0] sm:$0xff] %vm1011_vm5, %v960_v60  ;;  %v5110_v60 = vld [vmem:[#allocation26_spill] sm:$0xff] }
 0x18e   : > { %1164 = vrot.lane.b32.xlu1 %v5093_v42, %s3332_s17 }
 0x190   : > { %1168 = vrot.lane.b32.xlu0 %v4058_v19, %s3332_s17  ;;  %v952_v56 = vpop.permute.xlu1 %951  ;;  %1160 = vrot.lane.b32.xlu2 %v5094_v2, %s3332_s17  ;;  %v1630_v2 = vld [vmem:[#allocation2 + $0x61] sm:$0xff] }
 0x191   : > { %1030 = vst.msk [vmem:[#allocation3 + $0x90] sm:$0xff] %vm1011_vm5, %v952_v56 }
 0x192   : > { %v956_v55 = vpop.permute.xlu0 %955  ;;  %v966_v14 = vpop.permute.xlu2 %965 }
 0x193   : > { %1032 = vst.msk [vmem:[#allocation3 + $0xa0] sm:$0xff] %vm1011_vm5, %v956_v55  ;;  %v1642_v55 = vld [vmem:[#allocation2 + $0xf1] sm:$0xff] }
 0x194   : > { %1037 = vst.msk [vmem:[#allocation3 + $0xc8] sm:$0xff] %vm1011_vm5, %v966_v14 }
 0x196   : > { %1170 = vrot.lane.b32.xlu1 %v4068_v36, %s3332_s17 }
 0x198   : > { %1303 = vrot.lane.b32.xlu0 %v5095_v30, %s3333_s18  ;;  %v958_v20 = vpop.permute.xlu1 %957  ;;  %1166 = vrot.lane.b32.xlu2 %v5096_v1, %s3332_s17  ;;  %v1643_v1 = vld [vmem:[#allocation2 + $0xf9] sm:$0xff] }
 0x199   : > { %1033 = vst.msk [vmem:[#allocation3 + $0xa8] sm:$0xff] %vm1011_vm5, %v958_v20 }
 0x19a   : > { %v962_v47 = vpop.permute.xlu0 %961  ;;  %v972_v34 = vpop.permute.xlu2 %971 }
 0x19b   : > { %1035 = vst.msk [vmem:[#allocation3 + $0xb8] sm:$0xff] %vm1011_vm5, %v962_v47  ;;  %v4160_v47 = vld [vmem:[#allocation2 + $0xe2] sm:$0xff] }
 0x19c   : > { %1040 = vst.msk [vmem:[#allocation3 + $0xe0] sm:$0xff] %vm1011_vm5, %v972_v34 }
 0x19e   : > { %1305 = vrot.lane.b32.xlu1 %v5097_v59, %s3333_s18 }
 0x1a0   : > { %1309 = vrot.lane.b32.xlu0 %v5098_v3, %s3333_s18  ;;  %v964_v46 = vpop.permute.xlu1 %963  ;;  %1301 = vrot.lane.b32.xlu2 %v5099_v63, %s3333_s18  ;;  %v1823_v3 = vld [vmem:[#allocation2 + $0x62] sm:$0xff] }
 0x1a1   : > { %1036 = vst.msk [vmem:[#allocation3 + $0xc0] sm:$0xff] %vm1011_vm5, %v964_v46  ;;  %v5111_v46 = vld [vmem:[#allocation28_spill] sm:$0xff] }
 0x1a2   : > { %v968_v61 = vpop.permute.xlu0 %967  ;;  %v978_v41 = vpop.permute.xlu2 %977 }
 0x1a3   : > { %1038 = vst.msk [vmem:[#allocation3 + $0xd0] sm:$0xff] %vm1011_vm5, %v968_v61 }
 0x1a4   : > { %1043 = vst.msk [vmem:[#allocation3 + $0xf8] sm:$0xff] %vm1011_vm5, %v978_v41  ;;  %v1631_v41 = vld [vmem:[#allocation2 + $0x69] sm:$0xff] }
 0x1a6   : > { %1311 = vrot.lane.b32.xlu1 %v5100_v10, %s3333_s18  ;;  %v1824_v10 = vld [vmem:[#allocation2 + $0x6a] sm:$0xff] }
 0x1a8   : > { %1315 = vrot.lane.b32.xlu0 %v5101_v40, %s3333_s18  ;;  %v970_v5 = vpop.permute.xlu1 %969  ;;  %1307 = vrot.lane.b32.xlu2 %v5102_v16, %s3333_s18  ;;  %v1438_v40 = vld [vmem:[#allocation2 + $0x68] sm:$0xff] }
 0x1a9   : > { %1039 = vst.msk [vmem:[#allocation3 + $0xd8] sm:$0xff] %vm1011_vm5, %v970_v5 }
 0x1aa   : > { %v974_v58 = vpop.permute.xlu0 %973  ;;  %v1113_v24 = vpop.permute.xlu2 %1112 }
 0x1ab   : > { %1041 = vst.msk [vmem:[#allocation3 + $0xe8] sm:$0xff] %vm1011_vm5, %v974_v58 }
 0x1ac   : > { %1207 = vst.msk [vmem:[#allocation3 + $0x10] sm:$0xff] %vm1204_vm6, %v1113_v24  ;;  %v1644_v24 = vld [vmem:[#allocation2 + $0x109] sm:$0xff] }
 0x1ae   : > { %1317 = vrot.lane.b32.xlu1 %v5103_v12, %s3333_s18  ;;  %v1439_v12 = vld [vmem:[#allocation2 + $0x78] sm:$0xff] }
 0x1b0   : > { %1321 = vrot.lane.b32.xlu0 %v5104_v8, %s3333_s18  ;;  %v976_v29 = vpop.permute.xlu1 %975  ;;  %1313 = vrot.lane.b32.xlu2 %v5105_v7, %s3333_s18 }
 0x1b1   : > { %1042 = vst.msk [vmem:[#allocation3 + $0xf0] sm:$0xff] %vm1011_vm5, %v976_v29 }
 0x1b2   : > { %v1109_v28 = vpop.permute.xlu0 %1108  ;;  %v1119_v0 = vpop.permute.xlu2 %1118 }
 0x1b3   : > { %1205 = vst.msk [vmem:[#allocation3] sm:$0xff] %vm1204_vm6, %v1109_v28  ;;  %v1837_v28 = vld [vmem:[#allocation2 + $0x10a] sm:$0xff] }
 0x1b4   : > { %1210 = vst.msk [vmem:[#allocation3 + $0x28] sm:$0xff] %vm1204_vm6, %v1119_v0 }
 0x1b6   : > { %1323 = vrot.lane.b32.xlu1 %v5106_v15, %s3333_s18 }
 0x1b8   : > { %1497 = vrot.lane.b32.xlu0 %v3644_v62, %s3334_s19  ;;  %v1111_v27 = vpop.permute.xlu1 %1110  ;;  %1319 = vrot.lane.b32.xlu2 %v5107_v23, %s3333_s18  ;;  %v1825_v23 = vld [vmem:[#allocation2 + $0x7a] sm:$0xff] }
 0x1b9   : > { %1206 = vst.msk [vmem:[#allocation3 + $0x8] sm:$0xff] %vm1204_vm6, %v1111_v27 }
 0x1ba   : > { %v1115_v18 = vpop.permute.xlu0 %1114  ;;  %v1125_v21 = vpop.permute.xlu2 %1124 }
 0x1bb   : > { %1208 = vst.msk [vmem:[#allocation3 + $0x18] sm:$0xff] %vm1204_vm6, %v1115_v18  ;;  %v2046_v18 = vld [vmem:[%s5112_s1 + $0x10] sm:$0xff] }
 0x1bc   : > { %1213 = vst.msk [vmem:[#allocation3 + $0x40] sm:$0xff] %vm1204_vm6, %v1125_v21  ;;  %v1838_v21 = vld [vmem:[#allocation2 + $0x112] sm:$0xff] }
 0x1be   : > { %1690 = vrot.lane.b32.xlu1 %v1626_v33, %s3335_s20  ;;  %v1632_v33 = vld [vmem:[#allocation2 + $0x79] sm:$0xff] }
 0x1c0   : > { %1499 = vrot.lane.b32.xlu0 %v3666_v6, %s3334_s19  ;;  %v1117_v62 = vpop.permute.xlu1 %1116  ;;  %1325 = vrot.lane.b32.xlu2 %v5108_v26, %s3333_s18 }
 0x1c1   : > { %1209 = vst.msk [vmem:[#allocation3 + $0x20] sm:$0xff] %vm1204_vm6, %v1117_v62  ;;  %v2045_v62 = vld [vmem:[%s5112_s1 + $0x8] sm:$0xff] }
 0x1c2   : > { %v1121_v25 = vpop.permute.xlu0 %1120  ;;  %v1131_v39 = vpop.permute.xlu2 %1130 }
 0x1c3   : > { %1211 = vst.msk [vmem:[#allocation3 + $0x30] sm:$0xff] %vm1204_vm6, %v1121_v25  ;;  %v2044_v25 = vld [vmem:[%s5112_s1] sm:$0xff] }
 0x1c4   : > { %1216 = vst.msk [vmem:[#allocation3 + $0x58] sm:$0xff] %vm1204_vm6, %v1131_v39 }
 0x1c6   : > { %1692 = vrot.lane.b32.xlu1 %v1627_v32, %s3335_s20 }
 0x1c8   : > { %1501 = vrot.lane.b32.xlu0 %v3681_v11, %s3334_s19  ;;  %v1123_v6 = vpop.permute.xlu1 %1122  ;;  %1883 = vrot.lane.b32.xlu2 %v1819_v31, %s3336_s26  ;;  %v1440_v31 = vld [vmem:[#allocation2 + $0x80] sm:$0xff] }
 0x1c9   : > { %1212 = vst.msk [vmem:[#allocation3 + $0x38] sm:$0xff] %vm1204_vm6, %v1123_v6  ;;  %v1633_v6 = vld [vmem:[#allocation2 + $0x81] sm:$0xff] }
 0x1ca   : > { %v1127_v45 = vpop.permute.xlu0 %1126  ;;  %v1137_v38 = vpop.permute.xlu2 %1136 }
 0x1cb   : > { %1214 = vst.msk [vmem:[#allocation3 + $0x48] sm:$0xff] %vm1204_vm6, %v1127_v45  ;;  %v1645_v45 = vld [vmem:[#allocation2 + $0x111] sm:$0xff] }
 0x1cc   : > { %1219 = vst.msk [vmem:[#allocation3 + $0x70] sm:$0xff] %vm1204_vm6, %v1137_v38 }
 0x1ce   : > { %1694 = vrot.lane.b32.xlu1 %v1628_v37, %s3335_s20 }
 0x1d0   : > { %1503 = vrot.lane.b32.xlu0 %v3697_v17, %s3334_s19  ;;  %v1129_v11 = vpop.permute.xlu1 %1128  ;;  %1885 = vrot.lane.b32.xlu2 %v1820_v50, %s3336_s26 }
 0x1d1   : > { %1215 = vst.msk [vmem:[#allocation3 + $0x50] sm:$0xff] %vm1204_vm6, %v1129_v11  ;;  %v1646_v11 = vld [vmem:[#allocation2 + $0x121] sm:$0xff] }
 0x1d2   : > { %v1133_v44 = vpop.permute.xlu0 %1132  ;;  %v1143_v43 = vpop.permute.xlu2 %1142 }
 0x1d3   : > { %1217 = vst.msk [vmem:[#allocation3 + $0x60] sm:$0xff] %vm1204_vm6, %v1133_v44 }
 0x1d4   : > { %1222 = vst.msk [vmem:[#allocation3 + $0x88] sm:$0xff] %vm1204_vm6, %v1143_v43 }
 0x1d6   : > { %1333 = vrot.lane.b32.xlu1 %v5109_v49, %s3333_s18  ;;  %v1839_v49 = vld [vmem:[#allocation2 + $0x122] sm:$0xff] }
 0x1d8   : > { %1529 = vrot.lane.b32.xlu0 %v3785_v4, %s3334_s19  ;;  %v1135_v48 = vpop.permute.xlu1 %1134  ;;  %1887 = vrot.lane.b32.xlu2 %v1821_v54, %s3336_s26 }
 0x1d9   : > { %1218 = vst.msk [vmem:[#allocation3 + $0x68] sm:$0xff] %vm1204_vm6, %v1135_v48  ;;  %v1826_v48 = vld [vmem:[#allocation2 + $0x82] sm:$0xff] }
 0x1da   : > { %v1139_v17 = vpop.permute.xlu0 %1138  ;;  %v1149_v57 = vpop.permute.xlu2 %1148 }
 0x1db   : > { %1220 = vst.msk [vmem:[#allocation3 + $0x78] sm:$0xff] %vm1204_vm6, %v1139_v17 }
 0x1dc   : > { %1225 = vst.msk [vmem:[#allocation3 + $0xa0] sm:$0xff] %vm1204_vm6, %v1149_v57 }
 0x1de   : > { %1889 = vrot.lane.b32.xlu1 %v1822_v53, %s3336_s26  ;;  %v1634_v53 = vld [vmem:[#allocation2 + $0x91] sm:$0xff] }
 0x1e0   : > { %1915 = vrot.lane.b32.xlu0 %v5110_v60, %s3336_s26  ;;  %v1141_v42 = vpop.permute.xlu1 %1140  ;;  %1696 = vrot.lane.b32.xlu2 %v1629_v52, %s3335_s20  ;;  %v1827_v52 = vld [vmem:[#allocation2 + $0x92] sm:$0xff] }
 0x1e1   : > { %1221 = vst.msk [vmem:[#allocation3 + $0x80] sm:$0xff] %vm1204_vm6, %v1141_v42 }
 0x1e2   : > { %v1145_v4 = vpop.permute.xlu0 %1144  ;;  %v1155_v56 = vpop.permute.xlu2 %1154 }
 0x1e3   : > { %1223 = vst.msk [vmem:[#allocation3 + $0x90] sm:$0xff] %vm1204_vm6, %v1145_v4 }
 0x1e4   : > { %1228 = vst.msk [vmem:[#allocation3 + $0xb8] sm:$0xff] %vm1204_vm6, %v1155_v56 }
 0x1e6   : > { %1505 = vrot.lane.b32.xlu1 %v3687_v13, %s3334_s19 }
 0x1e8   : > { %1698 = vrot.lane.b32.xlu0 %v1630_v2, %s3335_s20  ;;  %v1147_v14 = vpop.permute.xlu1 %1146  ;;  %1722 = vrot.lane.b32.xlu2 %v1642_v55, %s3335_s20  ;;  %v1647_v55 = vld [vmem:[#allocation2 + $0x129] sm:$0xff] }
 0x1e9   : > { %1224 = vst.msk [vmem:[#allocation3 + $0x98] sm:$0xff] %vm1204_vm6, %v1147_v14  ;;  %v1442_v14 = vld [vmem:[#allocation2 + $0x98] sm:$0xff] }
 0x1ea   : > { %v1151_v30 = vpop.permute.xlu0 %1150  ;;  %v1161_v20 = vpop.permute.xlu2 %1160 }
 0x1eb   : > { %1226 = vst.msk [vmem:[#allocation3 + $0xa8] sm:$0xff] %vm1204_vm6, %v1151_v30  ;;  %v1454_v30 = vld [vmem:[#allocation2 + $0x128] sm:$0xff] }
 0x1ec   : > { %1231 = vst.msk [vmem:[#allocation3 + $0xd0] sm:$0xff] %vm1204_vm6, %v1161_v20 }
 0x1ee   : > { %1531 = vrot.lane.b32.xlu1 %v3798_v51, %s3334_s19 }
 0x1f0   : > { %1724 = vrot.lane.b32.xlu0 %v1643_v1, %s3335_s20  ;;  %v1153_v13 = vpop.permute.xlu1 %1152  ;;  %1335 = vrot.lane.b32.xlu2 %v4160_v47, %s3333_s18 }
 0x1f1   : > { %1227 = vst.msk [vmem:[#allocation3 + $0xb0] sm:$0xff] %vm1204_vm6, %v1153_v13  ;;  %v2470_v13 = vld [vmem:[%s5042_s2] sm:$0xf] }
 0x1f2   : > { %v1157_v34 = vpop.permute.xlu0 %1156  ;;  %v1167_v59 = vpop.permute.xlu2 %1166  ;;  %3101 = vmatpush.msk.msra.mxu1 %vm2146_vm8, %v2470_v13  ;;  %3148 = vmatpush.msk.msra.mxu3 %vm2146_vm8, %v2470_v13 }
 0x1f3   : > { %1229 = vst.msk [vmem:[#allocation3 + $0xc0] sm:$0xff] %vm1204_vm6, %v1157_v34 }
 0x1f4   : > { %1234 = vst.msk [vmem:[#allocation3 + $0xe8] sm:$0xff] %vm1204_vm6, %v1167_v59 }
 0x1f6   : > { %1917 = vrot.lane.b32.xlu1 %v5111_v46, %s3336_s26 }
 0x1f8   : > { %1337 = vrot.lane.b32.xlu0 %v5110_v60, %s3333_s18  ;;  %v1159_v51 = vpop.permute.xlu1 %1158  ;;  %1891 = vrot.lane.b32.xlu2 %v1823_v3, %s3336_s26  ;;  %v1441_v60 = vld [vmem:[#allocation2 + $0x90] sm:$0xff]  ;;  %v3202_v3 = vld [vmem:[#allocation2 + $0x19] sm:$0xff] }
 0x1f9   : > { %1230 = vst.msk [vmem:[#allocation3 + $0xc8] sm:$0xff] %vm1204_vm6, %v1159_v51  ;;  %3102 = vmatmul.msk.f32.vlgmr.msra.gmra.mxu1 %vm285_vm0, %v3202_v3  ;;  %v1455_v51 = vld [vmem:[#allocation2 + $0x138] sm:$0xff] }
 0x1fa   : > { %v1163_v63 = vpop.permute.xlu0 %1162  ;;  %v1302_v61 = vpop.permute.xlu2 %1301  ;;  %v1458_v3 = vld [vmem:[#allocation2 + $0x158] sm:$0xff] }
 0x1fb   : > { %1232 = vst.msk [vmem:[#allocation3 + $0xd8] sm:$0xff] %vm1204_vm6, %v1163_v63  ;;  %v1840_v63 = vld [vmem:[#allocation2 + $0x12a] sm:$0xff] }
 0x1fc   : > { %1398 = vst.msk [vmem:[#allocation3] sm:$0xff] %vm1397_vm7, %v1302_v61 }
 0x1fe   : > { %1700 = vrot.lane.b32.xlu1 %v1631_v41, %s3335_s20 }
 0x200   : > { %1893 = vrot.lane.b32.xlu0 %v1824_v10, %s3336_s26  ;;  %v1165_v5 = vpop.permute.xlu1 %1164  ;;  %1507 = vrot.lane.b32.xlu2 %v1438_v40, %s3334_s19 }
 0x201   : > { %1233 = vst.msk [vmem:[#allocation3 + $0xe0] sm:$0xff] %vm1204_vm6, %v1165_v5  ;;  %v1828_v5 = vld [vmem:[#allocation2 + $0x9a] sm:$0xff] }
 0x202   : > { %v1169_v16 = vpop.permute.xlu0 %1168  ;;  %v1308_v58 = vpop.permute.xlu2 %1307 }
 0x203   : > { %1235 = vst.msk [vmem:[#allocation3 + $0xf0] sm:$0xff] %vm1204_vm6, %v1169_v16  ;;  %v3204_v16 = vld [vmem:[#allocation2 + $0x21] sm:$0xff] }
 0x204   : > { %1401 = vst.msk [vmem:[#allocation3 + $0x18] sm:$0xff] %vm1397_vm7, %v1308_v58  ;;  %3103 = vmatmul.msk.f32.gmra.mxu1 %vm285_vm0, %v3204_v16  ;;  %v3205_v58 = vld [vmem:[#allocation2 + $0xf1] sm:$0xff]  ;;  %v4335_v16 = vld [vmem:[#allocation2 + $0x15a] sm:$0xff] }
 0x206   : > { %1726 = vrot.lane.b32.xlu1 %v1644_v24, %s3335_s20  ;;  %v1841_v24 = vld [vmem:[#allocation2 + $0x13a] sm:$0xff] }
 0x208   : > { %1509 = vrot.lane.b32.xlu0 %v1439_v12, %s3334_s19  ;;  %v1171_v8 = vpop.permute.xlu1 %1170  ;;  %1533 = vrot.lane.b32.xlu2 %v3814_v22, %s3334_s19  ;;  %v2048_v22 = vld [vmem:[%s5112_s1 + $0x20] sm:$0xf] }
 0x209   : > { %1236 = vst.msk [vmem:[#allocation3 + $0xf8] sm:$0xff] %vm1204_vm6, %v1171_v8  ;;  %3068 = vmatpush.msk.msra.mxu0 %vm2146_vm8, %v2048_v22  ;;  %3143 = vmatpush.msk.msra.mxu2 %vm2146_vm8, %v2048_v22  ;;  %v1635_v12 = vld [vmem:[#allocation2 + $0x99] sm:$0xff] }
 0x20a   : > { %v1304_v29 = vpop.permute.xlu0 %1303  ;;  %v1314_v7 = vpop.permute.xlu2 %1313  ;;  %v3207_v22 = vld [vmem:[#allocation2 + $0xf9] sm:$0xff] }
 0x20b   : > { %1399 = vst.msk [vmem:[#allocation3 + $0x8] sm:$0xff] %vm1397_vm7, %v1304_v29 }
 0x20c   : > { %1404 = vst.msk [vmem:[#allocation3 + $0x30] sm:$0xff] %vm1397_vm7, %v1314_v7 }
 0x20e   : > { %1339 = vrot.lane.b32.xlu1 %v5111_v46, %s3333_s18  ;;  %v3203_v46 = vld [vmem:[#allocation2 + $0xe1] sm:$0xff] }
 0x20f   : > { %3119 = vmatmul.msk.f32.vlgmr.msra.gmra.mxu3 %vm285_vm0, %v3203_v46  ;;  %v1843_v46 = vld [vmem:[#allocation2 + $0x152] sm:$0xff] }
 0x210   : > { %1535 = vrot.lane.b32.xlu0 %v3805_v35, %s3334_s19  ;;  %v1306_v0 = vpop.permute.xlu1 %1305  ;;  %1919 = vrot.lane.b32.xlu2 %v1837_v28, %s3336_s26  ;;  %v2047_v35 = vld [vmem:[%s5112_s1 + $0x18] sm:$0xff] }
 0x211   : > { %1400 = vst.msk [vmem:[#allocation3 + $0x10] sm:$0xff] %vm1397_vm7, %v1306_v0  ;;  %2162 = vmatpush.msra.mxu0 %v2047_v35  ;;  %3144 = vmatpush.msra.mxu2 %v2047_v35  ;;  %v3206_v0 = vld [vmem:[#allocation2 + $0x31] sm:$0xff] }
 0x212   : > { %v1310_v15 = vpop.permute.xlu0 %1309  ;;  %v1320_v27 = vpop.permute.xlu2 %1319  ;;  %3104 = vmatmul.msk.f32.gmra.mxu1 %vm285_vm0, %v3206_v0 }
 0x213   : > { %1402 = vst.msk [vmem:[#allocation3 + $0x20] sm:$0xff] %vm1397_vm7, %v1310_v15  ;;  %2163 = vmatpush.msra.mxu0 %v2046_v18  ;;  %3145 = vmatpush.msra.mxu2 %v2046_v18  ;;  %v1636_v15 = vld [vmem:[#allocation2 + $0xa9] sm:$0xff] }
 0x214   : > { %1407 = vst.msk [vmem:[#allocation3 + $0x48] sm:$0xff] %vm1397_vm7, %v1320_v27  ;;  %v1648_v27 = vld [vmem:[#allocation2 + $0x139] sm:$0xff] }
 0x215   : > { %2164 = vmatpush.msra.mxu0 %v2045_v62  ;;  %3146 = vmatpush.msra.mxu2 %v2045_v62  ;;  %v1456_v62 = vld [vmem:[#allocation2 + $0x140] sm:$0xff] }
 0x216   : > { %1895 = vrot.lane.b32.xlu1 %v1825_v23, %s3336_s26 }
 0x217   : > { %2165 = vmatpush.msra.mxu0 %v2044_v25  ;;  %3147 = vmatpush.msra.mxu2 %v2044_v25  ;;  %v3209_v25 = vld [vmem:[#allocation2 + $0x109] sm:$0xff] }
 0x218   : > { %1921 = vrot.lane.b32.xlu0 %v1838_v21, %s3336_s26  ;;  %v1312_v26 = vpop.permute.xlu1 %1311  ;;  %1702 = vrot.lane.b32.xlu2 %v1632_v33, %s3335_s20 }
 0x219   : > { %1403 = vst.msk [vmem:[#allocation3 + $0x28] sm:$0xff] %vm1397_vm7, %v1312_v26  ;;  %3120 = vmatmul.msk.f32.gmra.mxu3 %vm285_vm0, %v3205_v58  ;;  %v3208_v26 = vld [vmem:[#allocation2 + $0x39] sm:$0xff]  ;;  %v1638_v58 = vld [vmem:[#allocation2 + $0xc1] sm:$0xff] }
 0x21a   : > { %v1316_v39 = vpop.permute.xlu0 %1315  ;;  %v1326_v32 = vpop.permute.xlu2 %1325  ;;  %3105 = vmatmul.msk.f32.gmra.mxu1 %vm285_vm0, %v3208_v26 }
 0x21b   : > { %1405 = vst.msk [vmem:[#allocation3 + $0x38] sm:$0xff] %vm1397_vm7, %v1316_v39  ;;  %v1649_v39 = vld [vmem:[#allocation2 + $0x141] sm:$0xff] }
 0x21c   : > { %1410 = vst.msk [vmem:[#allocation3 + $0x60] sm:$0xff] %vm1397_vm7, %v1326_v32 }
 0x21e   : > { %1511 = vrot.lane.b32.xlu1 %v1440_v31, %s3334_s19 }
 0x220   : > { %1704 = vrot.lane.b32.xlu0 %v1633_v6, %s3335_s20  ;;  %v1318_v38 = vpop.permute.xlu1 %1317  ;;  %1728 = vrot.lane.b32.xlu2 %v1645_v45, %s3335_s20 }
 0x221   : > { %1406 = vst.msk [vmem:[#allocation3 + $0x40] sm:$0xff] %vm1397_vm7, %v1318_v38  ;;  %3121 = vmatmul.msk.f32.gmra.mxu3 %vm285_vm0, %v3207_v22  ;;  %v1842_v38 = vld [vmem:[#allocation2 + $0x142] sm:$0xff] }
 0x222   : > { %v1322_v37 = vpop.permute.xlu0 %1321  ;;  %v1884_v50 = vpop.permute.xlu2 %1883 }
 0x223   : > { %1408 = vst.msk [vmem:[#allocation3 + $0x50] sm:$0xff] %vm1397_vm7, %v1322_v37  ;;  %v3210_v37 = vld [vmem:[#allocation2 + $0x49] sm:$0xff] }
 0x224   : > { %3106 = vmatmul.msk.f32.gmra.mxu1 %vm285_vm0, %v3210_v37 }
 0x226   : > { %1537 = vrot.lane.b32.xlu1 %v3822_v9, %s3334_s19 }
 0x228   : > { %1730 = vrot.lane.b32.xlu0 %v1646_v11, %s3335_s20  ;;  %v1324_v44 = vpop.permute.xlu1 %1323  ;;  %1341 = vrot.lane.b32.xlu2 %v1837_v28, %s3333_s18  ;;  %v1443_v28 = vld [vmem:[#allocation2 + $0xa8] sm:$0xff] }
 0x229   : > { %1409 = vst.msk [vmem:[#allocation3 + $0x58] sm:$0xff] %vm1397_vm7, %v1324_v44  ;;  %3122 = vmatmul.msk.f32.gmra.mxu3 %vm285_vm0, %v3209_v25  ;;  %v1829_v11 = vld [vmem:[#allocation2 + $0xaa] sm:$0xff] }
 0x22a   : > { %v1498_v43 = vpop.permute.xlu0 %1497  ;;  %v1886_v54 = vpop.permute.xlu2 %1885 }
 0x22b   : > { %1594 = vst.msk [vmem:[#allocation3] sm:$0xff] %vm1593_vm9, %v1498_v43 }
 0x22e   : > { %1923 = vrot.lane.b32.xlu1 %v1839_v49, %s3336_s26 }
 0x230   : > { %1343 = vrot.lane.b32.xlu0 %v1838_v21, %s3333_s18  ;;  %v1691_v9 = vpop.permute.xlu1 %1690  ;;  %1897 = vrot.lane.b32.xlu2 %v1826_v48, %s3336_s26  ;;  %v3212_v48 = vld [vmem:[#allocation2 + $0x51] sm:$0xff] }
 0x231   : > { %1787 = vst.msk [vmem:[#allocation3] sm:$0xff] %vm1786_vm10, %v1691_v9  ;;  %3107 = vmatmul.msk.f32.gmra.mxu1 %vm285_vm0, %v3212_v48  ;;  %v3213_v9 = vld [vmem:[#allocation2 + $0x121] sm:$0xff]  ;;  %v1845_v48 = vld [vmem:[#allocation2 + $0x16a] sm:$0xff] }
 0x232   : > { %1980 = vst.msk [vmem:[#allocation3] sm:$0xff] %vm1979_vm11, %v1884_v50  ;;  %v1500_v17 = vpop.permute.xlu0 %1499  ;;  %v1888_v57 = vpop.permute.xlu2 %1887  ;;  %v3211_v50 = vld [vmem:[#allocation2 + $0x111] sm:$0xff] }
 0x233   : > { %1595 = vst.msk [vmem:[#allocation3 + $0x8] sm:$0xff] %vm1593_vm9, %v1500_v17  ;;  %3123 = vmatmul.msk.f32.gmra.mxu3 %vm285_vm0, %v3211_v50  ;;  %v4305_v17 = vld [vmem:[#allocation2 + $0xb2] sm:$0xff] }
 0x236   : > { %1706 = vrot.lane.b32.xlu1 %v1634_v53, %s3335_s20 }
 0x238   : > { %1899 = vrot.lane.b32.xlu0 %v1827_v52, %s3336_s26  ;;  %v1693_v42 = vpop.permute.xlu1 %1692  ;;  %1513 = vrot.lane.b32.xlu2 %v1441_v60, %s3334_s19 }
 0x239   : > { %1788 = vst.msk [vmem:[#allocation3 + $0x8] sm:$0xff] %vm1786_vm10, %v1693_v42  ;;  %v2012_v4 = vld [vmem:[#allocation3] sm:$0xff] }
 0x23a   : > { %1981 = vst.msk [vmem:[#allocation3 + $0x8] sm:$0xff] %vm1979_vm11, %v1886_v54  ;;  %v1502_v56 = vpop.permute.xlu0 %1501  ;;  %3069 = vmatmul.msk.f32.vlgmr.msra.gmra.mxu0 %vm2049_vm12, %v2012_v4  ;;  %v1697_v2 = vpop.permute.xlu2 %1696  ;;  %v1650_v4 = vld [vmem:[#allocation2 + $0x151] sm:$0xff] }
 0x23b   : > { %1596 = vst.msk [vmem:[#allocation3 + $0x10] sm:$0xff] %vm1593_vm9, %v1502_v56  ;;  %3124 = vmatmul.msk.f32.gmra.mxu3 %vm285_vm0, %v3213_v9  ;;  %v3214_v56 = vld [vmem:[#allocation2 + $0x61] sm:$0xff] }
 0x23c   : > { %3108 = vmatmul.msk.f32.gmra.mxu1 %vm285_vm0, %v3214_v56 }
 0x23e   : > { %1732 = vrot.lane.b32.xlu1 %v1647_v55, %s3335_s20  ;;  %v1445_v55 = vld [vmem:[#allocation2 + $0xc0] sm:$0xff] }
 0x240   : > { %1515 = vrot.lane.b32.xlu0 %v1442_v14, %s3334_s19  ;;  %v1695_v20 = vpop.permute.xlu1 %1694  ;;  %1539 = vrot.lane.b32.xlu2 %v1454_v30, %s3334_s19  ;;  %v1457_v14 = vld [vmem:[#allocation2 + $0x150] sm:$0xff] }
 0x241   : > { %1789 = vst.msk [vmem:[#allocation3 + $0x10] sm:$0xff] %vm1786_vm10, %v1695_v20  ;;  %v2013_v1 = vld [vmem:[#allocation3 + $0x8] sm:$0xff] }
 0x242   : > { %1982 = vst.msk [vmem:[#allocation3 + $0x10] sm:$0xff] %vm1979_vm11, %v1888_v57  ;;  %v1504_v34 = vpop.permute.xlu0 %1503  ;;  %3070 = vmatmul.msk.f32.gmra.mxu0 %vm2049_vm12, %v2013_v1  ;;  %v1723_v59 = vpop.permute.xlu2 %1722  ;;  %v1444_v57 = vld [vmem:[#allocation2 + $0xb0] sm:$0xff] }
 0x243   : > { %1597 = vst.msk [vmem:[#allocation3 + $0x18] sm:$0xff] %vm1593_vm9, %v1504_v34  ;;  %v3216_v34 = vld [vmem:[#allocation2 + $0x69] sm:$0xff] }
 0x244   : > { %1790 = vst.msk [vmem:[#allocation3 + $0x18] sm:$0xff] %vm1786_vm10, %v1697_v2  ;;  %v3215_v2 = vld [vmem:[#allocation2 + $0x129] sm:$0xff]  ;;  %3109 = vmatmul.msk.f32.gmra.mxu1 %vm285_vm0, %v3216_v34 }
 0x245   : > { %3125 = vmatmul.msk.f32.gmra.mxu3 %vm285_vm0, %v3215_v2 }
 0x246   : > { %1345 = vrot.lane.b32.xlu1 %v1839_v49, %s3333_s18  ;;  %v1637_v49 = vld [vmem:[#allocation2 + $0xb1] sm:$0xff] }
 0x248   : > { %1541 = vrot.lane.b32.xlu0 %v1455_v51, %s3334_s19  ;;  %v1334_v61 = vpop.permute.xlu1 %1333  ;;  %1925 = vrot.lane.b32.xlu2 %v1840_v63, %s3336_s26 }
 0x249   : > { %1414 = vst.msk [vmem:[#allocation3 + $0x80] sm:$0xff] %vm1397_vm7, %v1334_v61  ;;  %v2014_v41 = vld [vmem:[#allocation3 + $0x10] sm:$0xff] }
 0x24a   : > { %v1530_v10 = vpop.permute.xlu0 %1529  ;;  %3071 = vmatmul.msk.f32.gmra.mxu0 %vm2049_vm12, %v2014_v41  ;;  %v1336_v40 = vpop.permute.xlu2 %1335 }
 0x24b   : > { %1610 = vst.msk [vmem:[#allocation3 + $0x80] sm:$0xff] %vm1593_vm9, %v1530_v10  ;;  %v1831_v10 = vld [vmem:[#allocation2 + $0xc2] sm:$0xff] }
 0x24c   : > { %1803 = vst.msk [vmem:[#allocation3 + $0x80] sm:$0xff] %vm1786_vm10, %v1723_v59  ;;  %v3217_v59 = vld [vmem:[#allocation2 + $0x139] sm:$0xff] }
 0x24d   : > { %1415 = vst.msk [vmem:[#allocation3 + $0x88] sm:$0xff] %vm1397_vm7, %v1336_v40  ;;  %3126 = vmatmul.msk.f32.gmra.mxu3 %vm285_vm0, %v3217_v59  ;;  %v3218_v40 = vld [vmem:[#allocation2 + $0x79] sm:$0xff] }
 0x24e   : > { %1901 = vrot.lane.b32.xlu1 %v1828_v5, %s3336_s26  ;;  %3110 = vmatmul.msk.f32.gmra.mxu1 %vm285_vm0, %v3218_v40  ;;  %v3219_v5 = vld [vmem:[#allocation2 + $0x141] sm:$0xff] }
 0x250   : > { %1927 = vrot.lane.b32.xlu0 %v1841_v24, %s3336_s26  ;;  %v1890_v8 = vpop.permute.xlu1 %1889  ;;  %1708 = vrot.lane.b32.xlu2 %v1635_v12, %s3335_s20 }
 0x251   : > { %1983 = vst.msk [vmem:[#allocation3 + $0x18] sm:$0xff] %vm1979_vm11, %v1890_v8 }
 0x252   : > { %v1916_v29 = vpop.permute.xlu0 %1915  ;;  %v1892_v7 = vpop.permute.xlu2 %1891 }
 0x253   : > { %1996 = vst.msk [vmem:[#allocation3 + $0x80] sm:$0xff] %vm1979_vm11, %v1916_v29  ;;  %v3220_v29 = vld [vmem:[#allocation2 + $0x81] sm:$0xff] }
 0x255   : > { %3127 = vmatmul.msk.f32.gmra.mxu3 %vm285_vm0, %v3219_v5 }
 0x256   : > { %1517 = vrot.lane.b32.xlu1 %v1443_v28, %s3334_s19  ;;  %3111 = vmatmul.msk.f32.gmra.mxu1 %vm285_vm0, %v3220_v29  ;;  %v1651_v28 = vld [vmem:[#allocation2 + $0x159] sm:$0xff] }
 0x258   : > { %1710 = vrot.lane.b32.xlu0 %v1636_v15, %s3335_s20  ;;  %v1506_v35 = vpop.permute.xlu1 %1505  ;;  %v2015_v23 = vld [vmem:[#allocation3 + $0x18] sm:$0xff]  ;;  %1734 = vrot.lane.b32.xlu2 %v1648_v27, %s3335_s20 }
 0x259   : > { %1598 = vst.msk [vmem:[#allocation3 + $0x20] sm:$0xff] %vm1593_vm9, %v1506_v35  ;;  %3072 = vmatmul.msk.f32.gmra.mxu0 %vm2049_vm12, %v2015_v23  ;;  %v1639_v23 = vld [vmem:[#allocation2 + $0xc9] sm:$0xff] }
 0x25a   : > { %v1699_v18 = vpop.permute.xlu0 %1698  ;;  %v2028_v21 = vld [vmem:[#allocation3 + $0x80] sm:$0xff]  ;;  %v1508_v33 = vpop.permute.xlu2 %1507 }
 0x25b   : > { %1791 = vst.msk [vmem:[#allocation3 + $0x20] sm:$0xff] %vm1786_vm10, %v1699_v18  ;;  %3085 = vmatmul.msk.f32.vlgmr.msra.gmra.mxu2 %vm2049_vm12, %v2028_v21  ;;  %v3222_v18 = vld [vmem:[#allocation2 + $0x91] sm:$0xff]  ;;  %v3223_v21 = vld [vmem:[#allocation2 + $0x159] sm:$0xff] }
 0x25c   : > { %1984 = vst.msk [vmem:[#allocation3 + $0x20] sm:$0xff] %vm1979_vm11, %v1892_v7  ;;  %v3221_v7 = vld [vmem:[#allocation2 + $0x151] sm:$0xff] }
 0x25d   : > { %1599 = vst.msk [vmem:[#allocation3 + $0x28] sm:$0xff] %vm1593_vm9, %v1508_v33  ;;  %3128 = vmatmul.msk.f32.gmra.mxu3 %vm285_vm0, %v3221_v7  ;;  %v4357_v33 = vld [vmem:[#allocation2 + $0xca] sm:$0xff]  ;;  %v3231_v7 = vld [vmem:[#allocation2 + $0xd9] sm:$0xff] }
 0x25e   : > { %1543 = vrot.lane.b32.xlu1 %v1456_v62, %s3334_s19  ;;  %3112 = vmatmul.msk.f32.gmra.mxu1 %vm285_vm0, %v3222_v18  ;;  %v1446_v62 = vld [vmem:[#allocation2 + $0xc8] sm:$0xff] }
 0x260   : > { %1736 = vrot.lane.b32.xlu0 %v1649_v39, %s3335_s20  ;;  %v1532_v32 = vpop.permute.xlu1 %1531  ;;  %1347 = vrot.lane.b32.xlu2 %v1840_v63, %s3333_s18 }
 0x261   : > { %1611 = vst.msk [vmem:[#allocation3 + $0x88] sm:$0xff] %vm1593_vm9, %v1532_v32 }
 0x262   : > { %v1725_v31 = vpop.permute.xlu0 %1724  ;;  %v1534_v6 = vpop.permute.xlu2 %1533 }
 0x263   : > { %1804 = vst.msk [vmem:[#allocation3 + $0x88] sm:$0xff] %vm1786_vm10, %v1725_v31  ;;  %v2016_v45 = vld [vmem:[#allocation3 + $0x20] sm:$0xff] }
 0x264   : > { %3073 = vmatmul.msk.f32.gmra.mxu0 %vm2049_vm12, %v2016_v45  ;;  %v1652_v31 = vld [vmem:[#allocation2 + $0x169] sm:$0xff] }
 0x265   : > { %3129 = vmatmul.msk.f32.gmra.mxu3 %vm285_vm0, %v3223_v21  ;;  %v3225_v45 = vld [vmem:[#allocation2 + $0x169] sm:$0xff] }
 0x266   : > { %1929 = vrot.lane.b32.xlu1 %v1842_v38, %s3336_s26 }
 0x268   : > { %1349 = vrot.lane.b32.xlu0 %v1841_v24, %s3333_s18  ;;  %v1918_v44 = vpop.permute.xlu1 %1917  ;;  %1903 = vrot.lane.b32.xlu2 %v1829_v11, %s3336_s26 }
 0x269   : > { %1997 = vst.msk [vmem:[#allocation3 + $0x88] sm:$0xff] %vm1979_vm11, %v1918_v44  ;;  %v1447_v44 = vld [vmem:[#allocation2 + $0xd8] sm:$0xff] }
 0x26a   : > { %v1338_v43 = vpop.permute.xlu0 %1337  ;;  %v1920_v54 = vpop.permute.xlu2 %1919 }
 0x26b   : > { %1416 = vst.msk [vmem:[#allocation3 + $0x90] sm:$0xff] %vm1397_vm7, %v1338_v43  ;;  %v3226_v43 = vld [vmem:[#allocation2 + $0xa9] sm:$0xff] }
 0x26c   : > { %1612 = vst.msk [vmem:[#allocation3 + $0x90] sm:$0xff] %vm1593_vm9, %v1534_v6  ;;  %v3224_v6 = vld [vmem:[#allocation2 + $0x99] sm:$0xff] }
 0x26d   : > { %3113 = vmatmul.msk.f32.gmra.mxu1 %vm285_vm0, %v3224_v6  ;;  %3130 = vmatmul.msk.f32.gmra.mxu3 %vm285_vm0, %v3225_v45 }
 0x26e   : > { %1712 = vrot.lane.b32.xlu1 %v1637_v49, %s3335_s20  ;;  %v1640_v49 = vld [vmem:[#allocation2 + $0xd9] sm:$0xff] }
 0x270   : > { %1905 = vrot.lane.b32.xlu0 %v4305_v17, %s3336_s26  ;;  %v1701_v53 = vpop.permute.xlu1 %1700  ;;  %v2029_v52 = vld [vmem:[#allocation3 + $0x88] sm:$0xff]  ;;  %1519 = vrot.lane.b32.xlu2 %v1444_v57, %s3334_s19 }
 0x271   : > { %1792 = vst.msk [vmem:[#allocation3 + $0x28] sm:$0xff] %vm1786_vm10, %v1701_v53  ;;  %3086 = vmatmul.msk.f32.gmra.mxu2 %vm2049_vm12, %v2029_v52  ;;  %v1460_v52 = vld [vmem:[#allocation2 + $0x170] sm:$0xff] }
 0x272   : > { %v1894_v60 = vpop.permute.xlu0 %1893  ;;  %v1703_v42 = vpop.permute.xlu2 %1702 }
 0x273   : > { %1985 = vst.msk [vmem:[#allocation3 + $0x28] sm:$0xff] %vm1979_vm11, %v1894_v60  ;;  %v3228_v60 = vld [vmem:[#allocation2 + $0xb1] sm:$0xff] }
 0x275   : > { %3114 = vmatmul.msk.f32.gmra.mxu1 %vm285_vm0, %v3226_v43 }
 0x276   : > { %1738 = vrot.lane.b32.xlu1 %v1650_v4, %s3335_s20  ;;  %v2555_v5 = vpop.f32.mrf.mxu1 }
 0x277   : > { %2824 = vst.msk [vmem:[%s4423_s15] sm:$0xff] %vm2263_vm13, %v2555_v5 }
 0x278   : > { %1521 = vrot.lane.b32.xlu0 %v1445_v55, %s3334_s19  ;;  %v1727_v30 = vpop.permute.xlu1 %1726  ;;  %1545 = vrot.lane.b32.xlu2 %v1457_v14, %s3334_s19  ;;  %v3229_v14 = vld [vmem:[#allocation2 + $0xc1] sm:$0xff] }
 0x279   : > { %1805 = vst.msk [vmem:[#allocation3 + $0x90] sm:$0xff] %vm1786_vm10, %v1727_v30  ;;  %v1448_v30 = vld [vmem:[#allocation2 + $0xe0] sm:$0xff] }
 0x27a   : > { %1998 = vst.msk [vmem:[#allocation3 + $0x90] sm:$0xff] %vm1979_vm11, %v1920_v54  ;;  %v1510_v20 = vpop.permute.xlu0 %1509  ;;  %v2017_v1 = vld [vmem:[#allocation3 + $0x28] sm:$0xff]  ;;  %v1729_v13 = vpop.permute.xlu2 %1728 }
 0x27b   : > { %1600 = vst.msk [vmem:[#allocation3 + $0x30] sm:$0xff] %vm1593_vm9, %v1510_v20  ;;  %3074 = vmatmul.msk.f32.gmra.mxu0 %vm2049_vm12, %v2017_v1  ;;  %v3227_v54 = vld [vmem:[#allocation2 + $0x171] sm:$0xff]  ;;  %v1833_v20 = vld [vmem:[#allocation2 + $0xda] sm:$0xff] }
 0x27c   : > { %1793 = vst.msk [vmem:[#allocation3 + $0x30] sm:$0xff] %vm1786_vm10, %v1703_v42  ;;  %3131 = vmatmul.msk.f32.gmra.mxu3 %vm285_vm0, %v3227_v54  ;;  %v1653_v42 = vld [vmem:[#allocation2 + $0x171] sm:$0xff] }
 0x27d   : > { %3115 = vmatmul.msk.f32.gmra.mxu1 %vm285_vm0, %v3228_v60 }
 0x27e   : > { %1351 = vrot.lane.b32.xlu1 %v1842_v38, %s3333_s18  ;;  %v1459_v38 = vld [vmem:[#allocation2 + $0x168] sm:$0xff] }
 0x280   : > { %1547 = vrot.lane.b32.xlu0 %v1458_v3, %s3334_s19  ;;  %v1340_v51 = vpop.permute.xlu1 %1339  ;;  %1931 = vrot.lane.b32.xlu2 %v1843_v46, %s3336_s26  ;;  %v3230_v3 = vld [vmem:[#allocation2 + $0xc9] sm:$0xff] }
 0x281   : > { %1417 = vst.msk [vmem:[#allocation3 + $0x98] sm:$0xff] %vm1397_vm7, %v1340_v51  ;;  %v2030_v63 = vld [vmem:[#allocation3 + $0x90] sm:$0xff] }
 0x282   : > { %v1536_v61 = vpop.permute.xlu0 %1535  ;;  %3087 = vmatmul.msk.f32.gmra.mxu2 %vm2049_vm12, %v2030_v63  ;;  %v1342_v41 = vpop.permute.xlu2 %1341 }
 0x283   : > { %1613 = vst.msk [vmem:[#allocation3 + $0x98] sm:$0xff] %vm1593_vm9, %v1536_v61 }
 0x284   : > { %1806 = vst.msk [vmem:[#allocation3 + $0x98] sm:$0xff] %vm1786_vm10, %v1729_v13  ;;  %3132 = vmatmul.msk.f32.gmra.mxu3 %vm285_vm0, %v4058_v19  ;;  %v4394_v19 = vld [vmem:[#allocation2 + $0x172] sm:$0xff] }
 0x285   : > { %1418 = vst.msk [vmem:[#allocation3 + $0xa0] sm:$0xff] %vm1397_vm7, %v1342_v41  ;;  %3116 = vmatmul.msk.f32.gmra.mxu1 %vm285_vm0, %v3229_v14 }
 0x286   : > { %1907 = vrot.lane.b32.xlu1 %v1831_v10, %s3336_s26 }
 0x288   : > { %1933 = vrot.lane.b32.xlu0 %v4335_v16, %s3336_s26  ;;  %v1896_v24 = vpop.permute.xlu1 %1895  ;;  %1714 = vrot.lane.b32.xlu2 %v1638_v58, %s3335_s20 }
 0x289   : > { %1986 = vst.msk [vmem:[#allocation3 + $0x30] sm:$0xff] %vm1979_vm11, %v1896_v24 }
 0x28a   : > { %v1922_v12 = vpop.permute.xlu0 %1921  ;;  %v1898_v8 = vpop.permute.xlu2 %1897 }
 0x28b   : > { %1999 = vst.msk [vmem:[#allocation3 + $0x98] sm:$0xff] %vm1979_vm11, %v1922_v12 }
 0x28c   : > { %3133 = vmatmul.msk.f32.gmra.mxu3 %vm285_vm0, %v4068_v36 }
 0x28d   : > { %3117 = vmatmul.msk.f32.gmra.mxu1 %vm285_vm0, %v3230_v3 }
 0x28e   : > { %1327 = vrot.lane.b32.xlu1 %v4305_v17, %s3333_s18 }
 0x290   : > { %1353 = vrot.lane.b32.xlu0 %v1843_v46, %s3333_s18  ;;  %v1512_v0 = vpop.permute.xlu1 %1511  ;;  %v2018_v22 = vld [vmem:[#allocation3 + $0x30] sm:$0xff]  ;;  %1740 = vrot.lane.b32.xlu2 %v1651_v28, %s3335_s20 }
 0x291   : > { %1601 = vst.msk [vmem:[#allocation3 + $0x38] sm:$0xff] %vm1593_vm9, %v1512_v0  ;;  %3075 = vmatmul.msk.f32.gmra.mxu0 %vm2049_vm12, %v2018_v22  ;;  %v1461_v46 = vld [vmem:[#allocation2 + $0x180] sm:$0xff]  ;;  %v2721_v22 = vmul.f32 %v2555_v5, %v2555_v5 }
 0x292   : > { %v1705_v15 = vpop.permute.xlu0 %1704  ;;  %v2031_v27 = vld [vmem:[#allocation3 + $0x98] sm:$0xff]  ;;  %v1514_v35 = vpop.permute.xlu2 %1513 }
 0x293   : > { %1794 = vst.msk [vmem:[#allocation3 + $0x38] sm:$0xff] %vm1786_vm10, %v1705_v15  ;;  %3088 = vmatmul.msk.f32.gmra.mxu2 %vm2049_vm12, %v2031_v27  ;;  %v4439_v28 = vld [vmem:[#allocation2 + $0x182] sm:$0xff]  ;;  %v2651_v27 = vsel %vm2263_vm13, %v2555_v5, 0.0 }
 0x294   : > { %1987 = vst.msk [vmem:[#allocation3 + $0x38] sm:$0xff] %vm1979_vm11, %v1898_v8  ;;  %v1641_v0 = vld [vmem:[#allocation2 + $0xe1] sm:$0xff] }
 0x295   : > { %1602 = vst.msk [vmem:[#allocation3 + $0x40] sm:$0xff] %vm1593_vm9, %v1514_v35  ;;  %3118 = vmatmul.msk.f32.gmra.mxu1 %vm285_vm0, %v3231_v7 }
 0x296   : > { %1716 = vrot.lane.b32.xlu1 %v1639_v23, %s3335_s20 }
 0x298   : > { %1909 = vrot.lane.b32.xlu0 %v4357_v33, %s3336_s26  ;;  %v1538_v26 = vpop.permute.xlu1 %1537  ;;  %1523 = vrot.lane.b32.xlu2 %v1446_v62, %s3334_s19 }
 0x299   : > { %1614 = vst.msk [vmem:[#allocation3 + $0xa0] sm:$0xff] %vm1593_vm9, %v1538_v26 }
 0x29a   : > { %v1731_v25 = vpop.permute.xlu0 %1730  ;;  %v1540_v39 = vpop.permute.xlu2 %1539 }
 0x29b   : > { %1807 = vst.msk [vmem:[#allocation3 + $0xa0] sm:$0xff] %vm1786_vm10, %v1731_v25  ;;  %v2019_v32 = vld [vmem:[#allocation3 + $0x38] sm:$0xff] }
 0x29c   : > { %3076 = vmatmul.msk.f32.gmra.mxu0 %vm2049_vm12, %v2019_v32 }
 0x29e   : > { %1742 = vrot.lane.b32.xlu1 %v1652_v31, %s3335_s20 }
 0x2a0   : > { %1329 = vrot.lane.b32.xlu0 %v1831_v10, %s3333_s18  ;;  %v1924_v37 = vpop.permute.xlu1 %1923  ;;  %1549 = vrot.lane.b32.xlu2 %v1459_v38, %s3334_s19 }
 0x2a1   : > { %2000 = vst.msk [vmem:[#allocation3 + $0xa0] sm:$0xff] %vm1979_vm11, %v1924_v37 }
 0x2a2   : > { %v1344_v50 = vpop.permute.xlu0 %1343  ;;  %v1926_v11 = vpop.permute.xlu2 %1925 }
 0x2a3   : > { %1419 = vst.msk [vmem:[#allocation3 + $0xa8] sm:$0xff] %vm1397_vm7, %v1344_v50 }
 0x2a4   : > { %1615 = vst.msk [vmem:[#allocation3 + $0xa8] sm:$0xff] %vm1593_vm9, %v1540_v39 }
 0x2a6   : > { %1525 = vrot.lane.b32.xlu1 %v1447_v44, %s3334_s19  ;;  %v1654_v44 = vld [vmem:[#allocation2 + $0x181] sm:$0xff] }
 0x2a8   : > { %1718 = vrot.lane.b32.xlu0 %v1640_v49, %s3335_s20  ;;  %v1707_v9 = vpop.permute.xlu1 %1706  ;;  %v2032_v17 = vld [vmem:[#allocation3 + $0xa0] sm:$0xff]  ;;  %1935 = vrot.lane.b32.xlu2 %v1845_v48, %s3336_s26 }
 0x2a9   : > { %1795 = vst.msk [vmem:[#allocation3 + $0x40] sm:$0xff] %vm1786_vm10, %v1707_v9  ;;  %3089 = vmatmul.msk.f32.gmra.mxu2 %vm2049_vm12, %v2032_v17 }
 0x2aa   : > { %v1900_v57 = vpop.permute.xlu0 %1899  ;;  %v1709_v53 = vpop.permute.xlu2 %1708 }
 0x2ab   : > { %1988 = vst.msk [vmem:[#allocation3 + $0x40] sm:$0xff] %vm1979_vm11, %v1900_v57 }
 0x2ae   : > { %1551 = vrot.lane.b32.xlu1 %v1460_v52, %s3334_s19  ;;  %v1848_v52 = vld [vmem:[#allocation2 + $0x18a] sm:$0xff] }
 0x2b0   : > { %1744 = vrot.lane.b32.xlu0 %v1653_v42, %s3335_s20  ;;  %v1733_v4 = vpop.permute.xlu1 %1732  ;;  %1355 = vrot.lane.b32.xlu2 %v4335_v16, %s3333_s18 }
 0x2b1   : > { %1808 = vst.msk [vmem:[#allocation3 + $0xa8] sm:$0xff] %vm1786_vm10, %v1733_v4  ;;  %v1463_v4 = vld [vmem:[#allocation2 + $0x198] sm:$0xff] }
 0x2b2   : > { %2001 = vst.msk [vmem:[#allocation3 + $0xa8] sm:$0xff] %vm1979_vm11, %v1926_v11  ;;  %v1516_v56 = vpop.permute.xlu0 %1515  ;;  %v2020_v2 = vld [vmem:[#allocation3 + $0x40] sm:$0xff]  ;;  %v1735_v55 = vpop.permute.xlu2 %1734 }
 0x2b3   : > { %1603 = vst.msk [vmem:[#allocation3 + $0x48] sm:$0xff] %vm1593_vm9, %v1516_v56  ;;  %3077 = vmatmul.msk.f32.gmra.mxu0 %vm2049_vm12, %v2020_v2  ;;  %v1655_v11 = vld [vmem:[#allocation2 + $0x189] sm:$0xff] }
 0x2b4   : > { %1796 = vst.msk [vmem:[#allocation3 + $0x48] sm:$0xff] %vm1786_vm10, %v1709_v53  ;;  %v1462_v56 = vld [vmem:[#allocation2 + $0x188] sm:$0xff] }
 0x2b6   : > { %1937 = vrot.lane.b32.xlu1 %v4394_v19, %s3336_s26 }
 0x2b7   : > { %v2167_v1 = vpop.f32.mrf.mxu0 }
 0x2b8   : > { %2438 = vst.msk [vmem:[%s4404_s12] sm:$0xff] %vm2263_vm13, %v2167_v1  ;;  %1527 = vrot.lane.b32.xlu0 %v1448_v30, %s3334_s19  ;;  %v1346_v13 = vpop.permute.xlu1 %1345  ;;  %1911 = vrot.lane.b32.xlu2 %v1833_v20, %s3336_s26  ;;  %v2334_v51 = vmul.f32 %v2167_v1, %v2167_v1  ;;  %v2264_v61 = vsel %vm2263_vm13, %v2167_v1, 0.0 }
 0x2b9   : > { %1420 = vst.msk [vmem:[#allocation3 + $0xb0] sm:$0xff] %vm1397_vm7, %v1346_v13  ;;  %v2033_v36 = vld [vmem:[#allocation3 + $0xa8] sm:$0xff] }
 0x2ba   : > { %v1542_v34 = vpop.permute.xlu0 %1541  ;;  %3090 = vmatmul.msk.f32.gmra.mxu2 %vm2049_vm12, %v2033_v36  ;;  %v1348_v59 = vpop.permute.xlu2 %1347  ;;  %v2366_v58 = vsel %vm2263_vm13, %v2334_v51, 0.0  ;;  %v1656_v51 = vld [vmem:[#allocation2 + $0x199] sm:$0xff] }
 0x2bb   : > { %1616 = vst.msk [vmem:[#allocation3 + $0xb0] sm:$0xff] %vm1593_vm9, %v1542_v34 }
 0x2bc   : > { %1809 = vst.msk [vmem:[#allocation3 + $0xb0] sm:$0xff] %vm1786_vm10, %v1735_v55 }
 0x2bd   : > { %1421 = vst.msk [vmem:[#allocation3 + $0xb8] sm:$0xff] %vm1397_vm7, %v1348_v59 }
 0x2be   : > { %1357 = vrot.lane.b32.xlu1 %v1845_v48, %s3333_s18 }
 0x2bf   : > { %v2170_v63 = vpop.f32.mrf.mxu0 }
 0x2c0   : > { %v2265_v41 = vsel %vm2263_vm13, %v2170_v63, 0.0  ;;  %v2335_v10 = vmul.f32 %v2170_v63, %v2170_v63  ;;  %2439 = vst.msk [vmem:[%s4404_s12 + $0x8] sm:$0xff] %vm2263_vm13, %v2170_v63  ;;  %1553 = vrot.lane.b32.xlu0 %v1461_v46, %s3334_s19  ;;  %v1902_v40 = vpop.permute.xlu1 %1901  ;;  %1331 = vrot.lane.b32.xlu2 %v4357_v33, %s3333_s18  ;;  %v2558_v33 = vpop.f32.mrf.mxu1 }
 0x2c1   : > { %v2266_v16 = vadd.f32 %v2265_v41, %v2264_v61  ;;  %1989 = vst.msk [vmem:[#allocation3 + $0x48] sm:$0xff] %vm1979_vm11, %v1902_v40  ;;  %v2652_v26 = vsel %vm2263_vm13, %v2558_v33, 0.0  ;;  %v2722_v25 = vmul.f32 %v2558_v33, %v2558_v33 }
 0x2c2   : > { %v2367_v24 = vsel %vm2263_vm13, %v2335_v10, 0.0  ;;  %v1928_v12 = vpop.permute.xlu0 %1927  ;;  %v1904_v8 = vpop.permute.xlu2 %1903  ;;  %v2653_v45 = vadd.f32 %v2652_v26, %v2651_v27  ;;  %2825 = vst.msk [vmem:[%s4423_s15 + $0x8] sm:$0xff] %vm2263_vm13, %v2558_v33 }
 0x2c3   : > { %v2368_v29 = vadd.f32 %v2367_v24, %v2366_v58  ;;  %2002 = vst.msk [vmem:[#allocation3 + $0xb0] sm:$0xff] %vm1979_vm11, %v1928_v12  ;;  %v2754_v37 = vsel %vm2263_vm13, %v2722_v25, 0.0 }
 0x2c6   : > { %1913 = vrot.lane.b32.xlu1 %v4160_v47, %s3336_s26  ;;  %v2753_v47 = vsel %vm2263_vm13, %v2721_v22, 0.0 }
 0x2c7   : > { %v2173_v15 = vpop.f32.mrf.mxu0  ;;  %v2755_v50 = vadd.f32 %v2754_v37, %v2753_v47  ;;  %v4523_v37 = vpop.f32.mrf.mxu3 }
 0x2c8   : > { %v2267_v35 = vsel %vm2263_vm13, %v2173_v15, 0.0  ;;  %v2336_v23 = vmul.f32 %v2173_v15, %v2173_v15  ;;  %2440 = vst.msk [vmem:[%s4404_s12 + $0x10] sm:$0xff] %vm2263_vm13, %v2173_v15  ;;  %1939 = vrot.lane.b32.xlu0 %v4439_v28, %s3336_s26  ;;  %v1518_v18 = vpop.permute.xlu1 %1517  ;;  %v2021_v21 = vld [vmem:[#allocation3 + $0x48] sm:$0xff]  ;;  %1720 = vrot.lane.b32.xlu2 %v1641_v0, %s3335_s20  ;;  %v2561_v54 = vpop.f32.mrf.mxu1 }
 0x2c9   : > { %v2268_v62 = vadd.f32 %v2267_v35, %v2266_v16  ;;  %1604 = vst.msk [vmem:[#allocation3 + $0x50] sm:$0xff] %vm1593_vm9, %v1518_v18  ;;  %3078 = vmatmul.msk.f32.gmra.mxu0 %vm2049_vm12, %v2021_v21  ;;  %v2654_v49 = vsel %vm2263_vm13, %v2561_v54, 0.0  ;;  %v2723_v48 = vmul.f32 %v2561_v54, %v2561_v54  ;;  %v1850_v18 = vld [vmem:[#allocation2 + $0x1a2] sm:$0xff]  ;;  %v1849_v21 = vld [vmem:[#allocation2 + $0x19a] sm:$0xff] }
 0x2ca   : > { %v2369_v39 = vsel %vm2263_vm13, %v2336_v23, 0.0  ;;  %v1711_v32 = vpop.permute.xlu0 %1710  ;;  %v2034_v31 = vld [vmem:[#allocation3 + $0xb0] sm:$0xff]  ;;  %v1520_v6 = vpop.permute.xlu2 %1519  ;;  %v2655_v57 = vadd.f32 %v2654_v49, %v2653_v45  ;;  %2826 = vst.msk [vmem:[%s4423_s15 + $0x10] sm:$0xff] %vm2263_vm13, %v2561_v54 }
 0x2cb   : > { %v2370_v38 = vadd.f32 %v2369_v39, %v2368_v29  ;;  %1797 = vst.msk [vmem:[#allocation3 + $0x50] sm:$0xff] %vm1786_vm10, %v1711_v32  ;;  %3091 = vmatmul.msk.f32.gmra.mxu2 %vm2049_vm12, %v2034_v31  ;;  %v2756_v60 = vsel %vm2263_vm13, %v2723_v48, 0.0 }
 0x2cc   : > { %1990 = vst.msk [vmem:[#allocation3 + $0x50] sm:$0xff] %vm1979_vm11, %v1904_v8  ;;  %v2757_v42 = vadd.f32 %v2756_v60, %v2755_v50 }
 0x2cd   : > { %1605 = vst.msk [vmem:[#allocation3 + $0x58] sm:$0xff] %vm1593_vm9, %v1520_v6 }
 0x2ce   : > { %1359 = vrot.lane.b32.xlu1 %v4394_v19, %s3333_s18  ;;  %2841 = vst.msk [vmem:[%s4423_s15 + $0x88] sm:$0xff] %vm2263_vm13, %v4523_v37 }
 0x2cf   : > { %v4543_v48 = vpop.f32.mrf.mxu3 }
 0x2d0   : > { %1748 = vrot.lane.b32.xlu0 %v1655_v11, %s3335_s20  ;;  %v1544_v43 = vpop.permute.xlu1 %1543  ;;  %1746 = vrot.lane.b32.xlu2 %v1654_v44, %s3335_s20  ;;  %v2564_v20 = vpop.f32.mrf.mxu1  ;;  %2842 = vst.msk [vmem:[%s4423_s15 + $0x90] sm:$0xff] %vm2263_vm13, %v4543_v48 }
 0x2d1   : > { %1617 = vst.msk [vmem:[#allocation3 + $0xb8] sm:$0xff] %vm1593_vm9, %v1544_v43  ;;  %v2656_v13 = vsel %vm2263_vm13, %v2564_v20, 0.0  ;;  %v2724_v36 = vmul.f32 %v2564_v20, %v2564_v20 }
 0x2d2   : > { %v1737_v9 = vpop.permute.xlu0 %1736  ;;  %v1546_v17 = vpop.permute.xlu2 %1545  ;;  %v2657_v46 = vadd.f32 %v2656_v13, %v2655_v57  ;;  %2827 = vst.msk [vmem:[%s4423_s15 + $0x18] sm:$0xff] %vm2263_vm13, %v2564_v20 }
 0x2d3   : > { %1810 = vst.msk [vmem:[#allocation3 + $0xb8] sm:$0xff] %vm1786_vm10, %v1737_v9  ;;  %v2022_v53 = vld [vmem:[#allocation3 + $0x50] sm:$0xff]  ;;  %v2758_v63 = vsel %vm2263_vm13, %v2724_v36, 0.0 }
 0x2d4   : > { %3079 = vmatmul.msk.f32.gmra.mxu0 %vm2049_vm12, %v2022_v53  ;;  %v2759_v61 = vadd.f32 %v2758_v63, %v2757_v42 }
 0x2d6   : > { %1941 = vrot.lane.b32.xlu1 %v1848_v52, %s3336_s26  ;;  %v2176_v2 = vpop.f32.mrf.mxu0 }
 0x2d7   : > { %v2269_v55 = vsel %vm2263_vm13, %v2176_v2, 0.0  ;;  %v2337_v19 = vmul.f32 %v2176_v2, %v2176_v2  ;;  %2441 = vst.msk [vmem:[%s4404_s12 + $0x18] sm:$0xff] %vm2263_vm13, %v2176_v2 }
 0x2d8   : > { %v2270_v14 = vadd.f32 %v2269_v55, %v2268_v62  ;;  %1557 = vrot.lane.b32.xlu0 %v1463_v4, %s3334_s19  ;;  %v1930_v30 = vpop.permute.xlu1 %1929  ;;  %1555 = vrot.lane.b32.xlu2 %v1462_v56, %s3334_s19  ;;  %v2567_v5 = vpop.f32.mrf.mxu1 }
 0x2d9   : > { %v2371_v1 = vsel %vm2263_vm13, %v2337_v19, 0.0  ;;  %2003 = vst.msk [vmem:[#allocation3 + $0xb8] sm:$0xff] %vm1979_vm11, %v1930_v30  ;;  %v2658_v58 = vsel %vm2263_vm13, %v2567_v5, 0.0  ;;  %v2725_v24 = vmul.f32 %v2567_v5, %v2567_v5  ;;  %v4559_v55 = vpop.f32.mrf.mxu3 }
 0x2da   : > { %v2372_v34 = vadd.f32 %v2371_v1, %v2370_v38  ;;  %v1350_v59 = vpop.permute.xlu0 %1349  ;;  %v1932_v3 = vpop.permute.xlu2 %1931  ;;  %v2659_v0 = vadd.f32 %v2658_v58, %v2657_v46  ;;  %2828 = vst.msk [vmem:[%s4423_s15 + $0x20] sm:$0xff] %vm2263_vm13, %v2567_v5  ;;  %v1657_v38 = vld [vmem:[#allocation2 + $0x1a1] sm:$0xff] }
 0x2db   : > { %1422 = vst.msk [vmem:[#allocation3 + $0xc0] sm:$0xff] %vm1397_vm7, %v1350_v59  ;;  %v2760_v15 = vsel %vm2263_vm13, %v2725_v24, 0.0 }
 0x2dc   : > { %1618 = vst.msk [vmem:[#allocation3 + $0xc0] sm:$0xff] %vm1593_vm9, %v1546_v17  ;;  %v2761_v35 = vadd.f32 %v2760_v15, %v2759_v61 }
 0x2dd   : > { %2843 = vst.msk [vmem:[%s4423_s15 + $0x98] sm:$0xff] %vm2263_vm13, %v4559_v55 }
 0x2de   : > { %1750 = vrot.lane.b32.xlu1 %v1656_v51, %s3335_s20  ;;  %v4488_v41 = vpop.f32.mrf.mxu2 }
 0x2df   : > { %2454 = vst.msk [vmem:[%s4404_s12 + $0x80] sm:$0xff] %vm2263_vm13, %v4488_v41 }
 0x2e0   : > { %1363 = vrot.lane.b32.xlu0 %v1848_v52, %s3333_s18  ;;  %v1713_v10 = vpop.permute.xlu1 %1712  ;;  %v2035_v40 = vld [vmem:[#allocation3 + $0xb8] sm:$0xff]  ;;  %1361 = vrot.lane.b32.xlu2 %v4439_v28, %s3333_s18  ;;  %v1464_v28 = vld [vmem:[#allocation2 + $0x1a0] sm:$0xff]  ;;  %v2570_v62 = vpop.f32.mrf.mxu1  ;;  %s5068_s18 = sshll.u32 %s4861_s11, 1 }
 0x2e1   : > { %1798 = vst.msk [vmem:[#allocation3 + $0x58] sm:$0xff] %vm1786_vm10, %v1713_v10  ;;  %v2179_v16 = vpop.f32.mrf.mxu0  ;;  %3092 = vmatmul.msk.f32.gmra.mxu2 %vm2049_vm12, %v2035_v40  ;;  %v2660_v47 = vsel %vm2263_vm13, %v2570_v62, 0.0  ;;  %v2726_v26 = vmul.f32 %v2570_v62, %v2570_v62 }
 0x2e2   : > { %v2271_v12 = vsel %vm2263_vm13, %v2179_v16, 0.0  ;;  %v2338_v8 = vmul.f32 %v2179_v16, %v2179_v16  ;;  %2442 = vst.msk [vmem:[%s4404_s12 + $0x20] sm:$0xff] %vm2263_vm13, %v2179_v16  ;;  %v1906_v29 = vpop.permute.xlu0 %1905  ;;  %v1715_v7 = vpop.permute.xlu2 %1714  ;;  %v4513_v31 = vadd.f32 %v2660_v47, %v2659_v0 }
 0x2e3   : > { %v2272_v22 = vadd.f32 %v2271_v12, %v2270_v14  ;;  %1991 = vst.msk [vmem:[#allocation3 + $0x58] sm:$0xff] %vm1979_vm11, %v1906_v29  ;;  %v2762_v6 = vsel %vm2263_vm13, %v2726_v26, 0.0 }
 0x2e4   : > { %v2373_v27 = vsel %vm2263_vm13, %v2338_v8, 0.0  ;;  %v4519_v45 = vadd.f32 %v2762_v6, %v2761_v35  ;;  %2829 = vst.msk [vmem:[%s4423_s15 + $0x28] sm:$0xff] %vm2263_vm13, %v2570_v62 }
 0x2e5   : > { %v2374_v23 = vadd.f32 %v2373_v27, %v2372_v34  ;;  %v4580_v34 = vpop.f32.mrf.mxu3 }
 0x2e6   : > { %1559 = vrot.lane.b32.xlu1 %v1464_v28, %s3334_s19  ;;  %2844 = vst.msk [vmem:[%s4423_s15 + $0xa0] sm:$0xff] %vm2263_vm13, %v4580_v34  ;;  %s269_s19 = scalar_lea.vmem [#allocation6], %s5068_s18  ;;  %s3252_s18 = scalar_lea.hbm %s5046_s6, 4 }
 0x2e7   : > { %s2909_s28 = sshll.u32 %s269_s19, 4  ;;  %s2910_s28 = int_to_ptr.vmem [resolvable:$true] %s2909_s28 }
 0x2e8   : > { %1945 = vrot.lane.b32.xlu0 %v1850_v18, %s3336_s26  ;;  %v1739_v33 = vpop.permute.xlu1 %1738  ;;  %1943 = vrot.lane.b32.xlu2 %v1849_v21, %s3336_s26  ;;  %v4530_v44 = vpop.f32.mrf.mxu1 }
 0x2e9   : > { %1811 = vst.msk [vmem:[#allocation3 + $0xc0] sm:$0xff] %vm1786_vm10, %v1739_v33  ;;  %v2727_v0 = vmul.f32 %v4530_v44, %v4530_v44  ;;  %v2662_v15 = vsel %vm2263_vm13, %v4530_v44, 0.0 }
 0x2ea   : > { %2004 = vst.msk [vmem:[#allocation3 + $0xc0] sm:$0xff] %vm1979_vm11, %v1932_v3  ;;  %v1522_v25 = vpop.permute.xlu0 %1521  ;;  %v2023_v39 = vld [vmem:[#allocation3 + $0x58] sm:$0xff]  ;;  %v1741_v32 = vpop.permute.xlu2 %1740 }
 0x2eb   : > { %1606 = vst.msk [vmem:[#allocation3 + $0x60] sm:$0xff] %vm1593_vm9, %v1522_v25  ;;  %3080 = vmatmul.msk.f32.gmra.mxu0 %vm2049_vm12, %v2023_v39  ;;  %v2764_v21 = vsel %vm2263_vm13, %v2727_v0, 0.0  ;;  %v2663_v39 = vadd.f32 %v2662_v15, %v4513_v31 }
 0x2ec   : > { %1799 = vst.msk [vmem:[#allocation3 + $0x60] sm:$0xff] %vm1786_vm10, %v1715_v7 }
 0x2ed   : > { %2830 = vst.msk [vmem:[%s4423_s15 + $0x30] sm:$0xff] %vm2263_vm13, %v4530_v44  ;;  %v4596_v40 = vpop.f32.mrf.mxu3 }
 0x2ee   : > { %2845 = vst.msk [vmem:[%s4423_s15 + $0xa8] sm:$0xff] %vm2263_vm13, %v4596_v40 }
 0x2f0   : > { %v1352_v50 = vpop.permute.xlu1 %1351  ;;  %1752 = vrot.lane.b32.xlu2 %v1657_v38, %s3335_s20  ;;  %v4550_v52 = vpop.f32.mrf.mxu1  ;;  %s3136_s20 = sshll.u32 %s3393_s25, 1 }
 0x2f1   : > { %1423 = vst.msk [vmem:[#allocation3 + $0xc8] sm:$0xff] %vm1397_vm7, %v1352_v50  ;;  %v2036_v11 = vld [vmem:[#allocation3 + $0xc0] sm:$0xff]  ;;  %v2728_v33 = vmul.f32 %v4550_v52, %v4550_v52  ;;  %v2664_v6 = vsel %vm2263_vm13, %v4550_v52, 0.0  ;;  %v2765_v50 = vadd.f32 %v2764_v21, %v4519_v45  ;;  %s2907_s17 = scalar_lea.hbm %s5046_s6, %s3136_s20 }
 0x2f2   : > { %v1548_v43 = vpop.permute.xlu0 %1547  ;;  %3093 = vmatmul.msk.f32.gmra.mxu2 %vm2049_vm12, %v2036_v11  ;;  %v1524_v54 = vpop.permute.xlu2 %1523  ;;  %2831 = vst.msk [vmem:[%s4423_s15 + $0x38] sm:$0xff] %vm2263_vm13, %v4550_v52  ;;  %s2911_s29 = sshll.u32 %s2907_s17, 4  ;;  %s2912_s29 = int_to_ptr.hbm [resolvable:$true] %s2911_s29 }
 0x2f3   : > { %1619 = vst.msk [vmem:[#allocation3 + $0xc8] sm:$0xff] %vm1593_vm9, %v1548_v43  ;;  %v2766_v31 = vsel %vm2263_vm13, %v2728_v33, 0.0  ;;  %v2665_v43 = vadd.f32 %v2664_v6, %v2663_v39  ;;  %s3246_s10 = sshra.s32 %s2912_s29, 4  ;;  %s3247_s10 = int_to_ptr.hbm [resolvable:$true] %s3246_s10 }
 0x2f4   : > { %1812 = vst.msk [vmem:[#allocation3 + $0xc8] sm:$0xff] %vm1786_vm10, %v1741_v32  ;;  %v4538_v49 = vpop.f32.mrf.mxu2  ;;  %v2767_v45 = vadd.f32 %v2766_v31, %v2765_v50  ;;  %s3248_s13 = scalar_lea.hbm %s3247_s10, 2  ;;  %p3253_p0 = scmp.lt.s32.totalorder %s3247_s10, %s5046_s6 }
 0x2f5   : > { %2455 = vst.msk [vmem:[%s4404_s12 + $0x88] sm:$0xff] %vm2263_vm13, %v4538_v49  ;;  %v4618_v28 = vpop.f32.mrf.mxu3  ;;  %p3249_p11 = scmp.ne.s32.totalorder %s3247_s10, %s3248_s13  ;;  %p3254_p1 = scmp.lt.s32.totalorder %s3252_s18, %s3248_s13 }
 0x2f6   : > { %2846 = vst.msk [vmem:[%s4423_s15 + $0xb0] sm:$0xff] %vm2263_vm13, %v4618_v28 }
 0x2f7   : > { %p3250_p12 = pnand %p3249_p11, %p3410_p5  ;;  %p3255_p2 = por %p3254_p1, %p3253_p0 }
 0x2f8   : > { %v1908_v9 = vpop.permute.xlu1 %1907  ;;  %v2182_v17 = vpop.f32.mrf.mxu0 }
 0x2f9   : > { %1992 = vst.msk [vmem:[#allocation3 + $0x60] sm:$0xff] %vm1979_vm11, %v1908_v9  ;;  %v2273_v57 = vsel %vm2263_vm13, %v2182_v17, 0.0  ;;  %v2339_v53 = vmul.f32 %v2182_v17, %v2182_v17  ;;  %v4566_v30 = vpop.f32.mrf.mxu1  ;;  %p3251_p13 = pneg %p3250_p12 }
 0x2fa   : > { %v2274_v60 = vadd.f32 %v2273_v57, %v2272_v22  ;;  %2443 = vst.msk [vmem:[%s4404_s12 + $0x28] sm:$0xff] %vm2263_vm13, %v2182_v17  ;;  %v1934_v42 = vpop.permute.xlu0 %1933  ;;  %v1550_v4 = vpop.permute.xlu2 %1549  ;;  %v2729_v44 = vmul.f32 %v4566_v30, %v4566_v30  ;;  %v2666_v9 = vsel %vm2263_vm13, %v4566_v30, 0.0 }
 0x2fb   : > { %v2375_v56 = vsel %vm2263_vm13, %v2339_v53, 0.0  ;;  %2005 = vst.msk [vmem:[#allocation3 + $0xc8] sm:$0xff] %vm1979_vm11, %v1934_v42  ;;  %p3256_p3 = pnand %p3255_p2, %p3251_p13 }
 0x2fc   : > { %v2376_v2 = vadd.f32 %v2375_v56, %v2374_v23  ;;  %2832 = vst.msk [vmem:[%s4423_s15 + $0x40] sm:$0xff] %vm2263_vm13, %v4566_v30  ;;  %v2768_v53 = vsel %vm2263_vm13, %v2729_v44, 0.0 }
 0x300   : > { %v1328_v19 = vpop.permute.xlu1 %1327  ;;  %v2024_v14 = vld [vmem:[#allocation3 + $0x60] sm:$0xff] }
 0x301   : > { %1411 = vst.msk [vmem:[#allocation3 + $0x68] sm:$0xff] %vm1397_vm7, %v1328_v19  ;;  %3081 = vmatmul.msk.f32.gmra.mxu0 %vm2049_vm12, %v2024_v14  ;;  %v4586_v3 = vpop.f32.mrf.mxu1  ;;  %v2769_v19 = vadd.f32 %v2768_v53, %v2767_v45 }
 0x302   : > { %1607 = vst.msk [vmem:[#allocation3 + $0x68] sm:$0xff] %vm1593_vm9, %v1524_v54  ;;  %v1354_v20 = vpop.permute.xlu0 %1353  ;;  %v2037_v1 = vld [vmem:[#allocation3 + $0xc8] sm:$0xff]  ;;  %v1936_v13 = vpop.permute.xlu2 %1935 }
 0x303   : > { %1424 = vst.msk [vmem:[#allocation3 + $0xd0] sm:$0xff] %vm1397_vm7, %v1354_v20  ;;  %3094 = vmatmul.msk.f32.gmra.mxu2 %vm2049_vm12, %v2037_v1  ;;  %v4650_v54 = vpop.f32.mrf.mxu3 }
 0x304   : > { %1620 = vst.msk [vmem:[#allocation3 + $0xd0] sm:$0xff] %vm1593_vm9, %v1550_v4  ;;  %v2667_v4 = vadd.f32 %v2666_v9, %v2665_v43 }
 0x305   : > { %v4572_v36 = vpop.f32.mrf.mxu2  ;;  %2833 = vst.msk [vmem:[%s4423_s15 + $0x48] sm:$0xff] %vm2263_vm13, %v4586_v3 }
 0x306   : > { %2456 = vst.msk [vmem:[%s4404_s12 + $0x90] sm:$0xff] %vm2263_vm13, %v4572_v36 }
 0x307   : > { %2847 = vst.msk [vmem:[%s4423_s15 + $0xb8] sm:$0xff] %vm2263_vm13, %v4650_v54 }
 0x308   : > { %v1717_v59 = vpop.permute.xlu1 %1716 }
 0x309   : > { %1800 = vst.msk [vmem:[#allocation3 + $0x68] sm:$0xff] %vm1786_vm10, %v1717_v59  ;;  %v4603_v24 = vpop.f32.mrf.mxu1 }
 0x30a   : > { %v1910_v46 = vpop.permute.xlu0 %1909  ;;  %v1356_v51 = vpop.permute.xlu2 %1355  ;;  %2834 = vst.msk [vmem:[%s4423_s15 + $0x50] sm:$0xff] %vm2263_vm13, %v4603_v24  ;;  %v2731_v30 = vmul.f32 %v4603_v24, %v4603_v24  ;;  %v2670_v59 = vsel %vm2263_vm13, %v4603_v24, 0.0 }
 0x30b   : > { %1993 = vst.msk [vmem:[#allocation3 + $0x68] sm:$0xff] %vm1979_vm11, %v1910_v46  ;;  %v4670_v1 = vpop.f32.mrf.mxu3 }
 0x30c   : > { %1425 = vst.msk [vmem:[#allocation3 + $0xd8] sm:$0xff] %vm1397_vm7, %v1356_v51 }
 0x30d   : > { %2848 = vst.msk [vmem:[%s4423_s15 + $0xc0] sm:$0xff] %vm2263_vm13, %v4670_v1 }
 0x30e   : > { %v2185_v63 = vpop.f32.mrf.mxu0 }
 0x30f   : > { %v2275_v61 = vsel %vm2263_vm13, %v2185_v63, 0.0  ;;  %v2340_v10 = vmul.f32 %v2185_v63, %v2185_v63  ;;  %2444 = vst.msk [vmem:[%s4404_s12 + $0x30] sm:$0xff] %vm2263_vm13, %v2185_v63  ;;  %v2772_v63 = vsel %vm2263_vm13, %v2731_v30, 0.0 }
 0x310   : > { %v2276_v5 = vadd.f32 %v2275_v61, %v2274_v60  ;;  %v1743_v16 = vpop.permute.xlu1 %1742  ;;  %v2730_v60 = vmul.f32 %v4586_v3, %v4586_v3 }
 0x311   : > { %v2377_v58 = vsel %vm2263_vm13, %v2340_v10, 0.0  ;;  %1813 = vst.msk [vmem:[#allocation3 + $0xd0] sm:$0xff] %vm1786_vm10, %v1743_v16  ;;  %v2588_v18 = vpop.f32.mrf.mxu1 }
 0x312   : > { %v2378_v12 = vadd.f32 %v2377_v58, %v2376_v2  ;;  %2006 = vst.msk [vmem:[#allocation3 + $0xd0] sm:$0xff] %vm1979_vm11, %v1936_v13  ;;  %v1330_v8 = vpop.permute.xlu0 %1329  ;;  %v2025_v29 = vld [vmem:[#allocation3 + $0x68] sm:$0xff]  ;;  %v1912_v7 = vpop.permute.xlu2 %1911  ;;  %v2668_v2 = vsel %vm2263_vm13, %v4586_v3, 0.0  ;;  %v2770_v14 = vsel %vm2263_vm13, %v2730_v60, 0.0  ;;  %v2732_v61 = vmul.f32 %v2588_v18, %v2588_v18 }
 0x313   : > { %1412 = vst.msk [vmem:[#allocation3 + $0x70] sm:$0xff] %vm1397_vm7, %v1330_v8  ;;  %3082 = vmatmul.msk.f32.gmra.mxu0 %vm2049_vm12, %v2025_v29  ;;  %v2669_v20 = vadd.f32 %v2668_v2, %v2667_v4  ;;  %v2771_v46 = vadd.f32 %v2770_v14, %v2769_v19  ;;  %v2672_v58 = vsel %vm2263_vm13, %v2588_v18, 0.0 }
 0x314   : > { %2835 = vst.msk [vmem:[%s4423_s15 + $0x58] sm:$0xff] %vm2263_vm13, %v2588_v18 }
 0x315   : > { %v2773_v24 = vadd.f32 %v2772_v63, %v2771_v46 }
 0x316   : > { %v4613_v22 = vpop.f32.mrf.mxu2 }
 0x317   : > { %2457 = vst.msk [vmem:[%s4404_s12 + $0x98] sm:$0xff] %vm2263_vm13, %v4613_v22 }
 0x318   : > { %v1526_v27 = vpop.permute.xlu1 %1525 }
 0x319   : > { %1608 = vst.msk [vmem:[#allocation3 + $0x70] sm:$0xff] %vm1593_vm9, %v1526_v27  ;;  %v2188_v35 = vpop.f32.mrf.mxu0  ;;  %v2038_v23 = vld [vmem:[#allocation3 + $0xd0] sm:$0xff]  ;;  %v2591_v57 = vpop.f32.mrf.mxu1 }
 0x31a   : > { %v2277_v62 = vsel %vm2263_vm13, %v2188_v35, 0.0  ;;  %v2341_v47 = vmul.f32 %v2188_v35, %v2188_v35  ;;  %2445 = vst.msk [vmem:[%s4404_s12 + $0x38] sm:$0xff] %vm2263_vm13, %v2188_v35  ;;  %v1719_v26 = vpop.permute.xlu0 %1718  ;;  %3095 = vmatmul.msk.f32.gmra.mxu2 %vm2049_vm12, %v2038_v23  ;;  %v1332_v25 = vpop.permute.xlu2 %1331  ;;  %v2733_v8 = vmul.f32 %v2591_v57, %v2591_v57  ;;  %v2674_v35 = vsel %vm2263_vm13, %v2591_v57, 0.0 }
 0x31b   : > { %v4634_v32 = vadd.f32 %v2277_v62, %v2276_v5  ;;  %1801 = vst.msk [vmem:[#allocation3 + $0x70] sm:$0xff] %vm1786_vm10, %v1719_v26  ;;  %v2671_v5 = vadd.f32 %v2670_v59, %v2669_v20  ;;  %v2738_v59 = vmul.f32 %v4523_v37, %v4523_v37 }
 0x31c   : > { %v2379_v38 = vsel %vm2263_vm13, %v2341_v47, 0.0  ;;  %1994 = vst.msk [vmem:[#allocation3 + $0x70] sm:$0xff] %vm1979_vm11, %v1912_v7  ;;  %v4690_v7 = vpop.f32.mrf.mxu3  ;;  %v2776_v26 = vsel %vm2263_vm13, %v2733_v8, 0.0 }
 0x31d   : > { %v4642_v11 = vadd.f32 %v2379_v38, %v2378_v12  ;;  %1413 = vst.msk [vmem:[#allocation3 + $0x78] sm:$0xff] %vm1397_vm7, %v1332_v25  ;;  %v2774_v12 = vsel %vm2263_vm13, %v2732_v61, 0.0  ;;  %v2673_v29 = vadd.f32 %v2672_v58, %v2671_v5  ;;  %v2684_v61 = vsel %vm2263_vm13, %v4523_v37, 0.0 }
 0x31e   : > { %2836 = vst.msk [vmem:[%s4423_s15 + $0x60] sm:$0xff] %vm2263_vm13, %v2591_v57  ;;  %v2775_v21 = vadd.f32 %v2774_v12, %v2773_v24  ;;  %v2686_v37 = vsel %vm2263_vm13, %v4543_v48, 0.0 }
 0x31f   : > { %2849 = vst.msk [vmem:[%s4423_s15 + $0xc8] sm:$0xff] %vm2263_vm13, %v4690_v7  ;;  %v2675_v38 = vadd.f32 %v2674_v35, %v2673_v29  ;;  %v2786_v29 = vsel %vm2263_vm13, %v2738_v59, 0.0 }
 0x320   : > { %v1552_v17 = vpop.permute.xlu1 %1551  ;;  %v2777_v31 = vadd.f32 %v2776_v26, %v2775_v21  ;;  %v2741_v21 = vmul.f32 %v4580_v34, %v4580_v34 }
 0x321   : > { %1621 = vst.msk [vmem:[#allocation3 + $0xd8] sm:$0xff] %vm1593_vm9, %v1552_v17  ;;  %v2594_v3 = vpop.f32.mrf.mxu1 }
 0x322   : > { %v1745_v52 = vpop.permute.xlu0 %1744  ;;  %v1721_v42 = vpop.permute.xlu2 %1720  ;;  %2837 = vst.msk [vmem:[%s4423_s15 + $0x68] sm:$0xff] %vm2263_vm13, %v2594_v3  ;;  %v2734_v39 = vmul.f32 %v2594_v3, %v2594_v3 }
 0x323   : > { %1814 = vst.msk [vmem:[#allocation3 + $0xd8] sm:$0xff] %vm1786_vm10, %v1745_v52  ;;  %v2026_v56 = vld [vmem:[#allocation3 + $0x70] sm:$0xff] }
 0x324   : > { %3083 = vmatmul.msk.f32.gmra.mxu0 %vm2049_vm12, %v2026_v56  ;;  %v2778_v44 = vsel %vm2263_vm13, %v2734_v39, 0.0  ;;  %v4715_v17 = vpop.f32.mrf.mxu3 }
 0x325   : > { %2850 = vst.msk [vmem:[%s4423_s15 + $0xd0] sm:$0xff] %vm2263_vm13, %v4715_v17 }
 0x328   : > { %v1938_v13 = vpop.permute.xlu1 %1937 }
 0x329   : > { %2007 = vst.msk [vmem:[#allocation3 + $0xd8] sm:$0xff] %vm1979_vm11, %v1938_v13  ;;  %v2597_v33 = vpop.f32.mrf.mxu1 }
 0x32a   : > { %v1528_v51 = vpop.permute.xlu0 %1527  ;;  %v1747_v10 = vpop.permute.xlu2 %1746  ;;  %2838 = vst.msk [vmem:[%s4423_s15 + $0x70] sm:$0xff] %vm2263_vm13, %v2597_v33  ;;  %v2735_v43 = vmul.f32 %v2597_v33, %v2597_v33  ;;  %v2678_v57 = vsel %vm2263_vm13, %v2597_v33, 0.0 }
 0x32b   : > { %1609 = vst.msk [vmem:[#allocation3 + $0x78] sm:$0xff] %vm1593_vm9, %v1528_v51 }
 0x32c   : > { %v4682_v16 = vpop.f32.mrf.mxu2  ;;  %1802 = vst.msk [vmem:[#allocation3 + $0x78] sm:$0xff] %vm1786_vm10, %v1721_v42  ;;  %v2780_v42 = vsel %vm2263_vm13, %v2735_v43, 0.0  ;;  %v4734_v13 = vpop.f32.mrf.mxu3 }
 0x32d   : > { %2458 = vst.msk [vmem:[%s4404_s12 + $0xa0] sm:$0xff] %vm2263_vm13, %v4682_v16 }
 0x32e   : > { %2851 = vst.msk [vmem:[%s4423_s15 + $0xd8] sm:$0xff] %vm2263_vm13, %v4734_v13 }
 0x330   : > { %v1358_v0 = vpop.permute.xlu1 %1357  ;;  %v2191_v15 = vpop.f32.mrf.mxu0  ;;  %v2039_v27 = vld [vmem:[#allocation3 + $0xd8] sm:$0xff] }
 0x331   : > { %1426 = vst.msk [vmem:[#allocation3 + $0xe0] sm:$0xff] %vm1397_vm7, %v1358_v0  ;;  %v2279_v23 = vsel %vm2263_vm13, %v2191_v15, 0.0  ;;  %v2342_v18 = vmul.f32 %v2191_v15, %v2191_v15  ;;  %3096 = vmatmul.msk.f32.gmra.mxu2 %vm2049_vm12, %v2039_v27  ;;  %v2600_v53 = vpop.f32.mrf.mxu1  ;;  %v2740_v0 = vmul.f32 %v4559_v55, %v4559_v55 }
 0x332   : > { %v4700_v62 = vadd.f32 %v2279_v23, %v4634_v32  ;;  %2446 = vst.msk [vmem:[%s4404_s12 + $0x40] sm:$0xff] %vm2263_vm13, %v2191_v15  ;;  %v1554_v47 = vpop.permute.xlu0 %1553  ;;  %v1556_v25 = vpop.permute.xlu2 %1555  ;;  %v2676_v32 = vsel %vm2263_vm13, %v2594_v3, 0.0  ;;  %v2736_v4 = vmul.f32 %v2600_v53, %v2600_v53  ;;  %v2680_v2 = vsel %vm2263_vm13, %v2600_v53, 0.0 }
 0x333   : > { %v2381_v6 = vsel %vm2263_vm13, %v2342_v18, 0.0  ;;  %1622 = vst.msk [vmem:[#allocation3 + $0xe0] sm:$0xff] %vm1593_vm9, %v1554_v47  ;;  %v2677_v9 = vadd.f32 %v2676_v32, %v2675_v38  ;;  %v2688_v18 = vsel %vm2263_vm13, %v4559_v55, 0.0  ;;  %v2690_v38 = vsel %vm2263_vm13, %v4580_v34, 0.0 }
 0x334   : > { %v4708_v50 = vadd.f32 %v2381_v6, %v4642_v11  ;;  %1815 = vst.msk [vmem:[#allocation3 + $0xe0] sm:$0xff] %vm1786_vm10, %v1747_v10  ;;  %v2779_v11 = vadd.f32 %v2778_v44, %v2777_v31  ;;  %v2782_v30 = vsel %vm2263_vm13, %v2736_v4, 0.0  ;;  %v2739_v10 = vmul.f32 %v4543_v48, %v4543_v48  ;;  %v4767_v39 = vpop.f32.mrf.mxu3 }
 0x335   : > { %2839 = vst.msk [vmem:[%s4423_s15 + $0x78] sm:$0xff] %vm2263_vm13, %v2600_v53  ;;  %v2679_v56 = vadd.f32 %v2678_v57, %v2677_v9  ;;  %v2790_v6 = vsel %vm2263_vm13, %v2740_v0, 0.0  ;;  %v2742_v55 = vmul.f32 %v4596_v40, %v4596_v40  ;;  %v2692_v34 = vsel %vm2263_vm13, %v4596_v40, 0.0 }
 0x336   : > { %v2781_v14 = vadd.f32 %v2780_v42, %v2779_v11  ;;  %v2788_v23 = vsel %vm2263_vm13, %v2739_v10, 0.0  ;;  %2852 = vst.msk [vmem:[%s4423_s15 + $0xe0] sm:$0xff] %vm2263_vm13, %v4767_v39  ;;  %v2743_v57 = vmul.f32 %v4618_v28, %v4618_v28  ;;  %v2694_v42 = vsel %vm2263_vm13, %v4618_v28, 0.0 }
 0x337   : > { %v2681_v20 = vadd.f32 %v2680_v2, %v2679_v56  ;;  %v2744_v4 = vmul.f32 %v4650_v54, %v4650_v54  ;;  %v2745_v40 = vmul.f32 %v4670_v1, %v4670_v1 }
 0x338   : > { %v1914_v45 = vpop.permute.xlu1 %1913  ;;  %v2783_v51 = vadd.f32 %v2782_v30, %v2781_v14  ;;  %v2796_v14 = vsel %vm2263_vm13, %v2743_v57, 0.0  ;;  %v2696_v30 = vsel %vm2263_vm13, %v4650_v54, 0.0 }
 0x339   : > { %1995 = vst.msk [vmem:[#allocation3 + $0x78] sm:$0xff] %vm1979_vm11, %v1914_v45  ;;  %v2603_v63 = vpop.f32.mrf.mxu1  ;;  %v2792_v45 = vsel %vm2263_vm13, %v2741_v21, 0.0  ;;  %v2800_v54 = vsel %vm2263_vm13, %v2745_v40, 0.0 }
 0x33a   : > { %v1940_v52 = vpop.permute.xlu0 %1939  ;;  %v1362_v60 = vpop.permute.xlu2 %1361  ;;  %v2682_v24 = vsel %vm2263_vm13, %v2603_v63, 0.0  ;;  %v2737_v12 = vmul.f32 %v2603_v63, %v2603_v63  ;;  %2840 = vst.msk [vmem:[%s4423_s15 + $0x80] sm:$0xff] %vm2263_vm13, %v2603_v63  ;;  %v2746_v63 = vmul.f32 %v4690_v7, %v4690_v7 }
 0x33b   : > { %2008 = vst.msk [vmem:[#allocation3 + $0xe0] sm:$0xff] %vm1979_vm11, %v1940_v52  ;;  %v2683_v8 = vadd.f32 %v2682_v24, %v2681_v20 }
 0x33c   : > { %1428 = vst.msk [vmem:[#allocation3 + $0xf0] sm:$0xff] %vm1397_vm7, %v1362_v60  ;;  %v2784_v15 = vsel %vm2263_vm13, %v2737_v12, 0.0  ;;  %v2794_v60 = vsel %vm2263_vm13, %v2742_v55, 0.0 }
 0x33d   : > { %v4728_v19 = vpop.f32.mrf.mxu2  ;;  %v2685_v27 = vadd.f32 %v2684_v61, %v2683_v8  ;;  %v2785_v35 = vadd.f32 %v2784_v15, %v2783_v51  ;;  %v2698_v51 = vsel %vm2263_vm13, %v4670_v1, 0.0  ;;  %v2700_v1 = vsel %vm2263_vm13, %v4690_v7, 0.0 }
 0x33e   : > { %2459 = vst.msk [vmem:[%s4404_s12 + $0xa8] sm:$0xff] %vm2263_vm13, %v4728_v19  ;;  %v2702_v7 = vsel %vm2263_vm13, %v4715_v17, 0.0 }
 0x33f   : > { %v2687_v26 = vadd.f32 %v2686_v37, %v2685_v27  ;;  %v2747_v37 = vmul.f32 %v4715_v17, %v4715_v17 }
 0x340   : > { %v1360_v46 = vpop.permute.xlu1 %1359  ;;  %v2027_v3 = vld [vmem:[#allocation3 + $0x78] sm:$0xff] }
 0x341   : > { %1427 = vst.msk [vmem:[#allocation3 + $0xe8] sm:$0xff] %vm1397_vm7, %v1360_v46  ;;  %3084 = vmatmul.msk.f32.gmra.mxu0 %vm2049_vm12, %v2027_v3  ;;  %v2689_v43 = vadd.f32 %v2688_v18, %v2687_v26  ;;  %v2642_v46 = vpop.f32.mrf.mxu3  ;;  %v2798_v3 = vsel %vm2263_vm13, %v2744_v4, 0.0  ;;  %v2748_v18 = vmul.f32 %v4734_v13, %v4734_v13  ;;  %v2704_v26 = vsel %vm2263_vm13, %v4734_v13, 0.0 }
 0x342   : > { %1623 = vst.msk [vmem:[#allocation3 + $0xe8] sm:$0xff] %vm1593_vm9, %v1556_v25  ;;  %v1749_v5 = vpop.permute.xlu0 %1748  ;;  %v2040_v58 = vld [vmem:[#allocation3 + $0xe0] sm:$0xff]  ;;  %v2787_v25 = vadd.f32 %v2786_v29, %v2785_v35  ;;  %v1944_v56 = vpop.permute.xlu2 %1943  ;;  %v2802_v35 = vsel %vm2263_vm13, %v2746_v63, 0.0 }
 0x343   : > { %1816 = vst.msk [vmem:[#allocation3 + $0xe8] sm:$0xff] %vm1786_vm10, %v1749_v5  ;;  %3097 = vmatmul.msk.f32.gmra.mxu2 %vm2049_vm12, %v2040_v58  ;;  %v2691_v53 = vadd.f32 %v2690_v38, %v2689_v43  ;;  %v2750_v43 = vmul.f32 %v2642_v46, %v2642_v46 }
 0x344   : > { %v2789_v9 = vadd.f32 %v2788_v23, %v2787_v25  ;;  %2853 = vst.msk [vmem:[%s4423_s15 + $0xe8] sm:$0xff] %vm2263_vm13, %v2642_v46  ;;  %v2749_v25 = vmul.f32 %v4767_v39, %v4767_v39 }
 0x345   : > { %v2693_v2 = vadd.f32 %v2692_v34, %v2691_v53 }
 0x346   : > { %v2194_v33 = vpop.f32.mrf.mxu0  ;;  %v2791_v52 = vadd.f32 %v2790_v6, %v2789_v9  ;;  %v2808_v57 = vsel %vm2263_vm13, %v2749_v25, 0.0 }
 0x347   : > { %v2281_v48 = vsel %vm2263_vm13, %v2194_v33, 0.0  ;;  %v2343_v47 = vmul.f32 %v2194_v33, %v2194_v33  ;;  %2447 = vst.msk [vmem:[%s4404_s12 + $0x48] sm:$0xff] %vm2263_vm13, %v2194_v33  ;;  %v2695_v28 = vadd.f32 %v2694_v42, %v2693_v2 }
 0x348   : > { %v2282_v32 = vadd.f32 %v2281_v48, %v4700_v62  ;;  %v1942_v31 = vpop.permute.xlu1 %1941 }
 0x349   : > { %v2383_v44 = vsel %vm2263_vm13, %v2343_v47, 0.0  ;;  %2009 = vst.msk [vmem:[#allocation3 + $0xe8] sm:$0xff] %vm1979_vm11, %v1942_v31  ;;  %v2697_v24 = vadd.f32 %v2696_v30, %v2695_v28  ;;  %v2804_v47 = vsel %vm2263_vm13, %v2747_v37, 0.0  ;;  %v2645_v17 = vpop.f32.mrf.mxu3  ;;  %v2806_v31 = vsel %vm2263_vm13, %v2748_v18, 0.0 }
 0x34a   : > { %v2384_v62 = vadd.f32 %v2383_v44, %v4708_v50  ;;  %v1558_v11 = vpop.permute.xlu0 %1557  ;;  %v2793_v50 = vadd.f32 %v2792_v45, %v2791_v52  ;;  %v1753_v6 = vpop.permute.xlu2 %1752  ;;  %v2706_v44 = vsel %vm2263_vm13, %v4767_v39, 0.0  ;;  %2854 = vst.msk [vmem:[%s4423_s15 + $0xf0] sm:$0xff] %vm2263_vm13, %v2645_v17  ;;  %v2810_v52 = vsel %vm2263_vm13, %v2750_v43, 0.0 }
 0x34b   : > { %1624 = vst.msk [vmem:[#allocation3 + $0xf0] sm:$0xff] %vm1593_vm9, %v1558_v11  ;;  %v2699_v15 = vadd.f32 %v2698_v51, %v2697_v24  ;;  %v2751_v11 = vmul.f32 %v2645_v17, %v2645_v17 }
 0x34c   : > { %v2795_v59 = vadd.f32 %v2794_v60, %v2793_v50  ;;  %v2710_v60 = vsel %vm2263_vm13, %v2645_v17, 0.0 }
 0x34d   : > { %v2701_v33 = vadd.f32 %v2700_v1, %v2699_v15  ;;  %v2812_v40 = vsel %vm2263_vm13, %v2751_v11, 0.0 }
 0x34e   : > { %v4797_v20 = vpop.f32.mrf.mxu2  ;;  %v2797_v58 = vadd.f32 %v2796_v14, %v2795_v59 }
 0x34f   : > { %2460 = vst.msk [vmem:[%s4404_s12 + $0xb0] sm:$0xff] %vm2263_vm13, %v4797_v20  ;;  %v2703_v38 = vadd.f32 %v2702_v7, %v2701_v33 }
 0x350   : > { %v1751_v61 = vpop.permute.xlu1 %1750  ;;  %v2041_v10 = vld [vmem:[#allocation3 + $0xe8] sm:$0xff]  ;;  %v2799_v27 = vadd.f32 %v2798_v3, %v2797_v58 }
 0x351   : > { %1817 = vst.msk [vmem:[#allocation3 + $0xf0] sm:$0xff] %vm1786_vm10, %v1751_v61  ;;  %v2197_v5 = vpop.f32.mrf.mxu0  ;;  %3098 = vmatmul.msk.f32.gmra.mxu2 %vm2049_vm12, %v2041_v10  ;;  %v2705_v13 = vadd.f32 %v2704_v26, %v2703_v38  ;;  %v2648_v50 = vpop.f32.mrf.mxu3 }
 0x352   : > { %2010 = vst.msk [vmem:[#allocation3 + $0xf0] sm:$0xff] %vm1979_vm11, %v1944_v56  ;;  %v2283_v12 = vsel %vm2263_vm13, %v2197_v5, 0.0  ;;  %v2344_v8 = vmul.f32 %v2197_v5, %v2197_v5  ;;  %v1364_v29 = vpop.permute.xlu0 %1363  ;;  %v2801_v48 = vadd.f32 %v2800_v54, %v2799_v27  ;;  %v2712_v14 = vsel %vm2263_vm13, %v2648_v50, 0.0 }
 0x353   : > { %v4818_v0 = vadd.f32 %v2283_v12, %v2282_v32  ;;  %2448 = vst.msk [vmem:[%s4404_s12 + $0x50] sm:$0xff] %vm2263_vm13, %v2197_v5  ;;  %v2707_v39 = vadd.f32 %v2706_v44, %v2705_v13  ;;  %v2752_v30 = vmul.f32 %v2648_v50, %v2648_v50 }
 0x354   : > { %v2385_v23 = vsel %vm2263_vm13, %v2344_v8, 0.0  ;;  %1429 = vst.msk [vmem:[#allocation3 + $0xf8] sm:$0xff] %vm1397_vm7, %v1364_v29  ;;  %v2803_v55 = vadd.f32 %v2802_v35, %v2801_v48 }
 0x355   : > { %v4829_v21 = vadd.f32 %v2385_v23, %v2384_v62  ;;  %v2708_v62 = vsel %vm2263_vm13, %v2642_v46, 0.0  ;;  %2855 = vst.msk [vmem:[%s4423_s15 + $0xf8] sm:$0xff] %vm2263_vm13, %v2648_v50  ;;  %v2814_v3 = vsel %vm2263_vm13, %v2752_v30, 0.0 }
 0x356   : > { %v2805_v45 = vadd.f32 %v2804_v47, %v2803_v55  ;;  %v2709_v4 = vadd.f32 %v2708_v62, %v2707_v39 }
 0x358   : > { %v1560_v32 = vpop.permute.xlu1 %1559  ;;  %v2807_v53 = vadd.f32 %v2806_v31, %v2805_v45  ;;  %v2711_v2 = vadd.f32 %v2710_v60, %v2709_v4 }
 0x359   : > { %1625 = vst.msk [vmem:[#allocation3 + $0xf8] sm:$0xff] %vm1593_vm9, %v1560_v32  ;;  %v2042_v9 = vld [vmem:[#allocation3 + $0xf0] sm:$0xff] }
 0x35a   : > { %1818 = vst.msk [vmem:[#allocation3 + $0xf8] sm:$0xff] %vm1786_vm10, %v1753_v6  ;;  %v1946_v34 = vpop.permute.xlu0 %1945  ;;  %3099 = vmatmul.msk.f32.gmra.mxu2 %vm2049_vm12, %v2042_v9  ;;  %v2809_v42 = vadd.f32 %v2808_v57, %v2807_v53  ;;  %v2713_v59 = vadd.f32 %v2712_v14, %v2711_v2 }
 0x35b   : > { %2011 = vst.msk [vmem:[#allocation3 + $0xf8] sm:$0xff] %vm1979_vm11, %v1946_v34 }
 0x35c   : > { %v2811_v56 = vadd.f32 %v2810_v52, %v2809_v42  ;;  %v2714_v51 = vrot.slane %v2713_v59, 4 }
 0x35e   : > { %v2813_v28 = vadd.f32 %v2812_v40, %v2811_v56  ;;  %v2715_v10 = vadd.f32 %v2714_v51, %v2713_v59 }
 0x360   : > { %v2815_v63 = vadd.f32 %v2814_v3, %v2813_v28  ;;  %v2716_v5 = vrot.slane %v2715_v10, 2 }
 0x362   : > { %v2043_v46 = vld [vmem:[#allocation3 + $0xf8] sm:$0xff]  ;;  %v2816_v54 = vrot.slane %v2815_v63, 4  ;;  %v2717_v8 = vadd.f32 %v2716_v5, %v2715_v10 }
 0x363   : > { %3100 = vmatmul.msk.f32.gmra.mxu2 %vm2049_vm12, %v2043_v46 }
 0x364   : > { %v4855_v61 = vpop.f32.mrf.mxu2  ;;  %v2817_v58 = vadd.f32 %v2816_v54, %v2815_v63  ;;  %v2718_v27 = vrot.slane %v2717_v8, 1 }
 0x365   : > { %2461 = vst.msk [vmem:[%s4404_s12 + $0xb8] sm:$0xff] %vm2263_vm13, %v4855_v61 }
 0x366   : > { %v2818_v29 = vrot.slane %v2817_v58, 2  ;;  %v2719_v7 = vadd.f32 %v2718_v27, %v2717_v8 }
 0x368   : > { %v2200_v24 = vpop.f32.mrf.mxu0  ;;  %v2819_v35 = vadd.f32 %v2818_v29, %v2817_v58  ;;  %2859 = vst.msk [vmem:[%s269_s19] sm:$0x1] %vm2856_vm14, %v2719_v7 }
 0x369   : > { %v2285_v1 = vsel %vm2263_vm13, %v2200_v24, 0.0  ;;  %v2345_v12 = vmul.f32 %v2200_v24, %v2200_v24  ;;  %2449 = vst.msk [vmem:[%s4404_s12 + $0x58] sm:$0xff] %vm2263_vm13, %v2200_v24 }
 0x36a   : > { %v2286_v37 = vadd.f32 %v2285_v1, %v4818_v0  ;;  %v2820_v18 = vrot.slane %v2819_v35, 1 }
 0x36b   : > { %v2387_v15 = vsel %vm2263_vm13, %v2345_v12, 0.0 }
 0x36c   : > { %v2388_v23 = vadd.f32 %v2387_v15, %v4829_v21  ;;  %v2821_v33 = vadd.f32 %v2820_v18, %v2819_v35 }
 0x36e   : > { %2860 = vst.msk [vmem:[%s269_s19 + $0x1] sm:$0x1] %vm2856_vm14, %v2821_v33 }
 0x375   : > { %v4874_v48 = vpop.f32.mrf.mxu2 }
 0x376   : > { %2462 = vst.msk [vmem:[%s4404_s12 + $0xc0] sm:$0xff] %vm2263_vm13, %v4874_v48 }
 0x377   : > { %3259 = shalt.err (!%p3256_p3)
}
 0x378   : > { %3150 = dma.vmem_to_hbm [thread:$0]  (%p3410_p5), %s2910_s28, 32, %s2912_s29, %s2877_s9   ;;  %v2350_v53 = vmul.f32 %v4488_v41, %v4488_v41  ;;  %v2295_v40 = vsel %vm2263_vm13, %v4488_v41, 0.0  ;;  %v2351_v56 = vmul.f32 %v4538_v49, %v4538_v49  ;;  %v2297_v28 = vsel %vm2263_vm13, %v4538_v49, 0.0 }
 0x379   : > { %v2352_v59 = vmul.f32 %v4572_v36, %v4572_v36  ;;  %v2299_v51 = vsel %vm2263_vm13, %v4572_v36, 0.0  ;;  %v2353_v63 = vmul.f32 %v4613_v22, %v4613_v22  ;;  %v2301_v49 = vsel %vm2263_vm13, %v4613_v22, 0.0  ;;  %s2890_s18 = scalar_lea.hbm %s5044_s4, %s3136_s20  ;;  %s2867_s25 = scalar_lea.sflag [#allocation5], %s4861_s11 }
 0x37a   : > { %v2397_v30 = vsel %vm2263_vm13, %v2350_v53, 0.0  ;;  %v2399_v41 = vsel %vm2263_vm13, %v2351_v56, 0.0  ;;  %v2354_v24 = vmul.f32 %v4682_v16, %v4682_v16  ;;  %v2303_v8 = vsel %vm2263_vm13, %v4682_v16, 0.0  ;;  %s2894_s16 = sshll.u32 %s2890_s18, 4  ;;  %s3280_s9 = scalar_lea.hbm %s5044_s4, 4  ;;  %s2895_s16 = int_to_ptr.hbm [resolvable:$true] %s2894_s16 }
 0x37b   : > { %v2401_v58 = vsel %vm2263_vm13, %v2352_v59, 0.0  ;;  %v2403_v36 = vsel %vm2263_vm13, %v2353_v63, 0.0  ;;  %v2355_v29 = vmul.f32 %v4728_v19, %v4728_v19  ;;  %v2305_v22 = vsel %vm2263_vm13, %v4728_v19, 0.0  ;;  %s3274_s17 = sshra.s32 %s2895_s16, 4  ;;  %s3275_s17 = int_to_ptr.hbm [resolvable:$true] %s3274_s17 }
 0x37c   : > { %v2405_v27 = vsel %vm2263_vm13, %v2354_v24, 0.0  ;;  %v2356_v35 = vmul.f32 %v4797_v20, %v4797_v20  ;;  %v2307_v16 = vsel %vm2263_vm13, %v4797_v20, 0.0  ;;  %v2357_v33 = vmul.f32 %v4855_v61, %v4855_v61  ;;  %s3276_s20 = scalar_lea.hbm %s3275_s17, 2  ;;  %p3281_p9 = scmp.lt.s32.totalorder %s3275_s17, %s5044_s4 }
 0x37d   : > { %v2407_v18 = vsel %vm2263_vm13, %v2355_v29, 0.0  ;;  %v2309_v19 = vsel %vm2263_vm13, %v4855_v61, 0.0  ;;  %v2311_v20 = vsel %vm2263_vm13, %v4874_v48, 0.0  ;;  %p3277_p4 = scmp.ne.s32.totalorder %s3275_s17, %s3276_s20  ;;  %p3282_p10 = scmp.lt.s32.totalorder %s3280_s9, %s3276_s20 }
 0x37e   : > { %v2203_v0 = vpop.f32.mrf.mxu0 }
 0x37f   : > { %v2287_v21 = vsel %vm2263_vm13, %v2203_v0, 0.0  ;;  %v2346_v47 = vmul.f32 %v2203_v0, %v2203_v0  ;;  %2450 = vst.msk [vmem:[%s4404_s12 + $0x60] sm:$0xff] %vm2263_vm13, %v2203_v0  ;;  %p3278_p7 = pnand %p3277_p4, %p3410_p5  ;;  %p3283_p11 = por %p3282_p10, %p3281_p9 }
 0x380   : > { %v2288_v26 = vadd.f32 %v2287_v21, %v2286_v37 }
 0x381   : > { %v2389_v25 = vsel %vm2263_vm13, %v2346_v47, 0.0  ;;  %v2409_v47 = vsel %vm2263_vm13, %v2356_v35, 0.0  ;;  %p3279_p8 = pneg %p3278_p7 }
 0x382   : > { %v2390_v6 = vadd.f32 %v2389_v25, %v2388_v23 }
 0x383   : > { %p3284_p12 = pnand %p3283_p11, %p3279_p8 }
 0x386   : > { %v4900_v38 = vpop.f32.mrf.mxu2 }
 0x387   : > { %2463 = vst.msk [vmem:[%s4404_s12 + $0xc8] sm:$0xff] %vm2263_vm13, %v4900_v38  ;;  %v2313_v61 = vsel %vm2263_vm13, %v4900_v38, 0.0 }
 0x390   : > { %v2206_v55 = vpop.f32.mrf.mxu0 }
 0x391   : > { %2451 = vst.msk [vmem:[%s4404_s12 + $0x68] sm:$0xff] %vm2263_vm13, %v2206_v55  ;;  %v2347_v44 = vmul.f32 %v2206_v55, %v2206_v55  ;;  %v2289_v43 = vsel %vm2263_vm13, %v2206_v55, 0.0  ;;  %v2411_v55 = vsel %vm2263_vm13, %v2357_v33, 0.0 }
 0x392   : > { %v2290_v34 = vadd.f32 %v2289_v43, %v2288_v26  ;;  %v2358_v26 = vmul.f32 %v4874_v48, %v4874_v48 }
 0x393   : > { %v2391_v13 = vsel %vm2263_vm13, %v2347_v44, 0.0 }
 0x394   : > { %v2392_v62 = vadd.f32 %v2391_v13, %v2390_v6 }
 0x39d   : > { %v4907_v17 = vpop.f32.mrf.mxu2 }
 0x39e   : > { %2464 = vst.msk [vmem:[%s4404_s12 + $0xd0] sm:$0xff] %vm2263_vm13, %v4907_v17  ;;  %v2360_v13 = vmul.f32 %v4907_v17, %v4907_v17  ;;  %v2315_v48 = vsel %vm2263_vm13, %v4907_v17, 0.0 }
 0x3a0   : > { %v2417_v53 = vsel %vm2263_vm13, %v2360_v13, 0.0 }
 0x3a1   : > { %v2209_v32 = vpop.f32.mrf.mxu0 }
 0x3a2   : > { %2452 = vst.msk [vmem:[%s4404_s12 + $0x70] sm:$0xff] %vm2263_vm13, %v2209_v32  ;;  %v2348_v9 = vmul.f32 %v2209_v32, %v2209_v32  ;;  %v2291_v45 = vsel %vm2263_vm13, %v2209_v32, 0.0  ;;  %v2359_v32 = vmul.f32 %v4900_v38, %v4900_v38 }
 0x3a3   : > { %v2292_v11 = vadd.f32 %v2291_v45, %v2290_v34 }
 0x3a4   : > { %v2393_v57 = vsel %vm2263_vm13, %v2348_v9, 0.0  ;;  %v2413_v9 = vsel %vm2263_vm13, %v2358_v26, 0.0 }
 0x3a5   : > { %v2394_v42 = vadd.f32 %v2393_v57, %v2392_v62  ;;  %v2415_v62 = vsel %vm2263_vm13, %v2359_v32, 0.0 }
 0x3b4   : > { %v4914_v31 = vpop.f32.mrf.mxu2 }
 0x3b5   : > { %2465 = vst.msk [vmem:[%s4404_s12 + $0xd8] sm:$0xff] %vm2263_vm13, %v4914_v31  ;;  %v2361_v38 = vmul.f32 %v4914_v31, %v4914_v31 }
 0x3be   : > { %v2212_v39 = vpop.f32.mrf.mxu0 }
 0x3bf   : > { %v2293_v52 = vsel %vm2263_vm13, %v2212_v39, 0.0  ;;  %v2349_v60 = vmul.f32 %v2212_v39, %v2212_v39  ;;  %2453 = vst.msk [vmem:[%s4404_s12 + $0x78] sm:$0xff] %vm2263_vm13, %v2212_v39 }
 0x3c0   : > { %v2294_v4 = vadd.f32 %v2293_v52, %v2292_v11 }
 0x3c1   : > { %v2395_v2 = vsel %vm2263_vm13, %v2349_v60, 0.0  ;;  %v2317_v60 = vsel %vm2263_vm13, %v4914_v31, 0.0 }
 0x3c2   : > { %v2296_v50 = vadd.f32 %v2295_v40, %v2294_v4  ;;  %v2396_v14 = vadd.f32 %v2395_v2, %v2394_v42  ;;  %v2419_v4 = vsel %vm2263_vm13, %v2361_v38, 0.0 }
 0x3c4   : > { %v2298_v46 = vadd.f32 %v2297_v28, %v2296_v50  ;;  %v2398_v3 = vadd.f32 %v2397_v30, %v2396_v14 }
 0x3c6   : > { %v2300_v10 = vadd.f32 %v2299_v51, %v2298_v46  ;;  %v2400_v54 = vadd.f32 %v2399_v41, %v2398_v3  ;;  %v2251_v5 = vpop.f32.mrf.mxu2 }
 0x3c7   : > { %2466 = vst.msk [vmem:[%s4404_s12 + $0xe0] sm:$0xff] %vm2263_vm13, %v2251_v5  ;;  %v2362_v40 = vmul.f32 %v2251_v5, %v2251_v5  ;;  %v2319_v17 = vsel %vm2263_vm13, %v2251_v5, 0.0 }
 0x3c8   : > { %v2302_v1 = vadd.f32 %v2301_v49, %v2300_v10  ;;  %v2402_v12 = vadd.f32 %v2401_v58, %v2400_v54 }
 0x3c9   : > { %v2421_v14 = vsel %vm2263_vm13, %v2362_v40, 0.0 }
 0x3ca   : > { %v2304_v37 = vadd.f32 %v2303_v8, %v2302_v1  ;;  %v2404_v15 = vadd.f32 %v2403_v36, %v2402_v12 }
 0x3cc   : > { %v2306_v23 = vadd.f32 %v2305_v22, %v2304_v37  ;;  %v2406_v7 = vadd.f32 %v2405_v27, %v2404_v15 }
 0x3ce   : > { %v2408_v0 = vadd.f32 %v2407_v18, %v2406_v7  ;;  %v2308_v21 = vadd.f32 %v2307_v16, %v2306_v23 }
 0x3d0   : > { %v2310_v25 = vadd.f32 %v2309_v19, %v2308_v21  ;;  %v2410_v6 = vadd.f32 %v2409_v47, %v2408_v0 }
 0x3d2   : > { %v2312_v44 = vadd.f32 %v2311_v20, %v2310_v25  ;;  %v2412_v43 = vadd.f32 %v2411_v55, %v2410_v6 }
 0x3d4   : > { %v2314_v45 = vadd.f32 %v2313_v61, %v2312_v44  ;;  %v2414_v34 = vadd.f32 %v2413_v9, %v2412_v43  ;;  %v2254_v57 = vpop.f32.mrf.mxu2 }
 0x3d5   : > { %2467 = vst.msk [vmem:[%s4404_s12 + $0xe8] sm:$0xff] %vm2263_vm13, %v2254_v57  ;;  %v2363_v30 = vmul.f32 %v2254_v57, %v2254_v57  ;;  %v2321_v59 = vsel %vm2263_vm13, %v2254_v57, 0.0 }
 0x3d6   : > { %v2316_v11 = vadd.f32 %v2315_v48, %v2314_v45  ;;  %v2416_v39 = vadd.f32 %v2415_v62, %v2414_v34 }
 0x3d7   : > { %v2423_v3 = vsel %vm2263_vm13, %v2363_v30, 0.0 }
 0x3d8   : > { %v2418_v52 = vadd.f32 %v2417_v53, %v2416_v39  ;;  %v2318_v42 = vadd.f32 %v2317_v60, %v2316_v11 }
 0x3da   : > { %v2420_v56 = vadd.f32 %v2419_v4, %v2418_v52  ;;  %v2320_v50 = vadd.f32 %v2319_v17, %v2318_v42 }
 0x3dc   : > { %v2422_v28 = vadd.f32 %v2421_v14, %v2420_v56  ;;  %v2322_v31 = vadd.f32 %v2321_v59, %v2320_v50 }
 0x3dd   : > { %v2257_v2 = vpop.f32.mrf.mxu2 }
 0x3de   : > { %2468 = vst.msk [vmem:[%s4404_s12 + $0xf0] sm:$0xff] %vm2263_vm13, %v2257_v2  ;;  %v2364_v46 = vmul.f32 %v2257_v2, %v2257_v2  ;;  %v2323_v41 = vsel %vm2263_vm13, %v2257_v2, 0.0  ;;  %v2424_v51 = vadd.f32 %v2423_v3, %v2422_v28 }
 0x3df   : > { %v2324_v10 = vadd.f32 %v2323_v41, %v2322_v31 }
 0x3e0   : > { %v2425_v63 = vsel %vm2263_vm13, %v2364_v46, 0.0 }
 0x3e1   : > { %v2426_v49 = vadd.f32 %v2425_v63, %v2424_v51 }
 0x3e6   : > { %v2260_v54 = vpop.f32.mrf.mxu2 }
 0x3e7   : > { %v2325_v5 = vsel %vm2263_vm13, %v2260_v54, 0.0  ;;  %v2365_v58 = vmul.f32 %v2260_v54, %v2260_v54  ;;  %2469 = vst.msk [vmem:[%s4404_s12 + $0xf8] sm:$0xff] %vm2263_vm13, %v2260_v54  ;;  %s5113_s12 = sshll.u32 %s4861_s11, 1 }
 0x3e8   : > { %v2326_v24 = vadd.f32 %v2325_v5, %v2324_v10  ;;  %s255_s19 = scalar_lea.vmem [#allocation4], %s5113_s12 }
 0x3e9   : > { %v2427_v1 = vsel %vm2263_vm13, %v2365_v58, 0.0  ;;  %s2892_s26 = sshll.u32 %s255_s19, 4  ;;  %s2893_s26 = int_to_ptr.vmem [resolvable:$true] %s2892_s26 }
 0x3ea   : > { %v2327_v12 = vrot.slane %v2326_v24, 4  ;;  %v2428_v36 = vadd.f32 %v2427_v1, %v2426_v49 }
 0x3ec   : > { %v2328_v8 = vadd.f32 %v2327_v12, %v2326_v24  ;;  %v2429_v29 = vrot.slane %v2428_v36, 4 }
 0x3ee   : > { %v2329_v37 = vrot.slane %v2328_v8, 2  ;;  %v2430_v15 = vadd.f32 %v2429_v29, %v2428_v36 }
 0x3f0   : > { %v2330_v27 = vadd.f32 %v2329_v37, %v2328_v8  ;;  %v2431_v22 = vrot.slane %v2430_v15, 2 }
 0x3f2   : > { %v2331_v35 = vrot.slane %v2330_v27, 1  ;;  %v2432_v23 = vadd.f32 %v2431_v22, %v2430_v15 }
 0x3f4   : > { %v2332_v7 = vadd.f32 %v2331_v35, %v2330_v27  ;;  %v2433_v18 = vrot.slane %v2432_v23, 1 }
 0x3f6   : > { %v2434_v16 = vadd.f32 %v2433_v18, %v2432_v23  ;;  %2857 = vst.msk [vmem:[%s255_s19] sm:$0x1] %vm2856_vm14, %v2332_v7 }
 0x3f8   : > { %2858 = vst.msk [vmem:[%s255_s19 + $0x1] sm:$0x1] %vm2856_vm14, %v2434_v16 }
 0x3f9   : > { %3287 = shalt.err (!%p3284_p12)
}
 0x3fa   : > { %3149 = dma.vmem_to_hbm [thread:$0]  (%p3410_p5), %s2893_s26, 32, %s2895_s16, %s2867_s25  }
 0x3fb PF: > { %p3160_p13 = scmp.ge.s32.totalorder %s3326_s24, 2  ;;  %s2931_s11 = sand.u32 1, %s3314_s21  }
 0x3fc   : > { %s2932_s14 = scalar_lea.sflag [#allocation5], %s2931_s11 }
 0x3fd   : > { %p3154_p0 = pnand %p3160_p13, %p3414_p6 }
 0x3ff   : > { %p3155_p1 = pneg %p3154_p0 }
 0x401   : > { %3305 = dma.done.wait (%p3155_p1), %s2932_s14, 32  }
 0x402   : > { %3307 = vsyncadd (%p3155_p1), %s2932_s14, 4294967264  ;;  %s2950_s15 = scalar_lea.sflag [#allocation7], %s2931_s11 }
 0x403   : > { %3309 = dma.done.wait (%p3155_p1), %s2950_s15, 32  }
 0x404   : > { %3311 = vsyncadd (%p3155_p1), %s2950_s15, 4294967264  ;;  %p20_p5 = scmp.ge.s32.totalorder %s3397_s27, 4   ;;  %s5114_s21 = smov %s3318_s22 }
 0x405   : > { %s5115_s22 = smov %s3322_s23  ;;  %s5116_s23 = smov %s3408_s30 }
 0x406   : > { %s5117_s24 = smov %s3397_s27  ;;  %22 = sbr.rel (!%p20_p5) target bundleno = 8 (0x8), region = 115 }
 0x40b   :  { %2956 = vsyncpa [#allocation5], 1 }
 0x40c   :  { %2958 = vsyncpa [#allocation5 + $0x1], 1 }
 0x40d   :  { %2959 = vsyncpa [#allocation7], 1 }
 0x40e   :  { %2961 = vsyncpa [#allocation7 + $0x1], 1 }

</bundles_post_ra>
